<compile_context>
chip_gen: v7x
topology: tpu7x:2x2x1
jax: 0.10.0
libtpu: 0.0.40
codegen_flags: <defaults>
</compile_context>

<pallas_src>
import math

import jax
import jax.numpy as jnp
from jax import lax
from jax.experimental import pallas as pl
from jax.experimental.pallas import tpu as pltpu  # noqa: F401  (TPU backend)

# ---------------- small ViT config (shape-consistent with the forward) ------
BATCH   = 2
CIN     = 3                      # ViT expects RGB
IMG     = 32
PATCH   = 16
NPATCH  = (IMG // PATCH) ** 2    # 4
SEQ     = NPATCH + 1             # +1 CLS token -> 5
HIDDEN  = 32
HEADS   = 4
HEAD_D  = HIDDEN // HEADS        # 8
MLP     = 4 * HIDDEN             # 128
LAYERS  = 2
CLASSES = 10
CPP     = CIN * PATCH * PATCH    # 768 flattened patch length
CPAD    = 128                    # lane-dense padded class dim (wrapper slices to CLASSES)
EPAD    = 128                    # lane-dense padded embedding output (wrapper slices to HIDDEN)
ROWS    = BATCH * SEQ            # all tokens of all images, processed jointly
LN_EPS  = 1e-6                   # torchvision ViT uses eps=1e-6
ATTN_SCALE = 1.0 / math.sqrt(HEAD_D)   # nn.MultiheadAttention scales q by 1/sqrt(head_dim)


# ---------------- elementwise helpers (run inside the kernel) ---------------
def _erf(x):
    # Abramowitz & Stegun 7.1.26 polynomial erf (|err| < 1.5e-7, ~f32 precision).
    # exp() routes to the EUP; the polynomial itself is a handful of VPU FMAs.
    # TODO(synk): replace with jax.lax.erf once Mosaic lowering for erf is confirmed.
    a1, a2, a3, a4, a5 = 0.254829592, -0.284496736, 1.421413741, -1.453152027, 1.061405429
    p = 0.3275911
    sgn = jnp.where(x >= 0.0, 1.0, -1.0)
    ax = jnp.abs(x)
    t = 1.0 / (1.0 + p * ax)
    poly = ((((a5 * t + a4) * t + a3) * t + a2) * t + a1) * t
    return sgn * (1.0 - poly * jnp.exp(-ax * ax))


def _gelu_exact(x):
    # Matches torch.nn.GELU() default (erf-based, not tanh approximation).
    return 0.5 * x * (1.0 + _erf(x * (1.0 / math.sqrt(2.0))))


def _layer_norm(x, g, b):
    # x: (rows, D), g/b: (1, D); f32 math.
    mu = jnp.mean(x, axis=-1, keepdims=True)
    var = jnp.mean(jnp.square(x - mu), axis=-1, keepdims=True)
    return (x - mu) * lax.rsqrt(var + LN_EPS) * g + b


# ---------------- the single fused kernel ------------------------------------
def _vit_kernel(
    patches_ref,                # (B*N, CPP)
    conv_w_ref, conv_b_ref,     # (CPP, D), (1, D)
    cls_ref, pos_ref,           # (1, D), (S, D)
    ln1_g_ref, ln1_b_ref,       # (L, 1, D)
    qkv_w_ref, qkv_b_ref,       # (L, D, 3D), (L, 1, 3D)
    out_w_ref, out_b_ref,       # (L, D, D), (L, 1, D)
    ln2_g_ref, ln2_b_ref,       # (L, 1, D)
    fc1_w_ref, fc1_b_ref,       # (L, D, MLP), (L, 1, MLP)
    fc2_w_ref, fc2_b_ref,       # (L, MLP, D), (L, 1, D)
    lnf_g_ref, lnf_b_ref,       # (1, D)
    head_w_ref, head_b_ref,     # (D, CPAD), (1, CPAD)
    emb_ref, logits_ref,        # outputs: (B, EPAD), (B, CPAD)
):
    f32 = jnp.float32
    D = HIDDEN

    # ---- patch embedding for the whole batch: one (B*N, CPP) @ (CPP, D) ----
    tok = jnp.dot(patches_ref[...], conv_w_ref[...],
                  preferred_element_type=f32) + conv_b_ref[...]              # (B*N, D)

    # ---- assemble joint token matrix (B*S, D): [CLS, patches] per image ----
    cls_tok = cls_ref[...]
    pos = pos_ref[...]
    rows = []
    for b in range(BATCH):                                                   # static (B = 2)
        rows.append(cls_tok)
        rows.append(tok[b * NPATCH:(b + 1) * NPATCH, :])
    # dropout after pos-embed is identity in eval mode
    x = jnp.concatenate(rows, axis=0) + jnp.concatenate([pos] * BATCH, axis=0)   # (ROWS, D)

    for l in range(LAYERS):                                                  # static (L = 2)
        # ---- self-attention block (pre-LN), whole batch at once ----
        y = _layer_norm(x, ln1_g_ref[l], ln1_b_ref[l])
        qkv = jnp.dot(y, qkv_w_ref[l], preferred_element_type=f32) + qkv_b_ref[l]  # (ROWS, 3D)
        q = qkv[:, :D] * ATTN_SCALE
        k = qkv[:, D:2 * D]
        v = qkv[:, 2 * D:]

        attn_rows = []
        for b in range(BATCH):                                               # static (B = 2)
            rs = slice(b * SEQ, (b + 1) * SEQ)
            heads = []
            for h in range(HEADS):                                           # static (H = 4)
                cs = slice(h * HEAD_D, (h + 1) * HEAD_D)
                qh, kh, vh = q[rs, cs], k[rs, cs], v[rs, cs]                 # (S, Dh)
                # q @ k.T via contraction of last dims (no explicit transpose)
                s = lax.dot_general(qh, kh, (((1,), (1,)), ((), ())),
                                    preferred_element_type=f32)              # (S, S)
                s = s - jnp.max(s, axis=-1, keepdims=True)
                p = jnp.exp(s)
                p = p * pl.reciprocal(jnp.sum(p, axis=-1, keepdims=True), approx=True)
                heads.append(jnp.dot(p, vh, preferred_element_type=f32))     # (S, Dh)
            attn_rows.append(jnp.concatenate(heads, axis=-1))                # (S, D)
        attn = jnp.concatenate(attn_rows, axis=0)                            # (ROWS, D)
        attn = jnp.dot(attn, out_w_ref[l], preferred_element_type=f32) + out_b_ref[l]
        x = x + attn

        # ---- MLP block (pre-LN), whole batch at once ----
        y = _layer_norm(x, ln2_g_ref[l], ln2_b_ref[l])
        hdn = _gelu_exact(jnp.dot(y, fc1_w_ref[l],
                                  preferred_element_type=f32) + fc1_b_ref[l])       # (ROWS, MLP)
        x = x + jnp.dot(hdn, fc2_w_ref[l], preferred_element_type=f32) + fc2_b_ref[l]

    # ---- encoder.ln then x[:, 0]: LayerNorm applied to the CLS rows only ----
    cls_all = jnp.concatenate([x[b * SEQ:b * SEQ + 1, :] for b in range(BATCH)], axis=0)  # (B, D)
    cls_all = _layer_norm(cls_all, lnf_g_ref[...], lnf_b_ref[...])

    # lane-dense (128-wide) stores; wrapper slices back to HIDDEN / CLASSES
    emb_pad = jnp.concatenate([cls_all, jnp.zeros((BATCH, EPAD - D), f32)], axis=-1)
    emb_ref[...] = emb_pad.astype(emb_ref.dtype)
    logits = jnp.dot(cls_all, head_w_ref[...], preferred_element_type=f32) + head_b_ref[...]
    logits_ref[...] = logits.astype(logits_ref.dtype)


# ---------------- parameters (deterministic synthetic, kernel-ready layout) --
def init_params(key):
    keys = iter(jax.random.split(key, 16))

    def nrm(shape, scale=0.02):
        return scale * jax.random.normal(next(keys), shape, dtype=jnp.float32)

    D, L = HIDDEN, LAYERS

    # conv_proj.weight is (D, C, P, P) in torch; stored pre-reshaped/transposed
    # to (C*P*P, D) so patch embedding is a single (B*N, CPP) @ (CPP, D) matmul.
    conv_w = nrm((D, CIN, PATCH, PATCH)).reshape(D, CPP).T

    # heads.head.weight is (CLASSES, D) in torch; stored transposed and padded
    # to 128 output lanes (extra columns are zero -> sliced off in the wrapper).
    head_w = nrm((CLASSES, D))
    head_w_pad = jnp.zeros((D, CPAD), jnp.float32).at[:, :CLASSES].set(head_w.T)
    head_b_pad = jnp.zeros((1, CPAD), jnp.float32)

    params = {
        "conv_w": conv_w,                               # (CPP, D)
        "conv_b": nrm((1, D)),                          # conv_proj.bias
        "class_token": nrm((1, D)),
        "pos_emb": nrm((SEQ, D)),
        # per-layer weights stacked along a leading L axis, pre-transposed (Din, Dout):
        "ln1_g": jnp.ones((L, 1, D), jnp.float32),
        "ln1_b": jnp.zeros((L, 1, D), jnp.float32),
        "qkv_w": nrm((L, D, 3 * D)),                    # torch in_proj_weight.T  (cols = [q|k|v])
        "qkv_b": nrm((L, 1, 3 * D)),
        "out_w": nrm((L, D, D)),                        # torch out_proj.weight.T
        "out_b": nrm((L, 1, D)),
        "ln2_g": jnp.ones((L, 1, D), jnp.float32),
        "ln2_b": jnp.zeros((L, 1, D), jnp.float32),
        "fc1_w": nrm((L, D, MLP)),                      # torch mlp.linear_1.weight.T
        "fc1_b": nrm((L, 1, MLP)),
        "fc2_w": nrm((L, MLP, D)),                      # torch mlp.linear_2.weight.T
        "fc2_b": nrm((L, 1, D)),
        "lnf_g": jnp.ones((1, D), jnp.float32),         # encoder.ln
        "lnf_b": jnp.zeros((1, D), jnp.float32),
        "head_w": head_w_pad,                           # (D, CPAD)
        "head_b": head_b_pad,                           # (1, CPAD)
    }
    return params


# ---------------- forward (mirrors torchvision VisionTransformer, eval mode) -
def vit_forward(params, x):
    """x: (B, C, H, W) NCHW float32.  Returns (logits, emb)."""
    B, C, H, W = x.shape
    P = PATCH
    nH, nW = H // P, W // P
    N = nH * nW

    # patchify glue (NCHW -> (B*N, C*P*P)); ordering matches conv weight (D, C, P, P) flatten
    patches = (x.reshape(B, C, nH, P, nW, P)
                .transpose(0, 2, 4, 1, 3, 5)
                .reshape(B * N, C * P * P))

    emb_pad, logits_pad = pl.pallas_call(
        _vit_kernel,
        out_shape=(
            jax.ShapeDtypeStruct((B, EPAD), jnp.float32),
            jax.ShapeDtypeStruct((B, CPAD), jnp.float32),
        ),
    )(
        patches,
        params["conv_w"], params["conv_b"],
        params["class_token"], params["pos_emb"],
        params["ln1_g"], params["ln1_b"],
        params["qkv_w"], params["qkv_b"],
        params["out_w"], params["out_b"],
        params["ln2_g"], params["ln2_b"],
        params["fc1_w"], params["fc1_b"],
        params["fc2_w"], params["fc2_b"],
        params["lnf_g"], params["lnf_b"],
        params["head_w"], params["head_b"],
    )

    logits = logits_pad[:, :CLASSES]   # 'heads.head'
    emb = emb_pad[:, :HIDDEN]          # 'getitem_5' (CLS embedding after encoder.ln)
    return logits, emb


if __name__ == "__main__":
    key = jax.random.PRNGKey(0)
    pkey, xkey = jax.random.split(key)
    params = init_params(pkey)
    x = jax.random.normal(xkey, (BATCH, CIN, IMG, IMG), dtype=jnp.float32)

    logits, emb = jax.jit(vit_forward)(params, x)
    jax.block_until_ready((logits, emb))

    assert logits.shape == (BATCH, CLASSES), logits.shape
    assert emb.shape == (BATCH, HIDDEN), emb.shape
    assert bool(jnp.all(jnp.isfinite(logits))) and bool(jnp.all(jnp.isfinite(emb)))
    print("KERNEL_OK")
</pallas_src>

<mosaic_0001>
module attributes {stable_mosaic.version = 11 : i64} {
  func.func @_vit_kernel(%arg0: memref<8x768xf32, #tpu.memory_space<vmem>>, %arg1: memref<768x32xf32, #tpu.memory_space<vmem>>, %arg2: memref<1x32xf32, #tpu.memory_space<vmem>>, %arg3: memref<1x32xf32, #tpu.memory_space<vmem>>, %arg4: memref<5x32xf32, #tpu.memory_space<vmem>>, %arg5: memref<2x1x32xf32, #tpu.memory_space<vmem>>, %arg6: memref<2x1x32xf32, #tpu.memory_space<vmem>>, %arg7: memref<2x32x96xf32, #tpu.memory_space<vmem>>, %arg8: memref<2x1x96xf32, #tpu.memory_space<vmem>>, %arg9: memref<2x32x32xf32, #tpu.memory_space<vmem>>, %arg10: memref<2x1x32xf32, #tpu.memory_space<vmem>>, %arg11: memref<2x1x32xf32, #tpu.memory_space<vmem>>, %arg12: memref<2x1x32xf32, #tpu.memory_space<vmem>>, %arg13: memref<2x32x128xf32, #tpu.memory_space<vmem>>, %arg14: memref<2x1x128xf32, #tpu.memory_space<vmem>>, %arg15: memref<2x128x32xf32, #tpu.memory_space<vmem>>, %arg16: memref<2x1x32xf32, #tpu.memory_space<vmem>>, %arg17: memref<1x32xf32, #tpu.memory_space<vmem>>, %arg18: memref<1x32xf32, #tpu.memory_space<vmem>>, %arg19: memref<32x128xf32, #tpu.memory_space<vmem>>, %arg20: memref<1x128xf32, #tpu.memory_space<vmem>>, %arg21: memref<2x128xf32, #tpu.memory_space<vmem>>, %arg22: memref<2x128xf32, #tpu.memory_space<vmem>>) attributes {dimension_semantics = [], scalar_prefetch = 0 : i64, scratch_operands = 0 : i64, tpu.core_type = #tpu.core_type<tc>} {
    %c0 = arith.constant 0 : index
    %c0_0 = arith.constant 0 : index
    %0 = vector.load %arg0[%c0, %c0_0] : memref<8x768xf32, #tpu.memory_space<vmem>>, vector<8x768xf32>
    %c0_1 = arith.constant 0 : index
    %c0_2 = arith.constant 0 : index
    %1 = vector.load %arg1[%c0_1, %c0_2] : memref<768x32xf32, #tpu.memory_space<vmem>>, vector<768x32xf32>
    %cst = arith.constant dense<0.000000e+00> : vector<8x32xf32>
    %2 = tpu.matmul %0, %1, %cst {dimension_numbers = #tpu.dot_dimension_numbers<[1], [0], [0], [1], [0, 0, 1, 1], [], []>} : vector<8x768xf32>, vector<768x32xf32>, vector<8x32xf32> -> vector<8x32xf32>
    %c0_3 = arith.constant 0 : index
    %c0_4 = arith.constant 0 : index
    %3 = vector.load %arg2[%c0_3, %c0_4] : memref<1x32xf32, #tpu.memory_space<vmem>>, vector<1x32xf32>
    %4 = vector.broadcast %3 : vector<1x32xf32> to vector<8x32xf32>
    %5 = arith.addf %2, %4 : vector<8x32xf32>
    %c0_5 = arith.constant 0 : index
    %c0_6 = arith.constant 0 : index
    %6 = vector.load %arg3[%c0_5, %c0_6] : memref<1x32xf32, #tpu.memory_space<vmem>>, vector<1x32xf32>
    %c0_7 = arith.constant 0 : index
    %c0_8 = arith.constant 0 : index
    %7 = vector.load %arg4[%c0_7, %c0_8] : memref<5x32xf32, #tpu.memory_space<vmem>>, vector<5x32xf32>
    %8 = vector.extract_strided_slice %5 {offsets = [0, 0], sizes = [4, 32], strides = [1, 1]} : vector<8x32xf32> to vector<4x32xf32>
    %9 = vector.extract_strided_slice %5 {offsets = [4, 0], sizes = [4, 32], strides = [1, 1]} : vector<8x32xf32> to vector<4x32xf32>
    %10 = tpu.concatenate %6, %8, %6, %9 in 0 : vector<1x32xf32>, vector<4x32xf32>, vector<1x32xf32>, vector<4x32xf32> -> vector<10x32xf32>
    %11 = tpu.concatenate %7, %7 in 0 : vector<5x32xf32>, vector<5x32xf32> -> vector<10x32xf32>
    %12 = arith.addf %10, %11 : vector<10x32xf32>
    %c0_9 = arith.constant 0 : index
    %c0_10 = arith.constant 0 : index
    %c0_11 = arith.constant 0 : index
    %13 = vector.load %arg5[%c0_9, %c0_10, %c0_11] : memref<2x1x32xf32, #tpu.memory_space<vmem>>, vector<1x1x32xf32>
    %14 = vector.shape_cast %13 : vector<1x1x32xf32> to vector<1x32xf32>
    %c0_12 = arith.constant 0 : index
    %c0_13 = arith.constant 0 : index
    %c0_14 = arith.constant 0 : index
    %15 = vector.load %arg6[%c0_12, %c0_13, %c0_14] : memref<2x1x32xf32, #tpu.memory_space<vmem>>, vector<1x1x32xf32>
    %16 = vector.shape_cast %15 : vector<1x1x32xf32> to vector<1x32xf32>
    %cst_15 = arith.constant dense<0.000000e+00> : vector<10xf32>
    %17 = vector.multi_reduction <add>, %12, %cst_15 [1] : vector<10x32xf32> to vector<10xf32>
    %18 = vector.shape_cast %17 : vector<10xf32> to vector<10x1xf32>
    %cst_16 = arith.constant 3.200000e+01 : f32
    %19 = vector.broadcast %cst_16 : f32 to vector<10x1xf32>
    %20 = arith.divf %18, %19 : vector<10x1xf32>
    %21 = vector.broadcast %20 : vector<10x1xf32> to vector<10x32xf32>
    %22 = arith.subf %12, %21 : vector<10x32xf32>
    %23 = arith.mulf %22, %22 : vector<10x32xf32>
    %cst_17 = arith.constant dense<0.000000e+00> : vector<10xf32>
    %24 = vector.multi_reduction <add>, %23, %cst_17 [1] : vector<10x32xf32> to vector<10xf32>
    %25 = vector.shape_cast %24 : vector<10xf32> to vector<10x1xf32>
    %cst_18 = arith.constant 3.200000e+01 : f32
    %26 = vector.broadcast %cst_18 : f32 to vector<10x1xf32>
    %27 = arith.divf %25, %26 : vector<10x1xf32>
    %28 = vector.broadcast %20 : vector<10x1xf32> to vector<10x32xf32>
    %29 = arith.subf %12, %28 : vector<10x32xf32>
    %cst_19 = arith.constant 9.99999997E-7 : f32
    %30 = vector.broadcast %cst_19 : f32 to vector<10x1xf32>
    %31 = arith.addf %27, %30 : vector<10x1xf32>
    %32 = math.rsqrt %31 : vector<10x1xf32>
    %33 = vector.broadcast %32 : vector<10x1xf32> to vector<10x32xf32>
    %34 = arith.mulf %29, %33 : vector<10x32xf32>
    %35 = vector.broadcast %14 : vector<1x32xf32> to vector<10x32xf32>
    %36 = arith.mulf %34, %35 : vector<10x32xf32>
    %37 = vector.broadcast %16 : vector<1x32xf32> to vector<10x32xf32>
    %38 = arith.addf %36, %37 : vector<10x32xf32>
    %c0_20 = arith.constant 0 : index
    %c0_21 = arith.constant 0 : index
    %c0_22 = arith.constant 0 : index
    %39 = vector.load %arg7[%c0_20, %c0_21, %c0_22] : memref<2x32x96xf32, #tpu.memory_space<vmem>>, vector<1x32x96xf32>
    %40 = vector.shape_cast %39 : vector<1x32x96xf32> to vector<32x96xf32>
    %cst_23 = arith.constant dense<0.000000e+00> : vector<10x96xf32>
    %41 = tpu.matmul %38, %40, %cst_23 {dimension_numbers = #tpu.dot_dimension_numbers<[1], [0], [0], [1], [0, 0, 1, 1], [], []>} : vector<10x32xf32>, vector<32x96xf32>, vector<10x96xf32> -> vector<10x96xf32>
    %c0_24 = arith.constant 0 : index
    %c0_25 = arith.constant 0 : index
    %c0_26 = arith.constant 0 : index
    %42 = vector.load %arg8[%c0_24, %c0_25, %c0_26] : memref<2x1x96xf32, #tpu.memory_space<vmem>>, vector<1x1x96xf32>
    %43 = vector.shape_cast %42 : vector<1x1x96xf32> to vector<1x96xf32>
    %44 = vector.broadcast %43 : vector<1x96xf32> to vector<10x96xf32>
    %45 = arith.addf %41, %44 : vector<10x96xf32>
    %46 = vector.extract_strided_slice %45 {offsets = [0, 0], sizes = [10, 32], strides = [1, 1]} : vector<10x96xf32> to vector<10x32xf32>
    %cst_27 = arith.constant 0.353553385 : f32
    %47 = vector.broadcast %cst_27 : f32 to vector<10x32xf32>
    %48 = arith.mulf %46, %47 : vector<10x32xf32>
    %49 = vector.extract_strided_slice %45 {offsets = [0, 32], sizes = [10, 32], strides = [1, 1]} : vector<10x96xf32> to vector<10x32xf32>
    %50 = vector.extract_strided_slice %45 {offsets = [0, 64], sizes = [10, 32], strides = [1, 1]} : vector<10x96xf32> to vector<10x32xf32>
    %51 = vector.extract_strided_slice %48 {offsets = [0, 0], sizes = [5, 8], strides = [1, 1]} : vector<10x32xf32> to vector<5x8xf32>
    %52 = vector.extract_strided_slice %49 {offsets = [0, 0], sizes = [5, 8], strides = [1, 1]} : vector<10x32xf32> to vector<5x8xf32>
    %53 = vector.extract_strided_slice %50 {offsets = [0, 0], sizes = [5, 8], strides = [1, 1]} : vector<10x32xf32> to vector<5x8xf32>
    %cst_28 = arith.constant dense<0.000000e+00> : vector<5x5xf32>
    %54 = tpu.matmul %51, %52, %cst_28 {dimension_numbers = #tpu.dot_dimension_numbers<[1], [1], [0], [0], [0, 0, 1, 0], [], []>} : vector<5x8xf32>, vector<5x8xf32>, vector<5x5xf32> -> vector<5x5xf32>
    %cst_29 = arith.constant dense<0xFF800000> : vector<5xf32>
    %55 = vector.multi_reduction <maximumf>, %54, %cst_29 [1] : vector<5x5xf32> to vector<5xf32>
    %56 = vector.shape_cast %55 : vector<5xf32> to vector<5x1xf32>
    %57 = vector.broadcast %56 : vector<5x1xf32> to vector<5x5xf32>
    %58 = arith.subf %54, %57 : vector<5x5xf32>
    %59 = math.exp %58 : vector<5x5xf32>
    %cst_30 = arith.constant dense<0.000000e+00> : vector<5xf32>
    %60 = vector.multi_reduction <add>, %59, %cst_30 [1] : vector<5x5xf32> to vector<5xf32>
    %61 = vector.shape_cast %60 : vector<5xf32> to vector<5x1xf32>
    %62 = tpu.reciprocal %61 {approx = true} : vector<5x1xf32> -> vector<5x1xf32>
    %63 = vector.broadcast %62 : vector<5x1xf32> to vector<5x5xf32>
    %64 = arith.mulf %59, %63 : vector<5x5xf32>
    %cst_31 = arith.constant dense<0.000000e+00> : vector<5x8xf32>
    %65 = tpu.matmul %64, %53, %cst_31 {dimension_numbers = #tpu.dot_dimension_numbers<[1], [0], [0], [1], [0, 0, 1, 1], [], []>} : vector<5x5xf32>, vector<5x8xf32>, vector<5x8xf32> -> vector<5x8xf32>
    %66 = vector.extract_strided_slice %48 {offsets = [0, 8], sizes = [5, 8], strides = [1, 1]} : vector<10x32xf32> to vector<5x8xf32>
    %67 = vector.extract_strided_slice %49 {offsets = [0, 8], sizes = [5, 8], strides = [1, 1]} : vector<10x32xf32> to vector<5x8xf32>
    %68 = vector.extract_strided_slice %50 {offsets = [0, 8], sizes = [5, 8], strides = [1, 1]} : vector<10x32xf32> to vector<5x8xf32>
    %cst_32 = arith.constant dense<0.000000e+00> : vector<5x5xf32>
    %69 = tpu.matmul %66, %67, %cst_32 {dimension_numbers = #tpu.dot_dimension_numbers<[1], [1], [0], [0], [0, 0, 1, 0], [], []>} : vector<5x8xf32>, vector<5x8xf32>, vector<5x5xf32> -> vector<5x5xf32>
    %cst_33 = arith.constant dense<0xFF800000> : vector<5xf32>
    %70 = vector.multi_reduction <maximumf>, %69, %cst_33 [1] : vector<5x5xf32> to vector<5xf32>
    %71 = vector.shape_cast %70 : vector<5xf32> to vector<5x1xf32>
    %72 = vector.broadcast %71 : vector<5x1xf32> to vector<5x5xf32>
    %73 = arith.subf %69, %72 : vector<5x5xf32>
    %74 = math.exp %73 : vector<5x5xf32>
    %cst_34 = arith.constant dense<0.000000e+00> : vector<5xf32>
    %75 = vector.multi_reduction <add>, %74, %cst_34 [1] : vector<5x5xf32> to vector<5xf32>
    %76 = vector.shape_cast %75 : vector<5xf32> to vector<5x1xf32>
    %77 = tpu.reciprocal %76 {approx = true} : vector<5x1xf32> -> vector<5x1xf32>
    %78 = vector.broadcast %77 : vector<5x1xf32> to vector<5x5xf32>
    %79 = arith.mulf %74, %78 : vector<5x5xf32>
    %cst_35 = arith.constant dense<0.000000e+00> : vector<5x8xf32>
    %80 = tpu.matmul %79, %68, %cst_35 {dimension_numbers = #tpu.dot_dimension_numbers<[1], [0], [0], [1], [0, 0, 1, 1], [], []>} : vector<5x5xf32>, vector<5x8xf32>, vector<5x8xf32> -> vector<5x8xf32>
    %81 = vector.extract_strided_slice %48 {offsets = [0, 16], sizes = [5, 8], strides = [1, 1]} : vector<10x32xf32> to vector<5x8xf32>
    %82 = vector.extract_strided_slice %49 {offsets = [0, 16], sizes = [5, 8], strides = [1, 1]} : vector<10x32xf32> to vector<5x8xf32>
    %83 = vector.extract_strided_slice %50 {offsets = [0, 16], sizes = [5, 8], strides = [1, 1]} : vector<10x32xf32> to vector<5x8xf32>
    %cst_36 = arith.constant dense<0.000000e+00> : vector<5x5xf32>
    %84 = tpu.matmul %81, %82, %cst_36 {dimension_numbers = #tpu.dot_dimension_numbers<[1], [1], [0], [0], [0, 0, 1, 0], [], []>} : vector<5x8xf32>, vector<5x8xf32>, vector<5x5xf32> -> vector<5x5xf32>
    %cst_37 = arith.constant dense<0xFF800000> : vector<5xf32>
    %85 = vector.multi_reduction <maximumf>, %84, %cst_37 [1] : vector<5x5xf32> to vector<5xf32>
    %86 = vector.shape_cast %85 : vector<5xf32> to vector<5x1xf32>
    %87 = vector.broadcast %86 : vector<5x1xf32> to vector<5x5xf32>
    %88 = arith.subf %84, %87 : vector<5x5xf32>
    %89 = math.exp %88 : vector<5x5xf32>
    %cst_38 = arith.constant dense<0.000000e+00> : vector<5xf32>
    %90 = vector.multi_reduction <add>, %89, %cst_38 [1] : vector<5x5xf32> to vector<5xf32>
    %91 = vector.shape_cast %90 : vector<5xf32> to vector<5x1xf32>
    %92 = tpu.reciprocal %91 {approx = true} : vector<5x1xf32> -> vector<5x1xf32>
    %93 = vector.broadcast %92 : vector<5x1xf32> to vector<5x5xf32>
    %94 = arith.mulf %89, %93 : vector<5x5xf32>
    %cst_39 = arith.constant dense<0.000000e+00> : vector<5x8xf32>
    %95 = tpu.matmul %94, %83, %cst_39 {dimension_numbers = #tpu.dot_dimension_numbers<[1], [0], [0], [1], [0, 0, 1, 1], [], []>} : vector<5x5xf32>, vector<5x8xf32>, vector<5x8xf32> -> vector<5x8xf32>
    %96 = vector.extract_strided_slice %48 {offsets = [0, 24], sizes = [5, 8], strides = [1, 1]} : vector<10x32xf32> to vector<5x8xf32>
    %97 = vector.extract_strided_slice %49 {offsets = [0, 24], sizes = [5, 8], strides = [1, 1]} : vector<10x32xf32> to vector<5x8xf32>
    %98 = vector.extract_strided_slice %50 {offsets = [0, 24], sizes = [5, 8], strides = [1, 1]} : vector<10x32xf32> to vector<5x8xf32>
    %cst_40 = arith.constant dense<0.000000e+00> : vector<5x5xf32>
    %99 = tpu.matmul %96, %97, %cst_40 {dimension_numbers = #tpu.dot_dimension_numbers<[1], [1], [0], [0], [0, 0, 1, 0], [], []>} : vector<5x8xf32>, vector<5x8xf32>, vector<5x5xf32> -> vector<5x5xf32>
    %cst_41 = arith.constant dense<0xFF800000> : vector<5xf32>
    %100 = vector.multi_reduction <maximumf>, %99, %cst_41 [1] : vector<5x5xf32> to vector<5xf32>
    %101 = vector.shape_cast %100 : vector<5xf32> to vector<5x1xf32>
    %102 = vector.broadcast %101 : vector<5x1xf32> to vector<5x5xf32>
    %103 = arith.subf %99, %102 : vector<5x5xf32>
    %104 = math.exp %103 : vector<5x5xf32>
    %cst_42 = arith.constant dense<0.000000e+00> : vector<5xf32>
    %105 = vector.multi_reduction <add>, %104, %cst_42 [1] : vector<5x5xf32> to vector<5xf32>
    %106 = vector.shape_cast %105 : vector<5xf32> to vector<5x1xf32>
    %107 = tpu.reciprocal %106 {approx = true} : vector<5x1xf32> -> vector<5x1xf32>
    %108 = vector.broadcast %107 : vector<5x1xf32> to vector<5x5xf32>
    %109 = arith.mulf %104, %108 : vector<5x5xf32>
    %cst_43 = arith.constant dense<0.000000e+00> : vector<5x8xf32>
    %110 = tpu.matmul %109, %98, %cst_43 {dimension_numbers = #tpu.dot_dimension_numbers<[1], [0], [0], [1], [0, 0, 1, 1], [], []>} : vector<5x5xf32>, vector<5x8xf32>, vector<5x8xf32> -> vector<5x8xf32>
    %111 = tpu.concatenate %65, %80, %95, %110 in 1 : vector<5x8xf32>, vector<5x8xf32>, vector<5x8xf32>, vector<5x8xf32> -> vector<5x32xf32>
    %112 = vector.extract_strided_slice %48 {offsets = [5, 0], sizes = [5, 8], strides = [1, 1]} : vector<10x32xf32> to vector<5x8xf32>
    %113 = vector.extract_strided_slice %49 {offsets = [5, 0], sizes = [5, 8], strides = [1, 1]} : vector<10x32xf32> to vector<5x8xf32>
    %114 = vector.extract_strided_slice %50 {offsets = [5, 0], sizes = [5, 8], strides = [1, 1]} : vector<10x32xf32> to vector<5x8xf32>
    %cst_44 = arith.constant dense<0.000000e+00> : vector<5x5xf32>
    %115 = tpu.matmul %112, %113, %cst_44 {dimension_numbers = #tpu.dot_dimension_numbers<[1], [1], [0], [0], [0, 0, 1, 0], [], []>} : vector<5x8xf32>, vector<5x8xf32>, vector<5x5xf32> -> vector<5x5xf32>
    %cst_45 = arith.constant dense<0xFF800000> : vector<5xf32>
    %116 = vector.multi_reduction <maximumf>, %115, %cst_45 [1] : vector<5x5xf32> to vector<5xf32>
    %117 = vector.shape_cast %116 : vector<5xf32> to vector<5x1xf32>
    %118 = vector.broadcast %117 : vector<5x1xf32> to vector<5x5xf32>
    %119 = arith.subf %115, %118 : vector<5x5xf32>
    %120 = math.exp %119 : vector<5x5xf32>
    %cst_46 = arith.constant dense<0.000000e+00> : vector<5xf32>
    %121 = vector.multi_reduction <add>, %120, %cst_46 [1] : vector<5x5xf32> to vector<5xf32>
    %122 = vector.shape_cast %121 : vector<5xf32> to vector<5x1xf32>
    %123 = tpu.reciprocal %122 {approx = true} : vector<5x1xf32> -> vector<5x1xf32>
    %124 = vector.broadcast %123 : vector<5x1xf32> to vector<5x5xf32>
    %125 = arith.mulf %120, %124 : vector<5x5xf32>
    %cst_47 = arith.constant dense<0.000000e+00> : vector<5x8xf32>
    %126 = tpu.matmul %125, %114, %cst_47 {dimension_numbers = #tpu.dot_dimension_numbers<[1], [0], [0], [1], [0, 0, 1, 1], [], []>} : vector<5x5xf32>, vector<5x8xf32>, vector<5x8xf32> -> vector<5x8xf32>
    %127 = vector.extract_strided_slice %48 {offsets = [5, 8], sizes = [5, 8], strides = [1, 1]} : vector<10x32xf32> to vector<5x8xf32>
    %128 = vector.extract_strided_slice %49 {offsets = [5, 8], sizes = [5, 8], strides = [1, 1]} : vector<10x32xf32> to vector<5x8xf32>
    %129 = vector.extract_strided_slice %50 {offsets = [5, 8], sizes = [5, 8], strides = [1, 1]} : vector<10x32xf32> to vector<5x8xf32>
    %cst_48 = arith.constant dense<0.000000e+00> : vector<5x5xf32>
    %130 = tpu.matmul %127, %128, %cst_48 {dimension_numbers = #tpu.dot_dimension_numbers<[1], [1], [0], [0], [0, 0, 1, 0], [], []>} : vector<5x8xf32>, vector<5x8xf32>, vector<5x5xf32> -> vector<5x5xf32>
    %cst_49 = arith.constant dense<0xFF800000> : vector<5xf32>
    %131 = vector.multi_reduction <maximumf>, %130, %cst_49 [1] : vector<5x5xf32> to vector<5xf32>
    %132 = vector.shape_cast %131 : vector<5xf32> to vector<5x1xf32>
    %133 = vector.broadcast %132 : vector<5x1xf32> to vector<5x5xf32>
    %134 = arith.subf %130, %133 : vector<5x5xf32>
    %135 = math.exp %134 : vector<5x5xf32>
    %cst_50 = arith.constant dense<0.000000e+00> : vector<5xf32>
    %136 = vector.multi_reduction <add>, %135, %cst_50 [1] : vector<5x5xf32> to vector<5xf32>
    %137 = vector.shape_cast %136 : vector<5xf32> to vector<5x1xf32>
    %138 = tpu.reciprocal %137 {approx = true} : vector<5x1xf32> -> vector<5x1xf32>
    %139 = vector.broadcast %138 : vector<5x1xf32> to vector<5x5xf32>
    %140 = arith.mulf %135, %139 : vector<5x5xf32>
    %cst_51 = arith.constant dense<0.000000e+00> : vector<5x8xf32>
    %141 = tpu.matmul %140, %129, %cst_51 {dimension_numbers = #tpu.dot_dimension_numbers<[1], [0], [0], [1], [0, 0, 1, 1], [], []>} : vector<5x5xf32>, vector<5x8xf32>, vector<5x8xf32> -> vector<5x8xf32>
    %142 = vector.extract_strided_slice %48 {offsets = [5, 16], sizes = [5, 8], strides = [1, 1]} : vector<10x32xf32> to vector<5x8xf32>
    %143 = vector.extract_strided_slice %49 {offsets = [5, 16], sizes = [5, 8], strides = [1, 1]} : vector<10x32xf32> to vector<5x8xf32>
    %144 = vector.extract_strided_slice %50 {offsets = [5, 16], sizes = [5, 8], strides = [1, 1]} : vector<10x32xf32> to vector<5x8xf32>
    %cst_52 = arith.constant dense<0.000000e+00> : vector<5x5xf32>
    %145 = tpu.matmul %142, %143, %cst_52 {dimension_numbers = #tpu.dot_dimension_numbers<[1], [1], [0], [0], [0, 0, 1, 0], [], []>} : vector<5x8xf32>, vector<5x8xf32>, vector<5x5xf32> -> vector<5x5xf32>
    %cst_53 = arith.constant dense<0xFF800000> : vector<5xf32>
    %146 = vector.multi_reduction <maximumf>, %145, %cst_53 [1] : vector<5x5xf32> to vector<5xf32>
    %147 = vector.shape_cast %146 : vector<5xf32> to vector<5x1xf32>
    %148 = vector.broadcast %147 : vector<5x1xf32> to vector<5x5xf32>
    %149 = arith.subf %145, %148 : vector<5x5xf32>
    %150 = math.exp %149 : vector<5x5xf32>
    %cst_54 = arith.constant dense<0.000000e+00> : vector<5xf32>
    %151 = vector.multi_reduction <add>, %150, %cst_54 [1] : vector<5x5xf32> to vector<5xf32>
    %152 = vector.shape_cast %151 : vector<5xf32> to vector<5x1xf32>
    %153 = tpu.reciprocal %152 {approx = true} : vector<5x1xf32> -> vector<5x1xf32>
    %154 = vector.broadcast %153 : vector<5x1xf32> to vector<5x5xf32>
    %155 = arith.mulf %150, %154 : vector<5x5xf32>
    %cst_55 = arith.constant dense<0.000000e+00> : vector<5x8xf32>
    %156 = tpu.matmul %155, %144, %cst_55 {dimension_numbers = #tpu.dot_dimension_numbers<[1], [0], [0], [1], [0, 0, 1, 1], [], []>} : vector<5x5xf32>, vector<5x8xf32>, vector<5x8xf32> -> vector<5x8xf32>
    %157 = vector.extract_strided_slice %48 {offsets = [5, 24], sizes = [5, 8], strides = [1, 1]} : vector<10x32xf32> to vector<5x8xf32>
    %158 = vector.extract_strided_slice %49 {offsets = [5, 24], sizes = [5, 8], strides = [1, 1]} : vector<10x32xf32> to vector<5x8xf32>
    %159 = vector.extract_strided_slice %50 {offsets = [5, 24], sizes = [5, 8], strides = [1, 1]} : vector<10x32xf32> to vector<5x8xf32>
    %cst_56 = arith.constant dense<0.000000e+00> : vector<5x5xf32>
    %160 = tpu.matmul %157, %158, %cst_56 {dimension_numbers = #tpu.dot_dimension_numbers<[1], [1], [0], [0], [0, 0, 1, 0], [], []>} : vector<5x8xf32>, vector<5x8xf32>, vector<5x5xf32> -> vector<5x5xf32>
    %cst_57 = arith.constant dense<0xFF800000> : vector<5xf32>
    %161 = vector.multi_reduction <maximumf>, %160, %cst_57 [1] : vector<5x5xf32> to vector<5xf32>
    %162 = vector.shape_cast %161 : vector<5xf32> to vector<5x1xf32>
    %163 = vector.broadcast %162 : vector<5x1xf32> to vector<5x5xf32>
    %164 = arith.subf %160, %163 : vector<5x5xf32>
    %165 = math.exp %164 : vector<5x5xf32>
    %cst_58 = arith.constant dense<0.000000e+00> : vector<5xf32>
    %166 = vector.multi_reduction <add>, %165, %cst_58 [1] : vector<5x5xf32> to vector<5xf32>
    %167 = vector.shape_cast %166 : vector<5xf32> to vector<5x1xf32>
    %168 = tpu.reciprocal %167 {approx = true} : vector<5x1xf32> -> vector<5x1xf32>
    %169 = vector.broadcast %168 : vector<5x1xf32> to vector<5x5xf32>
    %170 = arith.mulf %165, %169 : vector<5x5xf32>
    %cst_59 = arith.constant dense<0.000000e+00> : vector<5x8xf32>
    %171 = tpu.matmul %170, %159, %cst_59 {dimension_numbers = #tpu.dot_dimension_numbers<[1], [0], [0], [1], [0, 0, 1, 1], [], []>} : vector<5x5xf32>, vector<5x8xf32>, vector<5x8xf32> -> vector<5x8xf32>
    %172 = tpu.concatenate %126, %141, %156, %171 in 1 : vector<5x8xf32>, vector<5x8xf32>, vector<5x8xf32>, vector<5x8xf32> -> vector<5x32xf32>
    %173 = tpu.concatenate %111, %172 in 0 : vector<5x32xf32>, vector<5x32xf32> -> vector<10x32xf32>
    %c0_60 = arith.constant 0 : index
    %c0_61 = arith.constant 0 : index
    %c0_62 = arith.constant 0 : index
    %174 = vector.load %arg9[%c0_60, %c0_61, %c0_62] : memref<2x32x32xf32, #tpu.memory_space<vmem>>, vector<1x32x32xf32>
    %175 = vector.shape_cast %174 : vector<1x32x32xf32> to vector<32x32xf32>
    %cst_63 = arith.constant dense<0.000000e+00> : vector<10x32xf32>
    %176 = tpu.matmul %173, %175, %cst_63 {dimension_numbers = #tpu.dot_dimension_numbers<[1], [0], [0], [1], [0, 0, 1, 1], [], []>} : vector<10x32xf32>, vector<32x32xf32>, vector<10x32xf32> -> vector<10x32xf32>
    %c0_64 = arith.constant 0 : index
    %c0_65 = arith.constant 0 : index
    %c0_66 = arith.constant 0 : index
    %177 = vector.load %arg10[%c0_64, %c0_65, %c0_66] : memref<2x1x32xf32, #tpu.memory_space<vmem>>, vector<1x1x32xf32>
    %178 = vector.shape_cast %177 : vector<1x1x32xf32> to vector<1x32xf32>
    %179 = vector.broadcast %178 : vector<1x32xf32> to vector<10x32xf32>
    %180 = arith.addf %176, %179 : vector<10x32xf32>
    %181 = arith.addf %12, %180 : vector<10x32xf32>
    %c0_67 = arith.constant 0 : index
    %c0_68 = arith.constant 0 : index
    %c0_69 = arith.constant 0 : index
    %182 = vector.load %arg11[%c0_67, %c0_68, %c0_69] : memref<2x1x32xf32, #tpu.memory_space<vmem>>, vector<1x1x32xf32>
    %183 = vector.shape_cast %182 : vector<1x1x32xf32> to vector<1x32xf32>
    %c0_70 = arith.constant 0 : index
    %c0_71 = arith.constant 0 : index
    %c0_72 = arith.constant 0 : index
    %184 = vector.load %arg12[%c0_70, %c0_71, %c0_72] : memref<2x1x32xf32, #tpu.memory_space<vmem>>, vector<1x1x32xf32>
    %185 = vector.shape_cast %184 : vector<1x1x32xf32> to vector<1x32xf32>
    %cst_73 = arith.constant dense<0.000000e+00> : vector<10xf32>
    %186 = vector.multi_reduction <add>, %181, %cst_73 [1] : vector<10x32xf32> to vector<10xf32>
    %187 = vector.shape_cast %186 : vector<10xf32> to vector<10x1xf32>
    %cst_74 = arith.constant 3.200000e+01 : f32
    %188 = vector.broadcast %cst_74 : f32 to vector<10x1xf32>
    %189 = arith.divf %187, %188 : vector<10x1xf32>
    %190 = vector.broadcast %189 : vector<10x1xf32> to vector<10x32xf32>
    %191 = arith.subf %181, %190 : vector<10x32xf32>
    %192 = arith.mulf %191, %191 : vector<10x32xf32>
    %cst_75 = arith.constant dense<0.000000e+00> : vector<10xf32>
    %193 = vector.multi_reduction <add>, %192, %cst_75 [1] : vector<10x32xf32> to vector<10xf32>
    %194 = vector.shape_cast %193 : vector<10xf32> to vector<10x1xf32>
    %cst_76 = arith.constant 3.200000e+01 : f32
    %195 = vector.broadcast %cst_76 : f32 to vector<10x1xf32>
    %196 = arith.divf %194, %195 : vector<10x1xf32>
    %197 = vector.broadcast %189 : vector<10x1xf32> to vector<10x32xf32>
    %198 = arith.subf %181, %197 : vector<10x32xf32>
    %cst_77 = arith.constant 9.99999997E-7 : f32
    %199 = vector.broadcast %cst_77 : f32 to vector<10x1xf32>
    %200 = arith.addf %196, %199 : vector<10x1xf32>
    %201 = math.rsqrt %200 : vector<10x1xf32>
    %202 = vector.broadcast %201 : vector<10x1xf32> to vector<10x32xf32>
    %203 = arith.mulf %198, %202 : vector<10x32xf32>
    %204 = vector.broadcast %183 : vector<1x32xf32> to vector<10x32xf32>
    %205 = arith.mulf %203, %204 : vector<10x32xf32>
    %206 = vector.broadcast %185 : vector<1x32xf32> to vector<10x32xf32>
    %207 = arith.addf %205, %206 : vector<10x32xf32>
    %c0_78 = arith.constant 0 : index
    %c0_79 = arith.constant 0 : index
    %c0_80 = arith.constant 0 : index
    %208 = vector.load %arg13[%c0_78, %c0_79, %c0_80] : memref<2x32x128xf32, #tpu.memory_space<vmem>>, vector<1x32x128xf32>
    %209 = vector.shape_cast %208 : vector<1x32x128xf32> to vector<32x128xf32>
    %cst_81 = arith.constant dense<0.000000e+00> : vector<10x128xf32>
    %210 = tpu.matmul %207, %209, %cst_81 {dimension_numbers = #tpu.dot_dimension_numbers<[1], [0], [0], [1], [0, 0, 1, 1], [], []>} : vector<10x32xf32>, vector<32x128xf32>, vector<10x128xf32> -> vector<10x128xf32>
    %c0_82 = arith.constant 0 : index
    %c0_83 = arith.constant 0 : index
    %c0_84 = arith.constant 0 : index
    %211 = vector.load %arg14[%c0_82, %c0_83, %c0_84] : memref<2x1x128xf32, #tpu.memory_space<vmem>>, vector<1x1x128xf32>
    %212 = vector.shape_cast %211 : vector<1x1x128xf32> to vector<1x128xf32>
    %213 = vector.broadcast %212 : vector<1x128xf32> to vector<10x128xf32>
    %214 = arith.addf %210, %213 : vector<10x128xf32>
    %cst_85 = arith.constant 5.000000e-01 : f32
    %215 = vector.broadcast %cst_85 : f32 to vector<10x128xf32>
    %216 = arith.mulf %215, %214 : vector<10x128xf32>
    %cst_86 = arith.constant 0.707106769 : f32
    %217 = vector.broadcast %cst_86 : f32 to vector<10x128xf32>
    %218 = arith.mulf %214, %217 : vector<10x128xf32>
    %cst_87 = arith.constant 0.000000e+00 : f32
    %219 = vector.broadcast %cst_87 : f32 to vector<10x128xf32>
    %220 = arith.cmpf oge, %218, %219 : vector<10x128xf32>
    %cst_88 = arith.constant 1.000000e+00 : f32
    %cst_89 = arith.constant -1.000000e+00 : f32
    %221 = vector.broadcast %cst_88 : f32 to vector<10x128xf32>
    %222 = vector.broadcast %cst_89 : f32 to vector<10x128xf32>
    %223 = arith.select %220, %221, %222 : vector<10x128xi1>, vector<10x128xf32>
    %224 = math.absf %218 : vector<10x128xf32>
    %cst_90 = arith.constant 0.327591091 : f32
    %225 = vector.broadcast %cst_90 : f32 to vector<10x128xf32>
    %226 = arith.mulf %225, %224 : vector<10x128xf32>
    %cst_91 = arith.constant 1.000000e+00 : f32
    %227 = vector.broadcast %cst_91 : f32 to vector<10x128xf32>
    %228 = arith.addf %227, %226 : vector<10x128xf32>
    %cst_92 = arith.constant 1.000000e+00 : f32
    %229 = vector.broadcast %cst_92 : f32 to vector<10x128xf32>
    %230 = arith.divf %229, %228 : vector<10x128xf32>
    %cst_93 = arith.constant 1.06140542 : f32
    %231 = vector.broadcast %cst_93 : f32 to vector<10x128xf32>
    %232 = arith.mulf %231, %230 : vector<10x128xf32>
    %cst_94 = arith.constant -1.45315206 : f32
    %233 = vector.broadcast %cst_94 : f32 to vector<10x128xf32>
    %234 = arith.addf %232, %233 : vector<10x128xf32>
    %235 = arith.mulf %234, %230 : vector<10x128xf32>
    %cst_95 = arith.constant 1.42141378 : f32
    %236 = vector.broadcast %cst_95 : f32 to vector<10x128xf32>
    %237 = arith.addf %235, %236 : vector<10x128xf32>
    %238 = arith.mulf %237, %230 : vector<10x128xf32>
    %cst_96 = arith.constant -0.284496725 : f32
    %239 = vector.broadcast %cst_96 : f32 to vector<10x128xf32>
    %240 = arith.addf %238, %239 : vector<10x128xf32>
    %241 = arith.mulf %240, %230 : vector<10x128xf32>
    %cst_97 = arith.constant 0.254829586 : f32
    %242 = vector.broadcast %cst_97 : f32 to vector<10x128xf32>
    %243 = arith.addf %241, %242 : vector<10x128xf32>
    %244 = arith.mulf %243, %230 : vector<10x128xf32>
    %cst_98 = arith.constant 0.000000e+00 : f32
    %245 = vector.broadcast %cst_98 : f32 to vector<10x128xf32>
    %246 = arith.subf %245, %224 : vector<10x128xf32>
    %247 = arith.mulf %246, %224 : vector<10x128xf32>
    %248 = math.exp %247 : vector<10x128xf32>
    %249 = arith.mulf %244, %248 : vector<10x128xf32>
    %cst_99 = arith.constant 1.000000e+00 : f32
    %250 = vector.broadcast %cst_99 : f32 to vector<10x128xf32>
    %251 = arith.subf %250, %249 : vector<10x128xf32>
    %252 = arith.mulf %223, %251 : vector<10x128xf32>
    %cst_100 = arith.constant 1.000000e+00 : f32
    %253 = vector.broadcast %cst_100 : f32 to vector<10x128xf32>
    %254 = arith.addf %253, %252 : vector<10x128xf32>
    %255 = arith.mulf %216, %254 : vector<10x128xf32>
    %c0_101 = arith.constant 0 : index
    %c0_102 = arith.constant 0 : index
    %c0_103 = arith.constant 0 : index
    %256 = vector.load %arg15[%c0_101, %c0_102, %c0_103] : memref<2x128x32xf32, #tpu.memory_space<vmem>>, vector<1x128x32xf32>
    %257 = vector.shape_cast %256 : vector<1x128x32xf32> to vector<128x32xf32>
    %cst_104 = arith.constant dense<0.000000e+00> : vector<10x32xf32>
    %258 = tpu.matmul %255, %257, %cst_104 {dimension_numbers = #tpu.dot_dimension_numbers<[1], [0], [0], [1], [0, 0, 1, 1], [], []>} : vector<10x128xf32>, vector<128x32xf32>, vector<10x32xf32> -> vector<10x32xf32>
    %259 = arith.addf %181, %258 : vector<10x32xf32>
    %c0_105 = arith.constant 0 : index
    %c0_106 = arith.constant 0 : index
    %c0_107 = arith.constant 0 : index
    %260 = vector.load %arg16[%c0_105, %c0_106, %c0_107] : memref<2x1x32xf32, #tpu.memory_space<vmem>>, vector<1x1x32xf32>
    %261 = vector.shape_cast %260 : vector<1x1x32xf32> to vector<1x32xf32>
    %262 = vector.broadcast %261 : vector<1x32xf32> to vector<10x32xf32>
    %263 = arith.addf %259, %262 : vector<10x32xf32>
    %c1 = arith.constant 1 : index
    %c0_108 = arith.constant 0 : index
    %c0_109 = arith.constant 0 : index
    %264 = vector.load %arg5[%c1, %c0_108, %c0_109] : memref<2x1x32xf32, #tpu.memory_space<vmem>>, vector<1x1x32xf32>
    %265 = vector.shape_cast %264 : vector<1x1x32xf32> to vector<1x32xf32>
    %c1_110 = arith.constant 1 : index
    %c0_111 = arith.constant 0 : index
    %c0_112 = arith.constant 0 : index
    %266 = vector.load %arg6[%c1_110, %c0_111, %c0_112] : memref<2x1x32xf32, #tpu.memory_space<vmem>>, vector<1x1x32xf32>
    %267 = vector.shape_cast %266 : vector<1x1x32xf32> to vector<1x32xf32>
    %cst_113 = arith.constant dense<0.000000e+00> : vector<10xf32>
    %268 = vector.multi_reduction <add>, %263, %cst_113 [1] : vector<10x32xf32> to vector<10xf32>
    %269 = vector.shape_cast %268 : vector<10xf32> to vector<10x1xf32>
    %cst_114 = arith.constant 3.200000e+01 : f32
    %270 = vector.broadcast %cst_114 : f32 to vector<10x1xf32>
    %271 = arith.divf %269, %270 : vector<10x1xf32>
    %272 = vector.broadcast %271 : vector<10x1xf32> to vector<10x32xf32>
    %273 = arith.subf %263, %272 : vector<10x32xf32>
    %274 = arith.mulf %273, %273 : vector<10x32xf32>
    %cst_115 = arith.constant dense<0.000000e+00> : vector<10xf32>
    %275 = vector.multi_reduction <add>, %274, %cst_115 [1] : vector<10x32xf32> to vector<10xf32>
    %276 = vector.shape_cast %275 : vector<10xf32> to vector<10x1xf32>
    %cst_116 = arith.constant 3.200000e+01 : f32
    %277 = vector.broadcast %cst_116 : f32 to vector<10x1xf32>
    %278 = arith.divf %276, %277 : vector<10x1xf32>
    %279 = vector.broadcast %271 : vector<10x1xf32> to vector<10x32xf32>
    %280 = arith.subf %263, %279 : vector<10x32xf32>
    %cst_117 = arith.constant 9.99999997E-7 : f32
    %281 = vector.broadcast %cst_117 : f32 to vector<10x1xf32>
    %282 = arith.addf %278, %281 : vector<10x1xf32>
    %283 = math.rsqrt %282 : vector<10x1xf32>
    %284 = vector.broadcast %283 : vector<10x1xf32> to vector<10x32xf32>
    %285 = arith.mulf %280, %284 : vector<10x32xf32>
    %286 = vector.broadcast %265 : vector<1x32xf32> to vector<10x32xf32>
    %287 = arith.mulf %285, %286 : vector<10x32xf32>
    %288 = vector.broadcast %267 : vector<1x32xf32> to vector<10x32xf32>
    %289 = arith.addf %287, %288 : vector<10x32xf32>
    %c1_118 = arith.constant 1 : index
    %c0_119 = arith.constant 0 : index
    %c0_120 = arith.constant 0 : index
    %290 = vector.load %arg7[%c1_118, %c0_119, %c0_120] : memref<2x32x96xf32, #tpu.memory_space<vmem>>, vector<1x32x96xf32>
    %291 = vector.shape_cast %290 : vector<1x32x96xf32> to vector<32x96xf32>
    %cst_121 = arith.constant dense<0.000000e+00> : vector<10x96xf32>
    %292 = tpu.matmul %289, %291, %cst_121 {dimension_numbers = #tpu.dot_dimension_numbers<[1], [0], [0], [1], [0, 0, 1, 1], [], []>} : vector<10x32xf32>, vector<32x96xf32>, vector<10x96xf32> -> vector<10x96xf32>
    %c1_122 = arith.constant 1 : index
    %c0_123 = arith.constant 0 : index
    %c0_124 = arith.constant 0 : index
    %293 = vector.load %arg8[%c1_122, %c0_123, %c0_124] : memref<2x1x96xf32, #tpu.memory_space<vmem>>, vector<1x1x96xf32>
    %294 = vector.shape_cast %293 : vector<1x1x96xf32> to vector<1x96xf32>
    %295 = vector.broadcast %294 : vector<1x96xf32> to vector<10x96xf32>
    %296 = arith.addf %292, %295 : vector<10x96xf32>
    %297 = vector.extract_strided_slice %296 {offsets = [0, 0], sizes = [10, 32], strides = [1, 1]} : vector<10x96xf32> to vector<10x32xf32>
    %cst_125 = arith.constant 0.353553385 : f32
    %298 = vector.broadcast %cst_125 : f32 to vector<10x32xf32>
    %299 = arith.mulf %297, %298 : vector<10x32xf32>
    %300 = vector.extract_strided_slice %296 {offsets = [0, 32], sizes = [10, 32], strides = [1, 1]} : vector<10x96xf32> to vector<10x32xf32>
    %301 = vector.extract_strided_slice %296 {offsets = [0, 64], sizes = [10, 32], strides = [1, 1]} : vector<10x96xf32> to vector<10x32xf32>
    %302 = vector.extract_strided_slice %299 {offsets = [0, 0], sizes = [5, 8], strides = [1, 1]} : vector<10x32xf32> to vector<5x8xf32>
    %303 = vector.extract_strided_slice %300 {offsets = [0, 0], sizes = [5, 8], strides = [1, 1]} : vector<10x32xf32> to vector<5x8xf32>
    %304 = vector.extract_strided_slice %301 {offsets = [0, 0], sizes = [5, 8], strides = [1, 1]} : vector<10x32xf32> to vector<5x8xf32>
    %cst_126 = arith.constant dense<0.000000e+00> : vector<5x5xf32>
    %305 = tpu.matmul %302, %303, %cst_126 {dimension_numbers = #tpu.dot_dimension_numbers<[1], [1], [0], [0], [0, 0, 1, 0], [], []>} : vector<5x8xf32>, vector<5x8xf32>, vector<5x5xf32> -> vector<5x5xf32>
    %cst_127 = arith.constant dense<0xFF800000> : vector<5xf32>
    %306 = vector.multi_reduction <maximumf>, %305, %cst_127 [1] : vector<5x5xf32> to vector<5xf32>
    %307 = vector.shape_cast %306 : vector<5xf32> to vector<5x1xf32>
    %308 = vector.broadcast %307 : vector<5x1xf32> to vector<5x5xf32>
    %309 = arith.subf %305, %308 : vector<5x5xf32>
    %310 = math.exp %309 : vector<5x5xf32>
    %cst_128 = arith.constant dense<0.000000e+00> : vector<5xf32>
    %311 = vector.multi_reduction <add>, %310, %cst_128 [1] : vector<5x5xf32> to vector<5xf32>
    %312 = vector.shape_cast %311 : vector<5xf32> to vector<5x1xf32>
    %313 = tpu.reciprocal %312 {approx = true} : vector<5x1xf32> -> vector<5x1xf32>
    %314 = vector.broadcast %313 : vector<5x1xf32> to vector<5x5xf32>
    %315 = arith.mulf %310, %314 : vector<5x5xf32>
    %cst_129 = arith.constant dense<0.000000e+00> : vector<5x8xf32>
    %316 = tpu.matmul %315, %304, %cst_129 {dimension_numbers = #tpu.dot_dimension_numbers<[1], [0], [0], [1], [0, 0, 1, 1], [], []>} : vector<5x5xf32>, vector<5x8xf32>, vector<5x8xf32> -> vector<5x8xf32>
    %317 = vector.extract_strided_slice %299 {offsets = [0, 8], sizes = [5, 8], strides = [1, 1]} : vector<10x32xf32> to vector<5x8xf32>
    %318 = vector.extract_strided_slice %300 {offsets = [0, 8], sizes = [5, 8], strides = [1, 1]} : vector<10x32xf32> to vector<5x8xf32>
    %319 = vector.extract_strided_slice %301 {offsets = [0, 8], sizes = [5, 8], strides = [1, 1]} : vector<10x32xf32> to vector<5x8xf32>
    %cst_130 = arith.constant dense<0.000000e+00> : vector<5x5xf32>
    %320 = tpu.matmul %317, %318, %cst_130 {dimension_numbers = #tpu.dot_dimension_numbers<[1], [1], [0], [0], [0, 0, 1, 0], [], []>} : vector<5x8xf32>, vector<5x8xf32>, vector<5x5xf32> -> vector<5x5xf32>
    %cst_131 = arith.constant dense<0xFF800000> : vector<5xf32>
    %321 = vector.multi_reduction <maximumf>, %320, %cst_131 [1] : vector<5x5xf32> to vector<5xf32>
    %322 = vector.shape_cast %321 : vector<5xf32> to vector<5x1xf32>
    %323 = vector.broadcast %322 : vector<5x1xf32> to vector<5x5xf32>
    %324 = arith.subf %320, %323 : vector<5x5xf32>
    %325 = math.exp %324 : vector<5x5xf32>
    %cst_132 = arith.constant dense<0.000000e+00> : vector<5xf32>
    %326 = vector.multi_reduction <add>, %325, %cst_132 [1] : vector<5x5xf32> to vector<5xf32>
    %327 = vector.shape_cast %326 : vector<5xf32> to vector<5x1xf32>
    %328 = tpu.reciprocal %327 {approx = true} : vector<5x1xf32> -> vector<5x1xf32>
    %329 = vector.broadcast %328 : vector<5x1xf32> to vector<5x5xf32>
    %330 = arith.mulf %325, %329 : vector<5x5xf32>
    %cst_133 = arith.constant dense<0.000000e+00> : vector<5x8xf32>
    %331 = tpu.matmul %330, %319, %cst_133 {dimension_numbers = #tpu.dot_dimension_numbers<[1], [0], [0], [1], [0, 0, 1, 1], [], []>} : vector<5x5xf32>, vector<5x8xf32>, vector<5x8xf32> -> vector<5x8xf32>
    %332 = vector.extract_strided_slice %299 {offsets = [0, 16], sizes = [5, 8], strides = [1, 1]} : vector<10x32xf32> to vector<5x8xf32>
    %333 = vector.extract_strided_slice %300 {offsets = [0, 16], sizes = [5, 8], strides = [1, 1]} : vector<10x32xf32> to vector<5x8xf32>
    %334 = vector.extract_strided_slice %301 {offsets = [0, 16], sizes = [5, 8], strides = [1, 1]} : vector<10x32xf32> to vector<5x8xf32>
    %cst_134 = arith.constant dense<0.000000e+00> : vector<5x5xf32>
    %335 = tpu.matmul %332, %333, %cst_134 {dimension_numbers = #tpu.dot_dimension_numbers<[1], [1], [0], [0], [0, 0, 1, 0], [], []>} : vector<5x8xf32>, vector<5x8xf32>, vector<5x5xf32> -> vector<5x5xf32>
    %cst_135 = arith.constant dense<0xFF800000> : vector<5xf32>
    %336 = vector.multi_reduction <maximumf>, %335, %cst_135 [1] : vector<5x5xf32> to vector<5xf32>
    %337 = vector.shape_cast %336 : vector<5xf32> to vector<5x1xf32>
    %338 = vector.broadcast %337 : vector<5x1xf32> to vector<5x5xf32>
    %339 = arith.subf %335, %338 : vector<5x5xf32>
    %340 = math.exp %339 : vector<5x5xf32>
    %cst_136 = arith.constant dense<0.000000e+00> : vector<5xf32>
    %341 = vector.multi_reduction <add>, %340, %cst_136 [1] : vector<5x5xf32> to vector<5xf32>
    %342 = vector.shape_cast %341 : vector<5xf32> to vector<5x1xf32>
    %343 = tpu.reciprocal %342 {approx = true} : vector<5x1xf32> -> vector<5x1xf32>
    %344 = vector.broadcast %343 : vector<5x1xf32> to vector<5x5xf32>
    %345 = arith.mulf %340, %344 : vector<5x5xf32>
    %cst_137 = arith.constant dense<0.000000e+00> : vector<5x8xf32>
    %346 = tpu.matmul %345, %334, %cst_137 {dimension_numbers = #tpu.dot_dimension_numbers<[1], [0], [0], [1], [0, 0, 1, 1], [], []>} : vector<5x5xf32>, vector<5x8xf32>, vector<5x8xf32> -> vector<5x8xf32>
    %347 = vector.extract_strided_slice %299 {offsets = [0, 24], sizes = [5, 8], strides = [1, 1]} : vector<10x32xf32> to vector<5x8xf32>
    %348 = vector.extract_strided_slice %300 {offsets = [0, 24], sizes = [5, 8], strides = [1, 1]} : vector<10x32xf32> to vector<5x8xf32>
    %349 = vector.extract_strided_slice %301 {offsets = [0, 24], sizes = [5, 8], strides = [1, 1]} : vector<10x32xf32> to vector<5x8xf32>
    %cst_138 = arith.constant dense<0.000000e+00> : vector<5x5xf32>
    %350 = tpu.matmul %347, %348, %cst_138 {dimension_numbers = #tpu.dot_dimension_numbers<[1], [1], [0], [0], [0, 0, 1, 0], [], []>} : vector<5x8xf32>, vector<5x8xf32>, vector<5x5xf32> -> vector<5x5xf32>
    %cst_139 = arith.constant dense<0xFF800000> : vector<5xf32>
    %351 = vector.multi_reduction <maximumf>, %350, %cst_139 [1] : vector<5x5xf32> to vector<5xf32>
    %352 = vector.shape_cast %351 : vector<5xf32> to vector<5x1xf32>
    %353 = vector.broadcast %352 : vector<5x1xf32> to vector<5x5xf32>
    %354 = arith.subf %350, %353 : vector<5x5xf32>
    %355 = math.exp %354 : vector<5x5xf32>
    %cst_140 = arith.constant dense<0.000000e+00> : vector<5xf32>
    %356 = vector.multi_reduction <add>, %355, %cst_140 [1] : vector<5x5xf32> to vector<5xf32>
    %357 = vector.shape_cast %356 : vector<5xf32> to vector<5x1xf32>
    %358 = tpu.reciprocal %357 {approx = true} : vector<5x1xf32> -> vector<5x1xf32>
    %359 = vector.broadcast %358 : vector<5x1xf32> to vector<5x5xf32>
    %360 = arith.mulf %355, %359 : vector<5x5xf32>
    %cst_141 = arith.constant dense<0.000000e+00> : vector<5x8xf32>
    %361 = tpu.matmul %360, %349, %cst_141 {dimension_numbers = #tpu.dot_dimension_numbers<[1], [0], [0], [1], [0, 0, 1, 1], [], []>} : vector<5x5xf32>, vector<5x8xf32>, vector<5x8xf32> -> vector<5x8xf32>
    %362 = tpu.concatenate %316, %331, %346, %361 in 1 : vector<5x8xf32>, vector<5x8xf32>, vector<5x8xf32>, vector<5x8xf32> -> vector<5x32xf32>
    %363 = vector.extract_strided_slice %299 {offsets = [5, 0], sizes = [5, 8], strides = [1, 1]} : vector<10x32xf32> to vector<5x8xf32>
    %364 = vector.extract_strided_slice %300 {offsets = [5, 0], sizes = [5, 8], strides = [1, 1]} : vector<10x32xf32> to vector<5x8xf32>
    %365 = vector.extract_strided_slice %301 {offsets = [5, 0], sizes = [5, 8], strides = [1, 1]} : vector<10x32xf32> to vector<5x8xf32>
    %cst_142 = arith.constant dense<0.000000e+00> : vector<5x5xf32>
    %366 = tpu.matmul %363, %364, %cst_142 {dimension_numbers = #tpu.dot_dimension_numbers<[1], [1], [0], [0], [0, 0, 1, 0], [], []>} : vector<5x8xf32>, vector<5x8xf32>, vector<5x5xf32> -> vector<5x5xf32>
    %cst_143 = arith.constant dense<0xFF800000> : vector<5xf32>
    %367 = vector.multi_reduction <maximumf>, %366, %cst_143 [1] : vector<5x5xf32> to vector<5xf32>
    %368 = vector.shape_cast %367 : vector<5xf32> to vector<5x1xf32>
    %369 = vector.broadcast %368 : vector<5x1xf32> to vector<5x5xf32>
    %370 = arith.subf %366, %369 : vector<5x5xf32>
    %371 = math.exp %370 : vector<5x5xf32>
    %cst_144 = arith.constant dense<0.000000e+00> : vector<5xf32>
    %372 = vector.multi_reduction <add>, %371, %cst_144 [1] : vector<5x5xf32> to vector<5xf32>
    %373 = vector.shape_cast %372 : vector<5xf32> to vector<5x1xf32>
    %374 = tpu.reciprocal %373 {approx = true} : vector<5x1xf32> -> vector<5x1xf32>
    %375 = vector.broadcast %374 : vector<5x1xf32> to vector<5x5xf32>
    %376 = arith.mulf %371, %375 : vector<5x5xf32>
    %cst_145 = arith.constant dense<0.000000e+00> : vector<5x8xf32>
    %377 = tpu.matmul %376, %365, %cst_145 {dimension_numbers = #tpu.dot_dimension_numbers<[1], [0], [0], [1], [0, 0, 1, 1], [], []>} : vector<5x5xf32>, vector<5x8xf32>, vector<5x8xf32> -> vector<5x8xf32>
    %378 = vector.extract_strided_slice %299 {offsets = [5, 8], sizes = [5, 8], strides = [1, 1]} : vector<10x32xf32> to vector<5x8xf32>
    %379 = vector.extract_strided_slice %300 {offsets = [5, 8], sizes = [5, 8], strides = [1, 1]} : vector<10x32xf32> to vector<5x8xf32>
    %380 = vector.extract_strided_slice %301 {offsets = [5, 8], sizes = [5, 8], strides = [1, 1]} : vector<10x32xf32> to vector<5x8xf32>
    %cst_146 = arith.constant dense<0.000000e+00> : vector<5x5xf32>
    %381 = tpu.matmul %378, %379, %cst_146 {dimension_numbers = #tpu.dot_dimension_numbers<[1], [1], [0], [0], [0, 0, 1, 0], [], []>} : vector<5x8xf32>, vector<5x8xf32>, vector<5x5xf32> -> vector<5x5xf32>
    %cst_147 = arith.constant dense<0xFF800000> : vector<5xf32>
    %382 = vector.multi_reduction <maximumf>, %381, %cst_147 [1] : vector<5x5xf32> to vector<5xf32>
    %383 = vector.shape_cast %382 : vector<5xf32> to vector<5x1xf32>
    %384 = vector.broadcast %383 : vector<5x1xf32> to vector<5x5xf32>
    %385 = arith.subf %381, %384 : vector<5x5xf32>
    %386 = math.exp %385 : vector<5x5xf32>
    %cst_148 = arith.constant dense<0.000000e+00> : vector<5xf32>
    %387 = vector.multi_reduction <add>, %386, %cst_148 [1] : vector<5x5xf32> to vector<5xf32>
    %388 = vector.shape_cast %387 : vector<5xf32> to vector<5x1xf32>
    %389 = tpu.reciprocal %388 {approx = true} : vector<5x1xf32> -> vector<5x1xf32>
    %390 = vector.broadcast %389 : vector<5x1xf32> to vector<5x5xf32>
    %391 = arith.mulf %386, %390 : vector<5x5xf32>
    %cst_149 = arith.constant dense<0.000000e+00> : vector<5x8xf32>
    %392 = tpu.matmul %391, %380, %cst_149 {dimension_numbers = #tpu.dot_dimension_numbers<[1], [0], [0], [1], [0, 0, 1, 1], [], []>} : vector<5x5xf32>, vector<5x8xf32>, vector<5x8xf32> -> vector<5x8xf32>
    %393 = vector.extract_strided_slice %299 {offsets = [5, 16], sizes = [5, 8], strides = [1, 1]} : vector<10x32xf32> to vector<5x8xf32>
    %394 = vector.extract_strided_slice %300 {offsets = [5, 16], sizes = [5, 8], strides = [1, 1]} : vector<10x32xf32> to vector<5x8xf32>
    %395 = vector.extract_strided_slice %301 {offsets = [5, 16], sizes = [5, 8], strides = [1, 1]} : vector<10x32xf32> to vector<5x8xf32>
    %cst_150 = arith.constant dense<0.000000e+00> : vector<5x5xf32>
    %396 = tpu.matmul %393, %394, %cst_150 {dimension_numbers = #tpu.dot_dimension_numbers<[1], [1], [0], [0], [0, 0, 1, 0], [], []>} : vector<5x8xf32>, vector<5x8xf32>, vector<5x5xf32> -> vector<5x5xf32>
    %cst_151 = arith.constant dense<0xFF800000> : vector<5xf32>
    %397 = vector.multi_reduction <maximumf>, %396, %cst_151 [1] : vector<5x5xf32> to vector<5xf32>
    %398 = vector.shape_cast %397 : vector<5xf32> to vector<5x1xf32>
    %399 = vector.broadcast %398 : vector<5x1xf32> to vector<5x5xf32>
    %400 = arith.subf %396, %399 : vector<5x5xf32>
    %401 = math.exp %400 : vector<5x5xf32>
    %cst_152 = arith.constant dense<0.000000e+00> : vector<5xf32>
    %402 = vector.multi_reduction <add>, %401, %cst_152 [1] : vector<5x5xf32> to vector<5xf32>
    %403 = vector.shape_cast %402 : vector<5xf32> to vector<5x1xf32>
    %404 = tpu.reciprocal %403 {approx = true} : vector<5x1xf32> -> vector<5x1xf32>
    %405 = vector.broadcast %404 : vector<5x1xf32> to vector<5x5xf32>
    %406 = arith.mulf %401, %405 : vector<5x5xf32>
    %cst_153 = arith.constant dense<0.000000e+00> : vector<5x8xf32>
    %407 = tpu.matmul %406, %395, %cst_153 {dimension_numbers = #tpu.dot_dimension_numbers<[1], [0], [0], [1], [0, 0, 1, 1], [], []>} : vector<5x5xf32>, vector<5x8xf32>, vector<5x8xf32> -> vector<5x8xf32>
    %408 = vector.extract_strided_slice %299 {offsets = [5, 24], sizes = [5, 8], strides = [1, 1]} : vector<10x32xf32> to vector<5x8xf32>
    %409 = vector.extract_strided_slice %300 {offsets = [5, 24], sizes = [5, 8], strides = [1, 1]} : vector<10x32xf32> to vector<5x8xf32>
    %410 = vector.extract_strided_slice %301 {offsets = [5, 24], sizes = [5, 8], strides = [1, 1]} : vector<10x32xf32> to vector<5x8xf32>
    %cst_154 = arith.constant dense<0.000000e+00> : vector<5x5xf32>
    %411 = tpu.matmul %408, %409, %cst_154 {dimension_numbers = #tpu.dot_dimension_numbers<[1], [1], [0], [0], [0, 0, 1, 0], [], []>} : vector<5x8xf32>, vector<5x8xf32>, vector<5x5xf32> -> vector<5x5xf32>
    %cst_155 = arith.constant dense<0xFF800000> : vector<5xf32>
    %412 = vector.multi_reduction <maximumf>, %411, %cst_155 [1] : vector<5x5xf32> to vector<5xf32>
    %413 = vector.shape_cast %412 : vector<5xf32> to vector<5x1xf32>
    %414 = vector.broadcast %413 : vector<5x1xf32> to vector<5x5xf32>
    %415 = arith.subf %411, %414 : vector<5x5xf32>
    %416 = math.exp %415 : vector<5x5xf32>
    %cst_156 = arith.constant dense<0.000000e+00> : vector<5xf32>
    %417 = vector.multi_reduction <add>, %416, %cst_156 [1] : vector<5x5xf32> to vector<5xf32>
    %418 = vector.shape_cast %417 : vector<5xf32> to vector<5x1xf32>
    %419 = tpu.reciprocal %418 {approx = true} : vector<5x1xf32> -> vector<5x1xf32>
    %420 = vector.broadcast %419 : vector<5x1xf32> to vector<5x5xf32>
    %421 = arith.mulf %416, %420 : vector<5x5xf32>
    %cst_157 = arith.constant dense<0.000000e+00> : vector<5x8xf32>
    %422 = tpu.matmul %421, %410, %cst_157 {dimension_numbers = #tpu.dot_dimension_numbers<[1], [0], [0], [1], [0, 0, 1, 1], [], []>} : vector<5x5xf32>, vector<5x8xf32>, vector<5x8xf32> -> vector<5x8xf32>
    %423 = tpu.concatenate %377, %392, %407, %422 in 1 : vector<5x8xf32>, vector<5x8xf32>, vector<5x8xf32>, vector<5x8xf32> -> vector<5x32xf32>
    %424 = tpu.concatenate %362, %423 in 0 : vector<5x32xf32>, vector<5x32xf32> -> vector<10x32xf32>
    %c1_158 = arith.constant 1 : index
    %c0_159 = arith.constant 0 : index
    %c0_160 = arith.constant 0 : index
    %425 = vector.load %arg9[%c1_158, %c0_159, %c0_160] : memref<2x32x32xf32, #tpu.memory_space<vmem>>, vector<1x32x32xf32>
    %426 = vector.shape_cast %425 : vector<1x32x32xf32> to vector<32x32xf32>
    %cst_161 = arith.constant dense<0.000000e+00> : vector<10x32xf32>
    %427 = tpu.matmul %424, %426, %cst_161 {dimension_numbers = #tpu.dot_dimension_numbers<[1], [0], [0], [1], [0, 0, 1, 1], [], []>} : vector<10x32xf32>, vector<32x32xf32>, vector<10x32xf32> -> vector<10x32xf32>
    %c1_162 = arith.constant 1 : index
    %c0_163 = arith.constant 0 : index
    %c0_164 = arith.constant 0 : index
    %428 = vector.load %arg10[%c1_162, %c0_163, %c0_164] : memref<2x1x32xf32, #tpu.memory_space<vmem>>, vector<1x1x32xf32>
    %429 = vector.shape_cast %428 : vector<1x1x32xf32> to vector<1x32xf32>
    %430 = vector.broadcast %429 : vector<1x32xf32> to vector<10x32xf32>
    %431 = arith.addf %427, %430 : vector<10x32xf32>
    %432 = arith.addf %263, %431 : vector<10x32xf32>
    %c1_165 = arith.constant 1 : index
    %c0_166 = arith.constant 0 : index
    %c0_167 = arith.constant 0 : index
    %433 = vector.load %arg11[%c1_165, %c0_166, %c0_167] : memref<2x1x32xf32, #tpu.memory_space<vmem>>, vector<1x1x32xf32>
    %434 = vector.shape_cast %433 : vector<1x1x32xf32> to vector<1x32xf32>
    %c1_168 = arith.constant 1 : index
    %c0_169 = arith.constant 0 : index
    %c0_170 = arith.constant 0 : index
    %435 = vector.load %arg12[%c1_168, %c0_169, %c0_170] : memref<2x1x32xf32, #tpu.memory_space<vmem>>, vector<1x1x32xf32>
    %436 = vector.shape_cast %435 : vector<1x1x32xf32> to vector<1x32xf32>
    %cst_171 = arith.constant dense<0.000000e+00> : vector<10xf32>
    %437 = vector.multi_reduction <add>, %432, %cst_171 [1] : vector<10x32xf32> to vector<10xf32>
    %438 = vector.shape_cast %437 : vector<10xf32> to vector<10x1xf32>
    %cst_172 = arith.constant 3.200000e+01 : f32
    %439 = vector.broadcast %cst_172 : f32 to vector<10x1xf32>
    %440 = arith.divf %438, %439 : vector<10x1xf32>
    %441 = vector.broadcast %440 : vector<10x1xf32> to vector<10x32xf32>
    %442 = arith.subf %432, %441 : vector<10x32xf32>
    %443 = arith.mulf %442, %442 : vector<10x32xf32>
    %cst_173 = arith.constant dense<0.000000e+00> : vector<10xf32>
    %444 = vector.multi_reduction <add>, %443, %cst_173 [1] : vector<10x32xf32> to vector<10xf32>
    %445 = vector.shape_cast %444 : vector<10xf32> to vector<10x1xf32>
    %cst_174 = arith.constant 3.200000e+01 : f32
    %446 = vector.broadcast %cst_174 : f32 to vector<10x1xf32>
    %447 = arith.divf %445, %446 : vector<10x1xf32>
    %448 = vector.broadcast %440 : vector<10x1xf32> to vector<10x32xf32>
    %449 = arith.subf %432, %448 : vector<10x32xf32>
    %cst_175 = arith.constant 9.99999997E-7 : f32
    %450 = vector.broadcast %cst_175 : f32 to vector<10x1xf32>
    %451 = arith.addf %447, %450 : vector<10x1xf32>
    %452 = math.rsqrt %451 : vector<10x1xf32>
    %453 = vector.broadcast %452 : vector<10x1xf32> to vector<10x32xf32>
    %454 = arith.mulf %449, %453 : vector<10x32xf32>
    %455 = vector.broadcast %434 : vector<1x32xf32> to vector<10x32xf32>
    %456 = arith.mulf %454, %455 : vector<10x32xf32>
    %457 = vector.broadcast %436 : vector<1x32xf32> to vector<10x32xf32>
    %458 = arith.addf %456, %457 : vector<10x32xf32>
    %c1_176 = arith.constant 1 : index
    %c0_177 = arith.constant 0 : index
    %c0_178 = arith.constant 0 : index
    %459 = vector.load %arg13[%c1_176, %c0_177, %c0_178] : memref<2x32x128xf32, #tpu.memory_space<vmem>>, vector<1x32x128xf32>
    %460 = vector.shape_cast %459 : vector<1x32x128xf32> to vector<32x128xf32>
    %cst_179 = arith.constant dense<0.000000e+00> : vector<10x128xf32>
    %461 = tpu.matmul %458, %460, %cst_179 {dimension_numbers = #tpu.dot_dimension_numbers<[1], [0], [0], [1], [0, 0, 1, 1], [], []>} : vector<10x32xf32>, vector<32x128xf32>, vector<10x128xf32> -> vector<10x128xf32>
    %c1_180 = arith.constant 1 : index
    %c0_181 = arith.constant 0 : index
    %c0_182 = arith.constant 0 : index
    %462 = vector.load %arg14[%c1_180, %c0_181, %c0_182] : memref<2x1x128xf32, #tpu.memory_space<vmem>>, vector<1x1x128xf32>
    %463 = vector.shape_cast %462 : vector<1x1x128xf32> to vector<1x128xf32>
    %464 = vector.broadcast %463 : vector<1x128xf32> to vector<10x128xf32>
    %465 = arith.addf %461, %464 : vector<10x128xf32>
    %cst_183 = arith.constant 5.000000e-01 : f32
    %466 = vector.broadcast %cst_183 : f32 to vector<10x128xf32>
    %467 = arith.mulf %466, %465 : vector<10x128xf32>
    %cst_184 = arith.constant 0.707106769 : f32
    %468 = vector.broadcast %cst_184 : f32 to vector<10x128xf32>
    %469 = arith.mulf %465, %468 : vector<10x128xf32>
    %cst_185 = arith.constant 0.000000e+00 : f32
    %470 = vector.broadcast %cst_185 : f32 to vector<10x128xf32>
    %471 = arith.cmpf oge, %469, %470 : vector<10x128xf32>
    %cst_186 = arith.constant 1.000000e+00 : f32
    %cst_187 = arith.constant -1.000000e+00 : f32
    %472 = vector.broadcast %cst_186 : f32 to vector<10x128xf32>
    %473 = vector.broadcast %cst_187 : f32 to vector<10x128xf32>
    %474 = arith.select %471, %472, %473 : vector<10x128xi1>, vector<10x128xf32>
    %475 = math.absf %469 : vector<10x128xf32>
    %cst_188 = arith.constant 0.327591091 : f32
    %476 = vector.broadcast %cst_188 : f32 to vector<10x128xf32>
    %477 = arith.mulf %476, %475 : vector<10x128xf32>
    %cst_189 = arith.constant 1.000000e+00 : f32
    %478 = vector.broadcast %cst_189 : f32 to vector<10x128xf32>
    %479 = arith.addf %478, %477 : vector<10x128xf32>
    %cst_190 = arith.constant 1.000000e+00 : f32
    %480 = vector.broadcast %cst_190 : f32 to vector<10x128xf32>
    %481 = arith.divf %480, %479 : vector<10x128xf32>
    %cst_191 = arith.constant 1.06140542 : f32
    %482 = vector.broadcast %cst_191 : f32 to vector<10x128xf32>
    %483 = arith.mulf %482, %481 : vector<10x128xf32>
    %cst_192 = arith.constant -1.45315206 : f32
    %484 = vector.broadcast %cst_192 : f32 to vector<10x128xf32>
    %485 = arith.addf %483, %484 : vector<10x128xf32>
    %486 = arith.mulf %485, %481 : vector<10x128xf32>
    %cst_193 = arith.constant 1.42141378 : f32
    %487 = vector.broadcast %cst_193 : f32 to vector<10x128xf32>
    %488 = arith.addf %486, %487 : vector<10x128xf32>
    %489 = arith.mulf %488, %481 : vector<10x128xf32>
    %cst_194 = arith.constant -0.284496725 : f32
    %490 = vector.broadcast %cst_194 : f32 to vector<10x128xf32>
    %491 = arith.addf %489, %490 : vector<10x128xf32>
    %492 = arith.mulf %491, %481 : vector<10x128xf32>
    %cst_195 = arith.constant 0.254829586 : f32
    %493 = vector.broadcast %cst_195 : f32 to vector<10x128xf32>
    %494 = arith.addf %492, %493 : vector<10x128xf32>
    %495 = arith.mulf %494, %481 : vector<10x128xf32>
    %cst_196 = arith.constant 0.000000e+00 : f32
    %496 = vector.broadcast %cst_196 : f32 to vector<10x128xf32>
    %497 = arith.subf %496, %475 : vector<10x128xf32>
    %498 = arith.mulf %497, %475 : vector<10x128xf32>
    %499 = math.exp %498 : vector<10x128xf32>
    %500 = arith.mulf %495, %499 : vector<10x128xf32>
    %cst_197 = arith.constant 1.000000e+00 : f32
    %501 = vector.broadcast %cst_197 : f32 to vector<10x128xf32>
    %502 = arith.subf %501, %500 : vector<10x128xf32>
    %503 = arith.mulf %474, %502 : vector<10x128xf32>
    %cst_198 = arith.constant 1.000000e+00 : f32
    %504 = vector.broadcast %cst_198 : f32 to vector<10x128xf32>
    %505 = arith.addf %504, %503 : vector<10x128xf32>
    %506 = arith.mulf %467, %505 : vector<10x128xf32>
    %c1_199 = arith.constant 1 : index
    %c0_200 = arith.constant 0 : index
    %c0_201 = arith.constant 0 : index
    %507 = vector.load %arg15[%c1_199, %c0_200, %c0_201] : memref<2x128x32xf32, #tpu.memory_space<vmem>>, vector<1x128x32xf32>
    %508 = vector.shape_cast %507 : vector<1x128x32xf32> to vector<128x32xf32>
    %cst_202 = arith.constant dense<0.000000e+00> : vector<10x32xf32>
    %509 = tpu.matmul %506, %508, %cst_202 {dimension_numbers = #tpu.dot_dimension_numbers<[1], [0], [0], [1], [0, 0, 1, 1], [], []>} : vector<10x128xf32>, vector<128x32xf32>, vector<10x32xf32> -> vector<10x32xf32>
    %510 = arith.addf %432, %509 : vector<10x32xf32>
    %c1_203 = arith.constant 1 : index
    %c0_204 = arith.constant 0 : index
    %c0_205 = arith.constant 0 : index
    %511 = vector.load %arg16[%c1_203, %c0_204, %c0_205] : memref<2x1x32xf32, #tpu.memory_space<vmem>>, vector<1x1x32xf32>
    %512 = vector.shape_cast %511 : vector<1x1x32xf32> to vector<1x32xf32>
    %513 = vector.broadcast %512 : vector<1x32xf32> to vector<10x32xf32>
    %514 = arith.addf %510, %513 : vector<10x32xf32>
    %515 = vector.extract_strided_slice %514 {offsets = [0, 0], sizes = [1, 32], strides = [1, 1]} : vector<10x32xf32> to vector<1x32xf32>
    %516 = vector.extract_strided_slice %514 {offsets = [5, 0], sizes = [1, 32], strides = [1, 1]} : vector<10x32xf32> to vector<1x32xf32>
    %517 = tpu.concatenate %515, %516 in 0 : vector<1x32xf32>, vector<1x32xf32> -> vector<2x32xf32>
    %c0_206 = arith.constant 0 : index
    %c0_207 = arith.constant 0 : index
    %518 = vector.load %arg17[%c0_206, %c0_207] : memref<1x32xf32, #tpu.memory_space<vmem>>, vector<1x32xf32>
    %c0_208 = arith.constant 0 : index
    %c0_209 = arith.constant 0 : index
    %519 = vector.load %arg18[%c0_208, %c0_209] : memref<1x32xf32, #tpu.memory_space<vmem>>, vector<1x32xf32>
    %cst_210 = arith.constant dense<0.000000e+00> : vector<2xf32>
    %520 = vector.multi_reduction <add>, %517, %cst_210 [1] : vector<2x32xf32> to vector<2xf32>
    %521 = vector.shape_cast %520 : vector<2xf32> to vector<2x1xf32>
    %cst_211 = arith.constant 3.200000e+01 : f32
    %522 = vector.broadcast %cst_211 : f32 to vector<2x1xf32>
    %523 = arith.divf %521, %522 : vector<2x1xf32>
    %524 = vector.broadcast %523 : vector<2x1xf32> to vector<2x32xf32>
    %525 = arith.subf %517, %524 : vector<2x32xf32>
    %526 = arith.mulf %525, %525 : vector<2x32xf32>
    %cst_212 = arith.constant dense<0.000000e+00> : vector<2xf32>
    %527 = vector.multi_reduction <add>, %526, %cst_212 [1] : vector<2x32xf32> to vector<2xf32>
    %528 = vector.shape_cast %527 : vector<2xf32> to vector<2x1xf32>
    %cst_213 = arith.constant 3.200000e+01 : f32
    %529 = vector.broadcast %cst_213 : f32 to vector<2x1xf32>
    %530 = arith.divf %528, %529 : vector<2x1xf32>
    %531 = vector.broadcast %523 : vector<2x1xf32> to vector<2x32xf32>
    %532 = arith.subf %517, %531 : vector<2x32xf32>
    %cst_214 = arith.constant 9.99999997E-7 : f32
    %533 = vector.broadcast %cst_214 : f32 to vector<2x1xf32>
    %534 = arith.addf %530, %533 : vector<2x1xf32>
    %535 = math.rsqrt %534 : vector<2x1xf32>
    %536 = vector.broadcast %535 : vector<2x1xf32> to vector<2x32xf32>
    %537 = arith.mulf %532, %536 : vector<2x32xf32>
    %538 = vector.broadcast %518 : vector<1x32xf32> to vector<2x32xf32>
    %539 = arith.mulf %537, %538 : vector<2x32xf32>
    %540 = vector.broadcast %519 : vector<1x32xf32> to vector<2x32xf32>
    %541 = arith.addf %539, %540 : vector<2x32xf32>
    %cst_215 = arith.constant 0.000000e+00 : f32
    %542 = vector.broadcast %cst_215 : f32 to vector<2x96xf32>
    %543 = tpu.concatenate %541, %542 in 1 : vector<2x32xf32>, vector<2x96xf32> -> vector<2x128xf32>
    %c0_216 = arith.constant 0 : index
    %c0_217 = arith.constant 0 : index
    %544 = vector.load %arg21[%c0_216, %c0_217] : memref<2x128xf32, #tpu.memory_space<vmem>>, vector<2x128xf32>
    tpu.vector_store %arg21[%c0_216, %c0_217], %543 {strides = array<i32>} : memref<2x128xf32, #tpu.memory_space<vmem>>, vector<2x128xf32>,
    %c0_218 = arith.constant 0 : index
    %c0_219 = arith.constant 0 : index
    %545 = vector.load %arg19[%c0_218, %c0_219] : memref<32x128xf32, #tpu.memory_space<vmem>>, vector<32x128xf32>
    %cst_220 = arith.constant dense<0.000000e+00> : vector<2x128xf32>
    %546 = tpu.matmul %541, %545, %cst_220 {dimension_numbers = #tpu.dot_dimension_numbers<[1], [0], [0], [1], [0, 0, 1, 1], [], []>} : vector<2x32xf32>, vector<32x128xf32>, vector<2x128xf32> -> vector<2x128xf32>
    %c0_221 = arith.constant 0 : index
    %c0_222 = arith.constant 0 : index
    %547 = vector.load %arg20[%c0_221, %c0_222] : memref<1x128xf32, #tpu.memory_space<vmem>>, vector<1x128xf32>
    %548 = vector.broadcast %547 : vector<1x128xf32> to vector<2x128xf32>
    %549 = arith.addf %546, %548 : vector<2x128xf32>
    %c0_223 = arith.constant 0 : index
    %c0_224 = arith.constant 0 : index
    %550 = vector.load %arg22[%c0_223, %c0_224] : memref<2x128xf32, #tpu.memory_space<vmem>>, vector<2x128xf32>
    tpu.vector_store %arg22[%c0_223, %c0_224], %549 {strides = array<i32>} : memref<2x128xf32, #tpu.memory_space<vmem>>, vector<2x128xf32>,
    return
  }
}

</mosaic_0001>

<bundles_post_ra>
// kernel: vit_forward.1
= control target key start
LH: loop header
LB: loop body
LE: loop exit
PB: predicated region body
PF: predicated region fallthrough
CT: control target
= control target key end

     0   :  { %s6573_s0 = inlined_call_operand.vmem [shape: f32[8,768], index: 0, kind: input, shape index: {}]   ;;  %s6574_s1 = inlined_call_operand.vmem [shape: f32[768,32], index: 1, kind: input, shape index: {}]   ;;  %s6575_s2 = inlined_call_operand.vmem [shape: f32[1,32], index: 2, kind: input, shape index: {}]   ;;  %s6576_s3 = inlined_call_operand.vmem [shape: f32[1,32], index: 3, kind: input, shape index: {}]   ;;  %s6577_s4 = inlined_call_operand.vmem [shape: f32[5,32], index: 4, kind: input, shape index: {}]   ;;  %s6578_s5 = inlined_call_operand.vmem [shape: f32[2,1,32], index: 5, kind: input, shape index: {}]   ;;  %s6579_s6 = inlined_call_operand.vmem [shape: f32[2,1,32], index: 6, kind: input, shape index: {}]   ;;  %s6580_s7 = inlined_call_operand.vmem [shape: f32[2,32,96], index: 7, kind: input, shape index: {}]   ;;  %s6581_s8 = inlined_call_operand.vmem [shape: f32[2,1,96], index: 8, kind: input, shape index: {}]   ;;  %s6582_s9 = inlined_call_operand.vmem [shape: f32[2,32,32], index: 9, kind: input, shape index: {}]   ;;  %s6583_s10 = inlined_call_operand.vmem [shape: f32[2,1,32], index: 10, kind: input, shape index: {}]   ;;  %s6584_s11 = inlined_call_operand.vmem [shape: f32[2,1,32], index: 11, kind: input, shape index: {}]   ;;  %s6585_s12 = inlined_call_operand.vmem [shape: f32[2,1,32], index: 12, kind: input, shape index: {}]   ;;  %s6586_s13 = inlined_call_operand.vmem [shape: f32[2,32,128], index: 13, kind: input, shape index: {}]   ;;  %s6587_s14 = inlined_call_operand.vmem [shape: f32[2,1,128], index: 14, kind: input, shape index: {}]   ;;  %s6588_s15 = inlined_call_operand.vmem [shape: f32[2,128,32], index: 15, kind: input, shape index: {}]   ;;  %s6589_s16 = inlined_call_operand.vmem [shape: f32[2,1,32], index: 16, kind: input, shape index: {}]   ;;  %s6590_s17 = inlined_call_operand.vmem [shape: f32[1,32], index: 17, kind: input, shape index: {}]   ;;  %s6591_s18 = inlined_call_operand.vmem [shape: f32[1,32], index: 18, kind: input, shape index: {}]   ;;  %s6592_s19 = inlined_call_operand.vmem [shape: f32[32,128], index: 19, kind: input, shape index: {}]   ;;  %s6593_s20 = inlined_call_operand.vmem [shape: f32[1,128], index: 20, kind: input, shape index: {}]   ;;  %s6594_s21 = inlined_call_operand.hbm [shape: f32[2,128], index: 21, kind: output, shape index: {0}]   ;;  %s6595_s22 = inlined_call_operand.hbm [shape: f32[2,128], index: 22, kind: output, shape index: {1}]  }
   0x1   :  { %6618 = sst [smem:[#allocation8_spill]] %s6573_s0 }
   0x2   :  { %6619 = sst [smem:[#allocation9_spill]] %s6574_s1 }
   0x3   :  { %6620 = sst [smem:[#allocation10_spill]] %s6575_s2 }
   0x4   :  { %6621 = sst [smem:[#allocation11_spill]] %s6576_s3 }
   0x5   :  { %6622 = sst [smem:[#allocation12_spill]] %s6577_s4 }
   0x6   :  { %6623 = sst [smem:[#allocation13_spill]] %s6578_s5 }
   0x7   :  { %6624 = sst [smem:[#allocation14_spill]] %s6579_s6 }
   0x8   :  { %28 = vsyncpa [#allocation3], 0  ;;  %s6625_s29 = sld [smem:[#allocation9_spill]]  ;;  %s6626_s25 = sld [smem:[#allocation8_spill]] }
   0xe   :  { %v94_v0 = vld [vmem:[%s6625_s29 + $0x80] sm:$0xff]  ;;  %v95_v1 = vld [vmem:[%s6625_s29 + $0x88] sm:$0xff]  ;;  %v96_v11 = vld [vmem:[%s6625_s29 + $0x90] sm:$0xff] }
   0xf   :  { %v78_v2 = vld [vmem:[%s6625_s29] sm:$0xff]  ;;  %v5050_v3 = vpack.c.bf16 %v95_v1, %v94_v0  ;;  %v79_v4 = vld [vmem:[%s6625_s29 + $0x8] sm:$0xff]  ;;  %v97_v13 = vld [vmem:[%s6625_s29 + $0x98] sm:$0xff] }
  0x10   :  { %v126_v5 = vld [vmem:[%s6625_s29 + $0x180] sm:$0xff]  ;;  %v127_v6 = vld [vmem:[%s6625_s29 + $0x188] sm:$0xff]  ;;  %v5052_v7 = vpack.c.bf16 %v79_v4, %v78_v2  ;;  %v80_v14 = vld [vmem:[%s6625_s29 + $0x10] sm:$0xff]  ;;  %v5054_v16 = vpack.c.bf16 %v97_v13, %v96_v11 }
  0x11   :  { %v5082_v8 = vpack.c.bf16 %v127_v6, %v126_v5  ;;  %v110_v9 = vld [vmem:[%s6625_s29 + $0x100] sm:$0xff]  ;;  %v111_v10 = vld [vmem:[%s6625_s29 + $0x108] sm:$0xff]  ;;  %5051 = vmatprep.subr.bf16.mxu0 %v5050_v3  ;;  %v81_v15 = vld [vmem:[%s6625_s29 + $0x18] sm:$0xff] }
  0x12   :  { %v5084_v12 = vpack.c.bf16 %v111_v10, %v110_v9  ;;  %5053 = vmatpush3.bf16.msra.mxu0 %v5052_v7  ;;  %v5056_v17 = vpack.c.bf16 %v81_v15, %v80_v14  ;;  %v128_v18 = vld [vmem:[%s6625_s29 + $0x190] sm:$0xff]  ;;  %v129_v19 = vld [vmem:[%s6625_s29 + $0x198] sm:$0xff]  ;;  %v98_v23 = vld [vmem:[%s6625_s29 + $0xa0] sm:$0xff] }
  0x13   :  { %5083 = vmatprep.subr.bf16.mxu1 %v5082_v8  ;;  %v112_v20 = vld [vmem:[%s6625_s29 + $0x110] sm:$0xff]  ;;  %v5086_v21 = vpack.c.bf16 %v129_v19, %v128_v18  ;;  %v113_v22 = vld [vmem:[%s6625_s29 + $0x118] sm:$0xff]  ;;  %v99_v24 = vld [vmem:[%s6625_s29 + $0xa8] sm:$0xff]  ;;  %5055 = vmatprep.subr.bf16.mxu0 %v5054_v16 }
  0x14   :  { %5085 = vmatpush3.bf16.msra.mxu1 %v5084_v12  ;;  %v5088_v25 = vpack.c.bf16 %v113_v22, %v112_v20  ;;  %v5058_v26 = vpack.c.bf16 %v99_v24, %v98_v23  ;;  %v82_v27 = vld [vmem:[%s6625_s29 + $0x20] sm:$0xff]  ;;  %v83_v28 = vld [vmem:[%s6625_s29 + $0x28] sm:$0xff]  ;;  %v100_v35 = vld [vmem:[%s6625_s29 + $0xb0] sm:$0xff] }
  0x15   :  { %v130_v29 = vld [vmem:[%s6625_s29 + $0x1a0] sm:$0xff]  ;;  %5087 = vmatprep.subr.bf16.mxu1 %v5086_v21  ;;  %v131_v30 = vld [vmem:[%s6625_s29 + $0x1a8] sm:$0xff]  ;;  %v5060_v33 = vpack.c.bf16 %v83_v28, %v82_v27  ;;  %v101_v36 = vld [vmem:[%s6625_s29 + $0xb8] sm:$0xff] }
  0x16   :  { %v114_v31 = vld [vmem:[%s6625_s29 + $0x120] sm:$0xff]  ;;  %v115_v32 = vld [vmem:[%s6625_s29 + $0x128] sm:$0xff]  ;;  %5057 = vmatpush3.bf16.msra.mxu0 %v5056_v17  ;;  %v5090_v34 = vpack.c.bf16 %v131_v30, %v130_v29  ;;  %v84_v37 = vld [vmem:[%s6625_s29 + $0x30] sm:$0xff]  ;;  %v5062_v39 = vpack.c.bf16 %v101_v36, %v100_v35 }
  0x17   :  { %5059 = vmatprep.subr.bf16.mxu0 %v5058_v26  ;;  %v5092_v38 = vpack.c.bf16 %v115_v32, %v114_v31  ;;  %v85_v40 = vld [vmem:[%s6625_s29 + $0x38] sm:$0xff]  ;;  %v132_v41 = vld [vmem:[%s6625_s29 + $0x1b0] sm:$0xff]  ;;  %v102_v46 = vld [vmem:[%s6625_s29 + $0xc0] sm:$0xff] }
  0x18   :  { %5089 = vmatpush3.bf16.msra.mxu1 %v5088_v25  ;;  %v133_v42 = vld [vmem:[%s6625_s29 + $0x1b8] sm:$0xff]  ;;  %v116_v44 = vld [vmem:[%s6625_s29 + $0x130] sm:$0xff]  ;;  %v103_v47 = vld [vmem:[%s6625_s29 + $0xc8] sm:$0xff]  ;;  %v5064_v48 = vpack.c.bf16 %v85_v40, %v84_v37 }
  0x19   :  { %5091 = vmatprep.subr.bf16.mxu1 %v5090_v34  ;;  %v5094_v43 = vpack.c.bf16 %v133_v42, %v132_v41  ;;  %v117_v45 = vld [vmem:[%s6625_s29 + $0x138] sm:$0xff]  ;;  %v134_v49 = vld [vmem:[%s6625_s29 + $0x1c0] sm:$0xff]  ;;  %v135_v50 = vld [vmem:[%s6625_s29 + $0x1c8] sm:$0xff]  ;;  %v5066_v52 = vpack.c.bf16 %v103_v47, %v102_v46 }
  0x1a   :  { %5061 = vmatpush3.bf16.msra.mxu0 %v5060_v33  ;;  %v5096_v51 = vpack.c.bf16 %v117_v45, %v116_v44  ;;  %v86_v53 = vld [vmem:[%s6625_s29 + $0x40] sm:$0xff]  ;;  %v87_v54 = vld [vmem:[%s6625_s29 + $0x48] sm:$0xff]  ;;  %v5098_v56 = vpack.c.bf16 %v135_v50, %v134_v49  ;;  %v104_v58 = vld [vmem:[%s6625_s29 + $0xd0] sm:$0xff] }
  0x1b   :  { %5063 = vmatprep.subr.bf16.mxu0 %v5062_v39  ;;  %v118_v55 = vld [vmem:[%s6625_s29 + $0x140] sm:$0xff]  ;;  %v119_v57 = vld [vmem:[%s6625_s29 + $0x148] sm:$0xff]  ;;  %v105_v59 = vld [vmem:[%s6625_s29 + $0xd8] sm:$0xff]  ;;  %v5068_v62 = vpack.c.bf16 %v87_v54, %v86_v53 }
  0x1c   :  { %5093 = vmatpush3.bf16.msra.mxu1 %v5092_v38  ;;  %v136_v60 = vld [vmem:[%s6625_s29 + $0x1d0] sm:$0xff]  ;;  %v137_v61 = vld [vmem:[%s6625_s29 + $0x1d8] sm:$0xff]  ;;  %v5100_v63 = vpack.c.bf16 %v119_v57, %v118_v55  ;;  %v5070_v0 = vpack.c.bf16 %v105_v59, %v104_v58  ;;  %v106_v6 = vld [vmem:[%s6625_s29 + $0xe0] sm:$0xff] }
  0x1d   :  { %5095 = vmatprep.subr.bf16.mxu1 %v5094_v43  ;;  %v88_v1 = vld [vmem:[%s6625_s29 + $0x50] sm:$0xff]  ;;  %v89_v2 = vld [vmem:[%s6625_s29 + $0x58] sm:$0xff]  ;;  %v5102_v4 = vpack.c.bf16 %v137_v61, %v136_v60  ;;  %v107_v7 = vld [vmem:[%s6625_s29 + $0xe8] sm:$0xff] }
  0x1e   :  { %5065 = vmatpush3.bf16.msra.mxu0 %v5064_v48  ;;  %v120_v3 = vld [vmem:[%s6625_s29 + $0x150] sm:$0xff]  ;;  %v121_v5 = vld [vmem:[%s6625_s29 + $0x158] sm:$0xff]  ;;  %v138_v8 = vld [vmem:[%s6625_s29 + $0x1e0] sm:$0xff]  ;;  %v5072_v10 = vpack.c.bf16 %v89_v2, %v88_v1  ;;  %v5074_v14 = vpack.c.bf16 %v107_v7, %v106_v6 }
  0x1f   :  { %5067 = vmatprep.subr.bf16.mxu0 %v5066_v52  ;;  %v139_v9 = vld [vmem:[%s6625_s29 + $0x1e8] sm:$0xff]  ;;  %v90_v11 = vld [vmem:[%s6625_s29 + $0x60] sm:$0xff]  ;;  %v5104_v13 = vpack.c.bf16 %v121_v5, %v120_v3  ;;  %v108_v19 = vld [vmem:[%s6625_s29 + $0xf0] sm:$0xff] }
  0x20   :  { %5097 = vmatpush3.bf16.msra.mxu1 %v5096_v51  ;;  %v73_v12 = vld [vmem:[%s6626_s25 + $0x8] sm:$0xff]  ;;  %v122_v16 = vld [vmem:[%s6625_s29 + $0x160] sm:$0xff]  ;;  %v5106_v18 = vpack.c.bf16 %v139_v9, %v138_v8  ;;  %v109_v20 = vld [vmem:[%s6625_s29 + $0xf8] sm:$0xff] }
  0x21   :  { %5099 = vmatprep.subr.bf16.mxu1 %v5098_v56  ;;  %v91_v15 = vld [vmem:[%s6625_s29 + $0x68] sm:$0xff]  ;;  %245 = vmatprep.mubr.f32.mxu0 %v73_v12  ;;  %v75_v21 = vld [vmem:[%s6626_s25 + $0x18] sm:$0xff]  ;;  %v140_v22 = vld [vmem:[%s6625_s29 + $0x1f0] sm:$0xff]  ;;  %v5078_v26 = vpack.c.bf16 %v109_v20, %v108_v19 }
  0x22   :  { %5069 = vmatpush3.bf16.msra.mxu0 %v5068_v62  ;;  %v123_v17 = vld [vmem:[%s6625_s29 + $0x168] sm:$0xff]  ;;  %v141_v23 = vld [vmem:[%s6625_s29 + $0x1f8] sm:$0xff]  ;;  %315 = vmatprep.mubr.f32.mxu1 %v75_v21  ;;  %v5076_v24 = vpack.c.bf16 %v91_v15, %v90_v11  ;;  %v92_v27 = vld [vmem:[%s6625_s29 + $0x70] sm:$0xff] }
  0x23   :  { %5071 = vmatprep.subr.bf16.mxu0 %v5070_v0  ;;  %v5108_v25 = vpack.c.bf16 %v123_v17, %v122_v16  ;;  %v93_v28 = vld [vmem:[%s6625_s29 + $0x78] sm:$0xff]  ;;  %v124_v29 = vld [vmem:[%s6625_s29 + $0x170] sm:$0xff]  ;;  %v5110_v30 = vpack.c.bf16 %v141_v23, %v140_v22  ;;  %v158_v32 = vld [vmem:[%s6625_s29 + $0x280] sm:$0xff] }
  0x24   :  { %5101 = vmatpush3.bf16.msra.mxu1 %v5100_v63  ;;  %v125_v31 = vld [vmem:[%s6625_s29 + $0x178] sm:$0xff]  ;;  %v159_v33 = vld [vmem:[%s6625_s29 + $0x288] sm:$0xff]  ;;  %v5080_v34 = vpack.c.bf16 %v93_v28, %v92_v27  ;;  %v142_v37 = vld [vmem:[%s6625_s29 + $0x200] sm:$0xff] }
  0x25   :  { %5103 = vmatprep.subr.bf16.mxu1 %v5102_v4  ;;  %v5112_v35 = vpack.c.bf16 %v125_v31, %v124_v29  ;;  %v5114_v36 = vpack.c.bf16 %v159_v33, %v158_v32  ;;  %v143_v38 = vld [vmem:[%s6625_s29 + $0x208] sm:$0xff]  ;;  %v160_v39 = vld [vmem:[%s6625_s29 + $0x290] sm:$0xff]  ;;  %v161_v40 = vld [vmem:[%s6625_s29 + $0x298] sm:$0xff] }
  0x26   :  { %5073 = vmatpush3.bf16.msra.mxu0 %v5072_v10  ;;  %v72_v41 = vld [vmem:[%s6626_s25] sm:$0xff]  ;;  %v5116_v42 = vpack.c.bf16 %v143_v38, %v142_v37  ;;  %v74_v43 = vld [vmem:[%s6626_s25 + $0x10] sm:$0xff]  ;;  %v5118_v44 = vpack.c.bf16 %v161_v40, %v160_v39  ;;  %v145_v46 = vld [vmem:[%s6625_s29 + $0x218] sm:$0xff] }
  0x27   :  { %5075 = vmatprep.subr.bf16.mxu0 %v5074_v14  ;;  %v144_v45 = vld [vmem:[%s6625_s29 + $0x210] sm:$0xff]  ;;  %v162_v47 = vld [vmem:[%s6625_s29 + $0x2a0] sm:$0xff]  ;;  %v163_v48 = vld [vmem:[%s6625_s29 + $0x2a8] sm:$0xff] }
  0x28   :  { %5105 = vmatpush3.bf16.msra.mxu1 %v5104_v13  ;;  %v77_v49 = vld [vmem:[%s6626_s25 + $0x28] sm:$0xff] }
  0x29   :  { %5107 = vmatprep.subr.bf16.mxu1 %v5106_v18 }
  0x2a   :  { %5077 = vmatpush3.bf16.msra.mxu0 %v5076_v24 }
  0x2b   :  { %5079 = vmatprep.subr.bf16.mxu0 %v5078_v26 }
  0x2c   :  { %5109 = vmatpush3.bf16.msra.mxu1 %v5108_v25 }
  0x2d   :  { %5111 = vmatprep.subr.bf16.mxu1 %v5110_v30 }
  0x2e   :  { %5081 = vmatpush3.bf16.msra.mxu0 %v5080_v34 }
  0x2f   :  { %5115 = vmatprep.subr.bf16.mxu0 %v5114_v36 }
  0x30   :  { %5113 = vmatpush3.bf16.msra.mxu1 %v5112_v35 }
  0x31   :  { %29 = vsyncpa [#allocation5], 0  ;;  %246 = vmatmul.mubr.f32.vlgmr.msra.gmra.mrb[0].mxu0 %v72_v41  ;;  %v5120_v50 = vpack.c.bf16 %v145_v46, %v144_v45  ;;  %v5122_v51 = vpack.c.bf16 %v163_v48, %v162_v47  ;;  %v146_v52 = vld [vmem:[%s6625_s29 + $0x220] sm:$0xff]  ;;  %v147_v53 = vld [vmem:[%s6625_s29 + $0x228] sm:$0xff]  ;;  %s6627_s0 = sld [smem:[#allocation10_spill]]  ;;  %v397_v31 = vlaneseq  ;;  %s6628_s23 = sld [smem:[#allocation11_spill]] }
  0x32   :  { %5117 = vmatpush3.bf16.msra.mxu0 %v5116_v42  ;;  %385 = vmatprep.mubr.f32.mxu0 %v77_v49  ;;  %v164_v54 = vld [vmem:[%s6625_s29 + $0x2b0] sm:$0xff]  ;;  %v165_v55 = vld [vmem:[%s6625_s29 + $0x2b8] sm:$0xff]  ;;  %v5124_v56 = vpack.c.bf16 %v147_v53, %v146_v52  ;;  %v166_v60 = vld [vmem:[%s6625_s29 + $0x2c0] sm:$0xff]  ;;  %s6629_s24 = sld [smem:[#allocation12_spill]]  ;;  %vm404_vm0 = vcmask 1040384   ;;  %vm406_vm1 = vcmask 1044480  }
  0x33   :  { %316 = vmatmul.mubr.f32.vlgmr.msra.gmra.mrb[0].mxu1 %v74_v43  ;;  %5119 = vmatprep.subr.bf16.mxu0 %v5118_v44  ;;  %v5126_v57 = vpack.c.bf16 %v165_v55, %v164_v54  ;;  %v148_v58 = vld [vmem:[%s6625_s29 + $0x230] sm:$0xff]  ;;  %v149_v59 = vld [vmem:[%s6625_s29 + $0x238] sm:$0xff]  ;;  %v167_v61 = vld [vmem:[%s6625_s29 + $0x2c8] sm:$0xff]  ;;  %v398_v32 = vshrl.u32 %v397_v31, 7  ;;  %vm408_vm2 = vcmask 1045504   ;;  %vm418_vm3 = vcmask 261120  }
  0x34   :  { %v5128_v62 = vpack.c.bf16 %v149_v59, %v148_v58  ;;  %v5130_v63 = vpack.c.bf16 %v167_v61, %v166_v60  ;;  %v150_v0 = vld [vmem:[%s6625_s29 + $0x240] sm:$0xff]  ;;  %v151_v1 = vld [vmem:[%s6625_s29 + $0x248] sm:$0xff]  ;;  %v168_v2 = vld [vmem:[%s6625_s29 + $0x2d0] sm:$0xff]  ;;  %vm422_vm4 = vcmask 254976   ;;  %s6631_s5 = sld [smem:[#allocation14_spill]]  ;;  %vm5431_vm5 = vmmov 0  }
  0x35   :  { %v169_v3 = vld [vmem:[%s6625_s29 + $0x2d8] sm:$0xff]  ;;  %v5132_v4 = vpack.c.bf16 %v151_v1, %v150_v0  ;;  %v152_v6 = vld [vmem:[%s6625_s29 + $0x250] sm:$0xff]  ;;  %v170_v8 = vld [vmem:[%s6625_s29 + $0x2e0] sm:$0xff]  ;;  %v399_v35 = vsub.s32 0, %v398_v32  ;;  %s5432_s26 = smov 96   ;;  %s5433_s2 = smov 88  }
  0x36   :  { %5121 = vmatpush3.bf16.msra.mxu0 %v5120_v50  ;;  %v5134_v5 = vpack.c.bf16 %v169_v3, %v168_v2  ;;  %v153_v7 = vld [vmem:[%s6625_s29 + $0x258] sm:$0xff]  ;;  %v171_v9 = vld [vmem:[%s6625_s29 + $0x2e8] sm:$0xff]  ;;  %v154_v12 = vld [vmem:[%s6625_s29 + $0x260] sm:$0xff]  ;;  %vm560_vm6 = vcmask 64512   ;;  %vm636_vm7 = vcmask 36864   ;;  %s5434_s27 = smov 64  }
  0x37   :  { %5123 = vmatprep.subr.bf16.mxu0 %v5122_v51  ;;  %v5136_v10 = vpack.c.bf16 %v153_v7, %v152_v6  ;;  %v5138_v11 = vpack.c.bf16 %v171_v9, %v170_v8  ;;  %v155_v13 = vld [vmem:[%s6625_s29 + $0x268] sm:$0xff]  ;;  %v172_v14 = vld [vmem:[%s6625_s29 + $0x2f0] sm:$0xff]  ;;  %v173_v15 = vld [vmem:[%s6625_s29 + $0x2f8] sm:$0xff]  ;;  %s5435_s3 = smov 120   ;;  %vm650_vm8 = vcmask 39936   ;;  %s6608_s28 = smov 56  }
  0x38   :  { %v5140_v16 = vpack.c.bf16 %v155_v13, %v154_v12  ;;  %v5142_v17 = vpack.c.bf16 %v173_v15, %v172_v14  ;;  %v156_v18 = vld [vmem:[%s6625_s29 + $0x270] sm:$0xff]  ;;  %v157_v19 = vld [vmem:[%s6625_s29 + $0x278] sm:$0xff]  ;;  %v76_v21 = vld [vmem:[%s6626_s25 + $0x20] sm:$0xff]  ;;  %s6630_s25 = sld [smem:[#allocation13_spill]]  ;;  %s6606_s30 = smov 112   ;;  %vm1242_vm9 = vcmask 1042432  }
  0x39   :  { %v5144_v20 = vpack.c.bf16 %v157_v19, %v156_v18  ;;  %v4364_v23 = vld [vmem:[%s6627_s0] ss:$0 sm:$0xff]  ;;  %v465_v0 = vld [vmem:[%s6580_s7 + $0x10] sm:$0xff]  ;;  %v466_v2 = vld [vmem:[%s6580_s7 + $0x18] sm:$0xff]  ;;  %s6612_s4 = smov 80   ;;  %s6610_s0 = smov 72  }
  0x3a   :  { %5125 = vmatpush3.bf16.msra.mxu0 %v5124_v56  ;;  %v391_v37 = vld [vmem:[%s6628_s23] sm:$0x1]  ;;  %v5150_v3 = vpack.c.bf16 %v466_v2, %v465_v0  ;;  %s6604_s29 = smov 104   ;;  %s6600_s23 = smov 48   ;;  %vm1237_vm10 = vcmask 130048   ;;  %vm1239_vm11 = vcmask 195584  }
  0x3b   :  { %5127 = vmatprep.subr.bf16.mxu0 %v5126_v57  ;;  %v392_v38 = vld [vmem:[%s6629_s24] sm:$0x1f]  ;;  %v400_v40 = vrot.slane %v391_v37, %v399_v35  ;;  %s6602_s1 = smov 40   ;;  %s5443_s24 = smov 8  }
  0x3c   :  { %v411_v42 = vrot.slane %v392_v38, 3  ;;  %v4366_v13 = vld [vmem:[%s6631_s5] ss:$0 sm:$0xff]  ;;  %s6635_s6 = smov 112  }
  0x3e   :  { %5129 = vmatpush3.bf16.msra.mxu0 %v5128_v62  ;;  %v413_v45 = vsel %vm406_vm1, %v392_v38, %v411_v42  ;;  %v463_v62 = vld [vmem:[%s6580_s7] sm:$0xff] }
  0x3f   :  { %5131 = vmatprep.subr.bf16.mxu0 %v5130_v63  ;;  %v464_v63 = vld [vmem:[%s6580_s7 + $0x8] sm:$0xff] }
  0x40   :  { %v5146_v1 = vpack.c.bf16 %v464_v63, %v463_v62 }
  0x42   :  { %5133 = vmatpush3.bf16.msra.mxu0 %v5132_v4  ;;  %5147 = vmatprep.subr.bf16.mxu1 %v5146_v1 }
  0x43   :  { %5135 = vmatprep.subr.bf16.mxu0 %v5134_v5  ;;  %5149 = vmatpush3.bf16.msra.mxu1 %v5146_v1 }
  0x44   :  { %5151 = vmatprep.subr.bf16.mxu1 %v5150_v3 }
  0x46   :  { %5137 = vmatpush3.bf16.msra.mxu0 %v5136_v10 }
  0x47   :  { %5139 = vmatprep.subr.bf16.mxu0 %v5138_v11  ;;  %5153 = vmatpush3.bf16.msra.mxu1 %v5150_v3  ;;  %v4365_v11 = vld [vmem:[%s6630_s25] ss:$0 sm:$0xff] }
  0x4a   :  { %5141 = vmatpush3.bf16.msra.mxu0 %v5140_v16 }
  0x4b   :  { %5143 = vmatprep.subr.bf16.mxu0 %v5142_v17 }
  0x4e   :  { %5145 = vmatpush3.bf16.msra.mxu0 %v5144_v20  ;;  %v5430_v20 = vmov 0.0  }
  0x4f   :  { %4754 = vmatprep.subr.mxu1 %v5430_v20  ;;  %4794 = vmatprep.subr.mxu0 %v5430_v20 }
  0x51   :  { %386 = vmatmul.mubr.f32.vlgmr.msra.gmra.mrb[2].mxu0 %v76_v21  ;;  %v4367_v21 = vld [vmem:[%s6581_s8] ss:$0 sm:$0xff] }
  0x52   :  { %4796 = vmatprep.mubr.msk.f32.mxu0 %vm5431_vm5, %v5430_v20 }
 0x104   :  { %v4529_v22 = vpop.f32.mrb[0].mxu0 }
 0x105   :  { %v4530_v24 = vpop.f32.mrb[1].mxu0 }
 0x106   :  { %v4564_v25 = vpop.f32.mrb[0].mxu1  ;;  %v4531_v26 = vadd.f32 %v4530_v24, %v4529_v22 }
 0x107   :  { %v4565_v27 = vpop.f32.mrb[1].mxu1 }
 0x108   :  { %v4566_v28 = vadd.f32 %v4565_v27, %v4564_v25  ;;  %v248_v29 = vadd.f32 %v4531_v26, %v4364_v23 }
 0x10a   :  { %v318_v30 = vadd.f32 %v4566_v28, %v248_v29 }
 0x124   :  { %v4599_v33 = vpop.f32.mrb[2].mxu0 }
 0x125   :  { %v4600_v34 = vpop.f32.mrb[3].mxu0 }
 0x126   :  { %v4601_v36 = vadd.f32 %v4600_v34, %v4599_v33 }
 0x128   :  { %v388_v39 = vadd.f32 %v4601_v36, %v318_v30 }
 0x12a   :  { %v394_v41 = vrot.slane %v388_v39, 7  ;;  %v402_v43 = vrot.slane %v388_v39, 6 }
 0x12c   :  { %v405_v44 = vsel %vm404_vm0, %v391_v37, %v394_v41  ;;  %v5887_v50 = vadd.f32 %v411_v42, %v402_v43 }
 0x12d   :  { %v407_v46 = vsel %vm406_vm1, %v405_v44, %v400_v40 }
 0x12e   :  { %v409_v47 = vsel %vm408_vm2, %v407_v46, %v402_v43  ;;  %v423_v51 = vsel %vm422_vm4, %v5887_v50, 0.0 }
 0x12f   :  { %v5883_v48 = vadd.f32 %v413_v45, %v409_v47 }
 0x131   :  { %v419_v49 = vsel %vm418_vm3, %v5883_v48, 0.0 }
 0x132   :  { %420 = vadd.xlane.f32.xlu0 %v419_v49 }
 0x136   :  { %424 = vadd.xlane.f32.xlu0 %v423_v51 }
 0x1bf   :  { %v421_v52 = vpop.xlane.xlu0 %420 }
 0x1c0   :  { %v427_v53 = vmul.f32 0.03125, %v421_v52 }
 0x1c2   :  { %v429_v54 = vsub.f32 %v5883_v48, %v427_v53 }
 0x1c3   :  { %v425_v55 = vpop.xlane.xlu0 %424 }
 0x1c4   :  { %v428_v56 = vmul.f32 0.03125, %v425_v55  ;;  %v431_v57 = vmul.f32 %v429_v54, %v429_v54 }
 0x1c6   :  { %v430_v58 = vsub.f32 %v5887_v50, %v428_v56  ;;  %v433_v59 = vsel %vm418_vm3, %v431_v57, 0.0 }
 0x1c7   :  { %434 = vadd.xlane.f32.xlu1 %v433_v59 }
 0x1c8   :  { %v432_v60 = vmul.f32 %v430_v58, %v430_v58 }
 0x1ca   :  { %v436_v61 = vsel %vm422_vm4, %v432_v60, 0.0 }
 0x1cb   :  { %437 = vadd.xlane.f32.xlu1 %v436_v61 }
 0x254   :  { %v435_v4 = vpop.xlane.xlu1 %434 }
 0x255   :  { %v439_v5 = vmul.f32 0.03125, %v435_v4 }
 0x257   :  { %v441_v6 = vadd.f32 1e-06, %v439_v5 }
 0x258   :  { %v438_v7 = vpop.xlane.xlu1 %437 }
 0x259   :  { %5284 = vrsqrt.f32 %v441_v6  ;;  %v440_v8 = vmul.f32 0.03125, %v438_v7 }
 0x25b   :  { %v442_v9 = vadd.f32 1e-06, %v440_v8 }
 0x25d   :  { %5286 = vrsqrt.f32 %v442_v9 }
 0x263   :  { %v5285_v10 = vpop.eup %5284 }
 0x264   :  { %v445_v12 = vmul.f32 %v5285_v10, %v429_v54 }
 0x266   :  { %v453_v14 = vmul.f32 %v4365_v11, %v445_v12 }
 0x267   :  { %v5287_v15 = vpop.eup %5286 }
 0x268   :  { %v446_v16 = vmul.f32 %v5287_v15, %v430_v58  ;;  %v461_v17 = vadd.f32 %v4366_v13, %v453_v14 }
 0x26a   :  { %v454_v18 = vmul.f32 %v4365_v11, %v446_v16  ;;  %4751 = vmatprep.mubr.msk.f32.mxu1 %vm418_vm3, %v461_v17 }
 0x26c   :  { %v462_v19 = vadd.f32 %v4366_v13, %v454_v18 }
 0x26e   :  { %4752 = vmatmul.mubr.msk.f32.vlgmr.msra.gmra.mrb[2].mxu1 %vm418_vm3, %v462_v19 }
 0x26f   :  { %4756 = vmatprep.mubr.msk.f32.mxu1 %vm5431_vm5, %v5430_v20 }
 0x341   :  { %v4753_v22 = vpop.f32.mrb[2].mxu1 }
 0x342   :  { %v5924_v23 = vadd.f32 %v4753_v22, %v4367_v21  ;;  %v546_v24 = vpop.f32.mrb[3].mxu1 }
 0x343   :  { %v5926_v25 = vadd.f32 %v4367_v21, %v546_v24 }
 0x344   :  { %v1248_v1 = vrot.slane %v5924_v23, 5  ;;  %v556_v9 = vmul.f32 0.35355338, %v5924_v23 }
 0x345   :  { %558 = vrot.lane.b32.xlu0 %v5926_v25, %s5432_s26  ;;  %v5934_v27 = vmul.f32 0.35355338, %v5926_v25  ;;  %v1247_v2 = vrot.slane %v5926_v25, 5 }
 0x346   :  { %v1244_v10 = vrot.slane %v556_v9, 5 }
 0x347   :  { %v5987_v3 = vsel %vm1242_vm9, %v1247_v2, %v1248_v1  ;;  %v1243_v11 = vrot.slane %v5934_v27, 5 }
 0x349   :  { %728 = vrot.lane.b32.xlu0 %v5926_v25, %s5433_s2  ;;  %v1245_v12 = vsel %vm1242_vm9, %v1243_v11, %v1244_v10 }
 0x3b7   :  { %v559_v26 = vpop.permute.xlu0 %558 }
 0x3b8   :  { %4755 = vmatpush3.xpose.msk.msra.mxu1 %vm560_vm6, %v559_v26 }
 0x3b9   :  { %4759 = vmatprep.subr.mxu1 %v5430_v20 }
 0x3bb   :  { %4757 = vmatmul.mubr.msk.f32.vlgmr.msra.gmra.mrb[4].mxu1 %vm560_vm6, %v5934_v27  ;;  %v729_v40 = vpop.permute.xlu0 %728 }
 0x3bc   :  { %4761 = vmatprep.mubr.msk.f32.mxu1 %vm5431_vm5, %v5430_v20 }
 0x48e   :  { %v632_v28 = vpop.f32.mrb[4].mxu1 }
 0x48f   :  { %v4758_v29 = vpop.f32.mrb[5].mxu1  ;;  %v637_v30 = vsel %vm636_vm7, %v632_v28, -inf }
 0x490   :  { %638 = vmax.xlane.f32.xlu1 %v637_v30 }
 0x4a1   :  { %648 = vrot.lane.b32.xlu1 %v5926_v25, %s5434_s27 }
 0x51d   :  { %v639_v31 = vpop.xlane.xlu1 %638 }
 0x51e   :  { %v640_v32 = vsub.f32 %v632_v28, %v639_v31 }
 0x520   :  { %v641_v33 = vmul.f32 1.442695, %v640_v32 }
 0x521   :  { %v649_v34 = vpop.permute.xlu1 %648 }
 0x522   :  { %5288 = vpow2.f32 %v641_v33  ;;  %4760 = vmatpush3.msk.msra.mxu1 %vm406_vm1, %v649_v34 }
 0x523   :  { %4764 = vmatprep.subr.mxu1 %v5430_v20 }
 0x52c   :  { %v5289_v35 = vpop.eup %5288 }
 0x52d   :  { %v643_v36 = vsel %vm636_vm7, %v5289_v35, 0.0 }
 0x52e   :  { %644 = vadd.xlane.f32.xlu1 %v643_v36 }
 0x53f   :  { %726 = vrot.lane.b32.xlu1 %v5934_v27, %s5435_s3 }
 0x5bb   :  { %v645_v37 = vpop.xlane.xlu1 %644 }
 0x5bc   :  { %5290 = vrcp.f32 %v645_v37 }
 0x5bf   :  { %v727_v41 = vpop.permute.xlu1 %726 }
 0x5c6   :  { %v5291_v38 = vpop.eup %5290 }
 0x5c7   :  { %v647_v39 = vmul.f32 %v5291_v38, %v5289_v35 }
 0x5c9   :  { %4762 = vmatmul.mubr.msk.f32.vlgmr.msra.gmra.mrb[6].mxu1 %vm650_vm8, %v647_v39 }
 0x5ca   :  { %4765 = vmatpush3.xpose.msk.msra.mxu1 %vm560_vm6, %v729_v40  ;;  %4766 = vmatprep.mubr.msk.f32.mxu1 %vm5431_vm5, %v5430_v20 }
 0x5cb   :  { %4769 = vmatprep.subr.mxu1 %v5430_v20 }
 0x5cd   :  { %4767 = vmatmul.mubr.msk.f32.vlgmr.msra.gmra.mrb[8].mxu1 %vm560_vm6, %v727_v41 }
 0x5ce   :  { %4771 = vmatprep.mubr.msk.f32.mxu1 %vm5431_vm5, %v5430_v20 }
 0x69c   :  { %v5957_v42 = vpop.f32.mrb[6].mxu1 }
 0x69d   :  { %v4763_v43 = vpop.f32.mrb[7].mxu1 }
 0x6a0   :  { %v800_v44 = vpop.f32.mrb[8].mxu1 }
 0x6a1   :  { %v4768_v45 = vpop.f32.mrb[9].mxu1  ;;  %v804_v46 = vsel %vm636_vm7, %v800_v44, -inf }
 0x6a2   :  { %805 = vmax.xlane.f32.xlu0 %v804_v46 }
 0x6b8   :  { %815 = vrot.lane.b32.xlu0 %v5926_v25, %s6608_s28 }
 0x6bc   :  { %892 = vrot.lane.b32.xlu0 %v5934_v27, %s6606_s30 }
 0x72f   :  { %v806_v47 = vpop.xlane.xlu0 %805 }
 0x730   :  { %v807_v49 = vsub.f32 %v800_v44, %v806_v47 }
 0x732   :  { %v808_v51 = vmul.f32 1.442695, %v807_v49 }
 0x733   :  { %v816_v52 = vpop.permute.xlu0 %815 }
 0x734   :  { %5292 = vpow2.f32 %v808_v51  ;;  %4770 = vmatpush3.msk.msra.mxu1 %vm406_vm1, %v816_v52 }
 0x735   :  { %4774 = vmatprep.subr.mxu1 %v5430_v20 }
 0x737   :  { %v893_v59 = vpop.permute.xlu0 %892 }
 0x73e   :  { %v5293_v53 = vpop.eup %5292 }
 0x73f   :  { %v810_v54 = vsel %vm636_vm7, %v5293_v53, 0.0 }
 0x740   :  { %811 = vadd.xlane.f32.xlu1 %v810_v54 }
 0x751   :  { %894 = vrot.lane.b32.xlu1 %v5926_v25, %s6612_s4 }
 0x7cd   :  { %v812_v55 = vpop.xlane.xlu1 %811 }
 0x7ce   :  { %5294 = vrcp.f32 %v812_v55 }
 0x7d1   :  { %v895_v58 = vpop.permute.xlu1 %894 }
 0x7d8   :  { %v5295_v56 = vpop.eup %5294 }
 0x7d9   :  { %v814_v57 = vmul.f32 %v5295_v56, %v5293_v53 }
 0x7db   :  { %4772 = vmatmul.mubr.msk.f32.vlgmr.msra.gmra.mrb[10].mxu1 %vm650_vm8, %v814_v57 }
 0x7dc   :  { %4775 = vmatpush3.xpose.msk.msra.mxu1 %vm560_vm6, %v895_v58  ;;  %4776 = vmatprep.mubr.msk.f32.mxu1 %vm5431_vm5, %v5430_v20 }
 0x7dd   :  { %4779 = vmatprep.subr.mxu1 %v5430_v20 }
 0x7df   :  { %4777 = vmatmul.mubr.msk.f32.vlgmr.msra.gmra.mrb[12].mxu1 %vm560_vm6, %v893_v59 }
 0x7e0   :  { %4781 = vmatprep.mubr.msk.f32.mxu1 %vm5431_vm5, %v5430_v20 }
 0x8ae   :  { %v5977_v60 = vpop.f32.mrb[10].mxu1 }
 0x8af   :  { %v4773_v61 = vpop.f32.mrb[11].mxu1 }
 0x8b2   :  { %v966_v62 = vpop.f32.mrb[12].mxu1 }
 0x8b3   :  { %v4778_v63 = vpop.f32.mrb[13].mxu1  ;;  %v970_v0 = vsel %vm636_vm7, %v966_v62, -inf }
 0x8b4   :  { %971 = vmax.xlane.f32.xlu1 %v970_v0 }
 0x8c5   :  { %1060 = vrot.lane.b32.xlu1 %v5926_v25, %s6610_s0 }
 0x8c9   :  { %1058 = vrot.lane.b32.xlu1 %v5934_v27, %s6604_s29 }
 0x8cd   :  { %1416 = vrot.lane.b32.xlu1 %v5987_v3, %s5433_s2 }
 0x8d1   :  { %1582 = vrot.lane.b32.xlu1 %v5987_v3, %s6612_s4 }
 0x8d5   :  { %1748 = vrot.lane.b32.xlu1 %v5987_v3, %s6610_s0 }
 0x941   :  { %v972_v4 = vpop.xlane.xlu1 %971 }
 0x942   :  { %v973_v5 = vsub.f32 %v966_v62, %v972_v4 }
 0x944   :  { %v974_v6 = vmul.f32 1.442695, %v973_v5 }
 0x945   :  { %v1061_v13 = vpop.permute.xlu1 %1060 }
 0x946   :  { %5296 = vpow2.f32 %v974_v6 }
 0x949   :  { %v1059_v15 = vpop.permute.xlu1 %1058 }
 0x94d   :  { %v1417_v17 = vpop.permute.xlu1 %1416 }
 0x950   :  { %v5297_v7 = vpop.eup %5296 }
 0x951   :  { %v976_v8 = vsel %vm636_vm7, %v5297_v7, 0.0  ;;  %v1583_v23 = vpop.permute.xlu1 %1582 }
 0x952   :  { %977 = vadd.xlane.f32.xlu0 %v976_v8 }
 0x955   :  { %v1749_v26 = vpop.permute.xlu1 %1748 }
 0x968   :  { %981 = vrot.lane.b32.xlu0 %v5926_v25, %s6600_s23 }
 0x96c   :  { %1250 = vrot.lane.b32.xlu0 %v5987_v3, %s5432_s26 }
 0x970   :  { %1414 = vrot.lane.b32.xlu0 %v1245_v12, %s5435_s3 }
 0x974   :  { %1580 = vrot.lane.b32.xlu0 %v1245_v12, %s6606_s30  ;;  %s6636_s30 = smov 104  }
 0x978   :  { %1746 = vrot.lane.b32.xlu0 %v1245_v12, %s6604_s29  ;;  %s6616_s29 = smov 16  }
 0x9df   :  { %v978_v14 = vpop.xlane.xlu0 %977 }
 0x9e0   :  { %5298 = vrcp.f32 %v978_v14 }
 0x9e3   :  { %v982_v16 = vpop.permute.xlu0 %981 }
 0x9e4   :  { %4780 = vmatpush3.msk.msra.mxu1 %vm406_vm1, %v982_v16 }
 0x9e5   :  { %4784 = vmatprep.subr.mxu1 %v5430_v20 }
 0x9e7   :  { %v1251_v18 = vpop.permute.xlu0 %1250 }
 0x9e8   :  { %4795 = vmatpush3.xpose.msk.msra.mxu0 %vm560_vm6, %v1251_v18 }
 0x9e9   :  { %4804 = vmatprep.subr.mxu0 %v5430_v20 }
 0x9ea   :  { %v5299_v19 = vpop.eup %5298 }
 0x9eb   :  { %v980_v21 = vmul.f32 %v5299_v19, %v5297_v7  ;;  %4797 = vmatmul.mubr.msk.f32.vlgmr.msra.gmra.mrb[4].mxu0 %vm560_vm6, %v1245_v12  ;;  %v1415_v22 = vpop.permute.xlu0 %1414 }
 0x9ec   :  { %4805 = vmatpush3.xpose.msk.msra.mxu0 %vm560_vm6, %v1417_v17  ;;  %4806 = vmatprep.mubr.msk.f32.mxu0 %vm5431_vm5, %v5430_v20 }
 0x9ed   :  { %4782 = vmatmul.mubr.msk.f32.vlgmr.msra.gmra.mrb[14].mxu1 %vm650_vm8, %v980_v21  ;;  %4814 = vmatprep.subr.mxu0 %v5430_v20 }
 0x9ee   :  { %4785 = vmatpush3.xpose.msk.msra.mxu1 %vm560_vm6, %v1061_v13  ;;  %4786 = vmatprep.mubr.msk.f32.mxu1 %vm5431_vm5, %v5430_v20 }
 0x9ef   :  { %4807 = vmatmul.mubr.msk.f32.vlgmr.msra.gmra.mrb[6].mxu0 %vm560_vm6, %v1415_v22  ;;  %4789 = vmatprep.subr.mxu1 %v5430_v20  ;;  %v1581_v24 = vpop.permute.xlu0 %1580 }
 0x9f0   :  { %4815 = vmatpush3.xpose.msk.msra.mxu0 %vm560_vm6, %v1583_v23  ;;  %4816 = vmatprep.mubr.msk.f32.mxu0 %vm5431_vm5, %v5430_v20 }
 0x9f1   :  { %4787 = vmatmul.mubr.msk.f32.vlgmr.msra.gmra.mrb[16].mxu1 %vm560_vm6, %v1059_v15  ;;  %4824 = vmatprep.subr.mxu0 %v5430_v20 }
 0x9f2   :  { %4791 = vmatprep.mubr.msk.f32.mxu1 %vm5431_vm5, %v5430_v20 }
 0x9f3   :  { %4817 = vmatmul.mubr.msk.f32.vlgmr.msra.gmra.mrb[8].mxu0 %vm560_vm6, %v1581_v24  ;;  %v1747_v27 = vpop.permute.xlu0 %1746 }
 0x9f4   :  { %4825 = vmatpush3.xpose.msk.msra.mxu0 %vm560_vm6, %v1749_v26  ;;  %4826 = vmatprep.mubr.msk.f32.mxu0 %vm5431_vm5, %v5430_v20 }
 0x9f7   :  { %4827 = vmatmul.mubr.msk.f32.vlgmr.msra.gmra.mrb[10].mxu0 %vm560_vm6, %v1747_v27 }
 0xabe   :  { %v1322_v28 = vpop.f32.mrb[4].mxu0 }
 0xabf   :  { %v4798_v29 = vpop.f32.mrb[5].mxu0  ;;  %v1326_v30 = vsel %vm636_vm7, %v1322_v28, -inf }
 0xac0   :  { %1327 = vmax.xlane.f32.xlu0 %v1326_v30  ;;  %v6034_v31 = vpop.f32.mrb[14].mxu1 }
 0xac1   :  { %v4783_v32 = vpop.f32.mrb[15].mxu1 }
 0xac2   :  { %v1488_v33 = vpop.f32.mrb[6].mxu0  ;;  %v1931_v32 = vld [vmem:[%s6582_s9] sm:$0xff] }
 0xac3   :  { %v4808_v34 = vpop.f32.mrb[7].mxu0  ;;  %v1492_v35 = vsel %vm636_vm7, %v1488_v33, -inf }
 0xac4   :  { %1493 = vmax.xlane.f32.xlu0 %v1492_v35  ;;  %v1132_v36 = vpop.f32.mrb[16].mxu1 }
 0xac5   :  { %v4788_v37 = vpop.f32.mrb[17].mxu1  ;;  %v1136_v38 = vsel %vm636_vm7, %v1132_v36, -inf }
 0xac6   :  { %v1654_v39 = vpop.f32.mrb[8].mxu0  ;;  %1137 = vmax.xlane.f32.xlu1 %v1136_v38  ;;  %v1933_v38 = vld [vmem:[%s6582_s9 + $0x10] sm:$0xff] }
 0xac7   :  { %v4818_v40 = vpop.f32.mrb[9].mxu0  ;;  %v1658_v41 = vsel %vm636_vm7, %v1654_v39, -inf }
 0xac8   :  { %1659 = vmax.xlane.f32.xlu0 %v1658_v41 }
 0xaca   :  { %v1820_v43 = vpop.f32.mrb[10].mxu0 }
 0xacb   :  { %v4828_v44 = vpop.f32.mrb[11].mxu0  ;;  %v1824_v45 = vsel %vm636_vm7, %v1820_v43, -inf }
 0xacc   :  { %1825 = vmax.xlane.f32.xlu1 %v1824_v45 }
 0xb4d   :  { %v1328_v46 = vpop.xlane.xlu0 %1327 }
 0xb4e   :  { %v1329_v47 = vsub.f32 %v1322_v28, %v1328_v46 }
 0xb50   :  { %v1330_v49 = vmul.f32 1.442695, %v1329_v47 }
 0xb51   :  { %v1494_v51 = vpop.xlane.xlu0 %1493 }
 0xb52   :  { %5300 = vpow2.f32 %v1330_v49  ;;  %v1495_v52 = vsub.f32 %v1488_v33, %v1494_v51  ;;  %v1932_v33 = vld [vmem:[%s6582_s9 + $0x8] sm:$0xff] }
 0xb53   :  { %v1138_v54 = vpop.xlane.xlu1 %1137  ;;  %v5154_v35 = vpack.c.bf16 %v1932_v33, %v1931_v32  ;;  %v4406_v32 = vld [vmem:[%s6585_s12] ss:$0 sm:$0xff] }
 0xb54   :  { %v1496_v53 = vmul.f32 1.442695, %v1495_v52  ;;  %v1139_v57 = vsub.f32 %v1132_v36, %v1138_v54 }
 0xb55   :  { %v1660_v55 = vpop.xlane.xlu0 %1659 }
 0xb56   :  { %5302 = vpow2.f32 %v1496_v53  ;;  %v1661_v56 = vsub.f32 %v1654_v39, %v1660_v55  ;;  %v1140_v63 = vmul.f32 1.442695, %v1139_v57  ;;  %v1934_v39 = vld [vmem:[%s6582_s9 + $0x18] sm:$0xff] }
 0xb57   :  { %v5158_v40 = vpack.c.bf16 %v1934_v39, %v1933_v38  ;;  %v2214_v39 = vld [vmem:[%s6588_s15] sm:$0xff] }
 0xb58   :  { %v1662_v58 = vmul.f32 1.442695, %v1661_v56 }
 0xb59   :  { %v1826_v59 = vpop.xlane.xlu1 %1825 }
 0xb5a   :  { %5304 = vpow2.f32 %v1662_v58  ;;  %v1827_v61 = vsub.f32 %v1820_v43, %v1826_v59 }
 0xb5c   :  { %v5301_v62 = vpop.eup %5300  ;;  %v1828_v0 = vmul.f32 1.442695, %v1827_v61 }
 0xb5d   :  { %v1332_v1 = vsel %vm636_vm7, %v5301_v62, 0.0 }
 0xb5e   :  { %5306 = vpow2.f32 %v1828_v0  ;;  %1333 = vadd.xlane.f32.xlu1 %v1332_v1  ;;  %v4402_v0 = vld [vmem:[%s6583_s10] ss:$0 sm:$0xff] }
 0xb5f   :  { %5308 = vpow2.f32 %v1140_v63 }
 0xb60   :  { %v5303_v2 = vpop.eup %5302 }
 0xb61   :  { %v1498_v4 = vsel %vm636_vm7, %v5303_v2, 0.0 }
 0xb62   :  { %1499 = vadd.xlane.f32.xlu0 %v1498_v4 }
 0xb64   :  { %v5305_v5 = vpop.eup %5304 }
 0xb65   :  { %v1664_v6 = vsel %vm636_vm7, %v5305_v5, 0.0 }
 0xb66   :  { %1665 = vadd.xlane.f32.xlu1 %v1664_v6 }
 0xb68   :  { %v5307_v7 = vpop.eup %5306 }
 0xb69   :  { %v1830_v8 = vsel %vm636_vm7, %v5307_v7, 0.0  ;;  %v5309_v9 = vpop.eup %5308 }
 0xb6a   :  { %1831 = vadd.xlane.f32.xlu0 %v1830_v8  ;;  %v1142_v10 = vsel %vm636_vm7, %v5309_v9, 0.0 }
 0xb6e   :  { %1143 = vadd.xlane.f32.xlu0 %v1142_v10 }
 0xb77   :  { %1147 = vrot.lane.b32.xlu1 %v5926_v25, %s6602_s1 }
 0xb7b   :  { %1503 = vrot.lane.b32.xlu1 %v5987_v3, %s6608_s28  ;;  %s6614_s28 = smov 24  }
 0xb7f   :  { %1669 = vrot.lane.b32.xlu1 %v5987_v3, %s6600_s23 }
 0xb83   :  { %1835 = vrot.lane.b32.xlu1 %v5987_v3, %s6602_s1 }
 0xb84   :  { %1337 = vrot.lane.b32.xlu0 %v5987_v3, %s5434_s27 }
 0xb88   :  { %1225 = vrot.lane.b32.xlu0 %v5977_v60, %s5443_s24 }
 0xbeb   :  { %v1334_v11 = vpop.xlane.xlu1 %1333 }
 0xbef   :  { %v1500_v12 = vpop.xlane.xlu0 %1499 }
 0xbf3   :  { %v1666_v13 = vpop.xlane.xlu1 %1665 }
 0xbf7   :  { %v1832_v25 = vpop.xlane.xlu0 %1831  ;;  %v1148_v14 = vpop.permute.xlu1 %1147 }
 0xbf8   :  { %4790 = vmatpush3.msk.msra.mxu1 %vm406_vm1, %v1148_v14 }
 0xbf9   :  { %4799 = vmatprep.subr.mxu1 %v5430_v20 }
 0xbfb   :  { %v1144_v15 = vpop.xlane.xlu0 %1143  ;;  %v1504_v18 = vpop.permute.xlu1 %1503 }
 0xbfc   :  { %5310 = vrcp.f32 %v1144_v15 }
 0xbfd   :  { %5312 = vrcp.f32 %v1334_v11 }
 0xbfe   :  { %5314 = vrcp.f32 %v1500_v12 }
 0xbff   :  { %5316 = vrcp.f32 %v1666_v13  ;;  %v1338_v19 = vpop.permute.xlu0 %1337  ;;  %v1670_v23 = vpop.permute.xlu1 %1669 }
 0xc00   :  { %5318 = vrcp.f32 %v1832_v25 }
 0xc03   :  { %v1836_v28 = vpop.permute.xlu1 %1835  ;;  %v1226_v49 = vpop.permute.xlu0 %1225 }
 0xc04   :  { %v1236_v57 = vsel %vm560_vm6, %v5957_v42, %v1226_v49 }
 0xc06   :  { %v5311_v16 = vpop.eup %5310 }
 0xc07   :  { %v1146_v3 = vmul.f32 %v5311_v16, %v5309_v9  ;;  %v5313_v17 = vpop.eup %5312  ;;  %v2068_v16 = vld [vmem:[%s6586_s13] sm:$0xff] }
 0xc08   :  { %v1336_v60 = vmul.f32 %v5313_v17, %v5301_v62  ;;  %v5315_v21 = vpop.eup %5314 }
 0xc09   :  { %4792 = vmatmul.mubr.msk.f32.vlgmr.msra.gmra.mrb[18].mxu1 %vm650_vm8, %v1146_v3  ;;  %v1502_v22 = vmul.f32 %v5315_v21, %v5303_v2  ;;  %v5317_v24 = vpop.eup %5316  ;;  %v2069_v3 = vld [vmem:[%s6586_s13 + $0x8] sm:$0xff] }
 0xc0a   :  { %4800 = vmatpush3.msk.msra.mxu1 %vm406_vm1, %v1338_v19  ;;  %4801 = vmatprep.mubr.msk.f32.mxu1 %vm5431_vm5, %v5430_v20  ;;  %v1668_v26 = vmul.f32 %v5317_v24, %v5305_v5  ;;  %v5319_v27 = vpop.eup %5318  ;;  %v5162_v17 = vpack.c.bf16 %v2069_v3, %v2068_v16  ;;  %v2071_v19 = vld [vmem:[%s6586_s13 + $0x18] sm:$0xff] }
 0xc0b   :  { %4809 = vmatprep.subr.mxu1 %v5430_v20  ;;  %v1834_v29 = vmul.f32 %v5319_v27, %v5307_v7 }
 0xc0d   :  { %4802 = vmatmul.mubr.msk.f32.vlgmr.msra.gmra.mrb[20].mxu1 %vm650_vm8, %v1336_v60 }
 0xc0e   :  { %4810 = vmatpush3.msk.msra.mxu1 %vm406_vm1, %v1504_v18  ;;  %4811 = vmatprep.mubr.msk.f32.mxu1 %vm5431_vm5, %v5430_v20  ;;  %v2070_v18 = vld [vmem:[%s6586_s13 + $0x10] sm:$0xff] }
 0xc0f   :  { %4819 = vmatprep.subr.mxu1 %v5430_v20  ;;  %v5166_v60 = vpack.c.bf16 %v2071_v19, %v2070_v18 }
 0xc11   :  { %4812 = vmatmul.mubr.msk.f32.vlgmr.msra.gmra.mrb[22].mxu1 %vm650_vm8, %v1502_v22 }
 0xc12   :  { %4820 = vmatpush3.msk.msra.mxu1 %vm406_vm1, %v1670_v23  ;;  %4821 = vmatprep.mubr.msk.f32.mxu1 %vm5431_vm5, %v5430_v20 }
 0xc13   :  { %4829 = vmatprep.subr.mxu1 %v5430_v20 }
 0xc15   :  { %4822 = vmatmul.mubr.msk.f32.vlgmr.msra.gmra.mrb[24].mxu1 %vm650_vm8, %v1668_v26 }
 0xc16   :  { %4830 = vmatpush3.msk.msra.mxu1 %vm406_vm1, %v1836_v28  ;;  %4831 = vmatprep.mubr.msk.f32.mxu1 %vm5431_vm5, %v5430_v20 }
 0xc17   :  { %5155 = vmatprep.subr.bf16.mxu1 %v5154_v35 }
 0xc19   :  { %4832 = vmatmul.mubr.msk.f32.vlgmr.msra.gmra.mrb[26].mxu1 %vm650_vm8, %v1834_v29  ;;  %v4405_v29 = vld [vmem:[%s6584_s11] ss:$0 sm:$0xff] }
 0xc1a   :  { %5157 = vmatpush3.bf16.msra.mxu1 %v5154_v35 }
 0xc1b   :  { %5159 = vmatprep.subr.bf16.mxu1 %v5158_v40 }
 0xc1e   :  { %5161 = vmatpush3.bf16.msra.mxu1 %v5158_v40  ;;  %v2215_v40 = vld [vmem:[%s6588_s15 + $0x8] sm:$0xff] }
 0xc1f   :  { %5163 = vmatprep.subr.bf16.mxu1 %v5162_v17 }
 0xcdc   :  { %v1220_v30 = vpop.f32.mrb[18].mxu1 }
 0xcdd   :  { %v4793_v34 = vpop.f32.mrb[19].mxu1 }
 0xce0   :  { %v1410_v36 = vpop.f32.mrb[20].mxu1 }
 0xce1   :  { %v4803_v37 = vpop.f32.mrb[21].mxu1 }
 0xce4   :  { %v1576_v41 = vpop.f32.mrb[22].mxu1 }
 0xce5   :  { %1913 = vrot.lane.b32.xlu0 %v1576_v41, %s5443_s24  ;;  %v4813_v43 = vpop.f32.mrb[23].mxu1  ;;  %v5170_v41 = vpack.c.bf16 %v2215_v40, %v2214_v39 }
 0xce6   :  { %v2216_v43 = vld [vmem:[%s6588_s15 + $0x10] sm:$0xff] }
 0xce7   :  { %5171 = vmatprep.subr.bf16.mxu0 %v5170_v41 }
 0xce8   :  { %v1742_v44 = vpop.f32.mrb[24].mxu1  ;;  %5173 = vmatpush3.bf16.msra.mxu0 %v5170_v41 }
 0xce9   :  { %1229 = vrot.lane.b32.xlu0 %v6034_v31, %s6616_s29  ;;  %1917 = vrot.lane.b32.xlu1 %v1742_v44, %s6616_s29  ;;  %v4823_v45 = vpop.f32.mrb[25].mxu1  ;;  %v2217_v44 = vld [vmem:[%s6588_s15 + $0x18] sm:$0xff] }
 0xcea   :  { %v5174_v45 = vpack.c.bf16 %v2217_v44, %v2216_v43 }
 0xcec   :  { %v1908_v46 = vpop.f32.mrb[26].mxu1  ;;  %5175 = vmatprep.subr.bf16.mxu0 %v5174_v45 }
 0xced   :  { %1921 = vrot.lane.b32.xlu1 %v1908_v46, %s6614_s28  ;;  %v4833_v47 = vpop.f32.mrb[27].mxu1  ;;  %5177 = vmatpush3.bf16.msra.mxu0 %v5174_v45  ;;  %v2218_v46 = vld [vmem:[%s6588_s15 + $0x20] sm:$0xff] }
 0xcee   :  { %v2219_v47 = vld [vmem:[%s6588_s15 + $0x28] sm:$0xff] }
 0xcef   :  { %v5178_v49 = vpack.c.bf16 %v2219_v47, %v2218_v46  ;;  %v5446_v47 = vmov -1.0  }
 0xcf1   :  { %1233 = vrot.lane.b32.xlu1 %v1220_v30, %s6614_s28  ;;  %5179 = vmatprep.subr.bf16.mxu0 %v5178_v49  ;;  %s6634_s28 = smov 56  }
 0xcf2   :  { %5181 = vmatpush3.bf16.msra.mxu0 %v5178_v49 }
 0xd57   :  { %v1914_v51 = vpop.permute.xlu0 %1913 }
 0xd58   :  { %v1924_v53 = vsel %vm560_vm6, %v1410_v36, %v1914_v51  ;;  %v2220_v51 = vld [vmem:[%s6588_s15 + $0x30] sm:$0xff] }
 0xd5b   :  { %v1918_v52 = vpop.permute.xlu1 %1917  ;;  %v1230_v55 = vpop.permute.xlu0 %1229 }
 0xd5c   :  { %v1925_v54 = vsel %vm1237_vm10, %v1924_v53, %v1918_v52  ;;  %v1238_v58 = vsel %vm1237_vm10, %v1236_v57, %v1230_v55  ;;  %v2221_v52 = vld [vmem:[%s6588_s15 + $0x38] sm:$0xff] }
 0xd5d   :  { %v5182_v53 = vpack.c.bf16 %v2221_v52, %v2220_v51  ;;  %v2225_v57 = vld [vmem:[%s6588_s15 + $0x58] sm:$0xff] }
 0xd5f   :  { %v1922_v31 = vpop.permute.xlu1 %1921  ;;  %5183 = vmatprep.subr.bf16.mxu0 %v5182_v53 }
 0xd60   :  { %v1926_v56 = vsel %vm1239_vm11, %v1925_v54, %v1922_v31  ;;  %5185 = vmatpush3.bf16.msra.mxu0 %v5182_v53  ;;  %v2222_v54 = vld [vmem:[%s6588_s15 + $0x40] sm:$0xff]  ;;  %v2223_v31 = vld [vmem:[%s6588_s15 + $0x48] sm:$0xff] }
 0xd61   :  { %v1928_v59 = vrot.slane %v1926_v56, 3  ;;  %v5186_v55 = vpack.c.bf16 %v2223_v31, %v2222_v54  ;;  %v2224_v56 = vld [vmem:[%s6588_s15 + $0x50] sm:$0xff] }
 0xd63   :  { %v1234_v61 = vpop.permute.xlu1 %1233  ;;  %5187 = vmatprep.subr.bf16.mxu0 %v5186_v55 }
 0xd64   :  { %v1240_v62 = vsel %vm1239_vm11, %v1238_v58, %v1234_v61  ;;  %5189 = vmatpush3.bf16.msra.mxu0 %v5186_v55  ;;  %v5190_v58 = vpack.c.bf16 %v2225_v57, %v2224_v56  ;;  %v2227_v61 = vld [vmem:[%s6588_s15 + $0x68] sm:$0xff] }
 0xd65   :  { %v1930_v63 = vsel %vm406_vm1, %v1240_v62, %v1928_v59 }
 0xd66   :  { %4842 = vmatprep.mubr.msk.f32.mxu1 %vm418_vm3, %v1930_v63  ;;  %5191 = vmatprep.subr.bf16.mxu0 %v5190_v58  ;;  %v2228_v63 = vld [vmem:[%s6588_s15 + $0x70] sm:$0xff] }
 0xd67   :  { %4843 = vmatmul.mubr.msk.f32.vlgmr.msra.gmra.mrb[28].mxu1 %vm418_vm3, %v1928_v59  ;;  %v2226_v59 = vld [vmem:[%s6588_s15 + $0x60] sm:$0xff] }
 0xd68   :  { %5165 = vmatpush3.bf16.msra.mxu1 %v5162_v17  ;;  %5193 = vmatpush3.bf16.msra.mxu0 %v5190_v58  ;;  %v5194_v62 = vpack.c.bf16 %v2227_v61, %v2226_v59 }
 0xd69   :  { %5167 = vmatprep.subr.bf16.mxu1 %v5166_v60 }
 0xd6a   :  { %5195 = vmatprep.subr.bf16.mxu0 %v5194_v62 }
 0xd6c   :  { %5169 = vmatpush3.bf16.msra.mxu1 %v5166_v60  ;;  %5197 = vmatpush3.bf16.msra.mxu0 %v5194_v62  ;;  %v4410_v62 = vld [vmem:[%s6589_s16] ss:$0 sm:$0xff] }
 0xe3a   :  { %v4844_v1 = vpop.f32.mrb[28].mxu1 }
 0xe3b   :  { %v2019_v2 = vadd.f32 %v4844_v1, %v4402_v0  ;;  %v2013_v4 = vpop.f32.mrb[29].mxu1 }
 0xe3c   :  { %v2014_v42 = vadd.f32 %v4402_v0, %v2013_v4  ;;  %v2229_v0 = vld [vmem:[%s6588_s15 + $0x78] sm:$0xff] }
 0xe3d   :  { %v6111_v5 = vadd.f32 %v2019_v2, %v5887_v50  ;;  %v5198_v1 = vpack.c.bf16 %v2229_v0, %v2228_v63  ;;  %v4407_v2 = vld [vmem:[%s6587_s14] ss:$0 sm:$0xff] }
 0xe3e   :  { %v6114_v6 = vadd.f32 %v2014_v42, %v5883_v48 }
 0xe3f   :  { %v2029_v7 = vsel %vm422_vm4, %v6111_v5, 0.0  ;;  %5199 = vmatprep.subr.bf16.mxu0 %v5198_v1 }
 0xe40   :  { %2030 = vadd.xlane.f32.xlu1 %v2029_v7  ;;  %v2026_v8 = vsel %vm418_vm3, %v6114_v6, 0.0  ;;  %5201 = vmatpush3.bf16.msra.mxu0 %v5198_v1 }
 0xe41   :  { %2027 = vadd.xlane.f32.xlu0 %v2026_v8  ;;  %4932 = vmatprep.subr.mxu0 %v5430_v20 }
 0xecd   :  { %v2031_v9 = vpop.xlane.xlu1 %2030 }
 0xece   :  { %v2033_v10 = vmul.f32 0.03125, %v2031_v9  ;;  %v2028_v11 = vpop.xlane.xlu0 %2027 }
 0xecf   :  { %v2032_v12 = vmul.f32 0.03125, %v2028_v11 }
 0xed0   :  { %v2035_v13 = vsub.f32 %v6111_v5, %v2033_v10 }
 0xed1   :  { %v2034_v50 = vsub.f32 %v6114_v6, %v2032_v12 }
 0xed2   :  { %v2037_v14 = vmul.f32 %v2035_v13, %v2035_v13 }
 0xed3   :  { %v2036_v25 = vmul.f32 %v2034_v50, %v2034_v50 }
 0xed4   :  { %v2041_v15 = vsel %vm422_vm4, %v2037_v14, 0.0 }
 0xed5   :  { %v2038_v48 = vsel %vm418_vm3, %v2036_v25, 0.0 }
 0xed6   :  { %2039 = vadd.xlane.f32.xlu0 %v2038_v48 }
 0xeda   :  { %2042 = vadd.xlane.f32.xlu0 %v2041_v15 }
 0xf63   :  { %v2040_v21 = vpop.xlane.xlu0 %2039 }
 0xf64   :  { %v2044_v22 = vmul.f32 0.03125, %v2040_v21 }
 0xf66   :  { %v2046_v23 = vadd.f32 1e-06, %v2044_v22 }
 0xf67   :  { %v2043_v24 = vpop.xlane.xlu0 %2042 }
 0xf68   :  { %5320 = vrsqrt.f32 %v2046_v23  ;;  %v2045_v26 = vmul.f32 0.03125, %v2043_v24 }
 0xf6a   :  { %v2047_v27 = vadd.f32 1e-06, %v2045_v26 }
 0xf6c   :  { %5322 = vrsqrt.f32 %v2047_v27 }
 0xf72   :  { %v5321_v28 = vpop.eup %5320 }
 0xf73   :  { %v2050_v30 = vmul.f32 %v5321_v28, %v2034_v50 }
 0xf75   :  { %v2058_v33 = vmul.f32 %v4405_v29, %v2050_v30 }
 0xf76   :  { %v5323_v34 = vpop.eup %5322 }
 0xf77   :  { %v2051_v35 = vmul.f32 %v5323_v34, %v2035_v13  ;;  %v2066_v36 = vadd.f32 %v4406_v32, %v2058_v33 }
 0xf79   :  { %v2059_v37 = vmul.f32 %v4405_v29, %v2051_v35  ;;  %4853 = vmatprep.mubr.msk.f32.mxu1 %vm418_vm3, %v2066_v36 }
 0xf7b   :  { %v2067_v38 = vadd.f32 %v4406_v32, %v2059_v37 }
 0xf7d   :  { %4854 = vmatmul.mubr.msk.f32.vlgmr.msra.gmra.mrb[30].mxu1 %vm418_vm3, %v2067_v38 }
0x1050   :  { %v4855_v4 = vpop.f32.mrb[30].mxu1 }
0x1051   :  { %v2157_v42 = vadd.f32 %v4855_v4, %v4407_v2  ;;  %v2151_v7 = vpop.f32.mrb[31].mxu1 }
0x1052   :  { %v2152_v8 = vadd.f32 %v4407_v2, %v2151_v7 }
0x1053   :  { %v2163_v9 = vmul.f32 0.70710677, %v2157_v42  ;;  %v2161_v57 = vmul.f32 0.5, %v2157_v42 }
0x1054   :  { %v2162_v10 = vmul.f32 0.70710677, %v2152_v8  ;;  %v2160_v55 = vmul.f32 0.5, %v2152_v8 }
0x1055   :  { %v2169_v11 = vand.u32 2147483647, %v2163_v9  ;;  %vm2165_vm12 = vcmp.ge.f32.partialorder %v2163_v9, 0.0 }
0x1056   :  { %v2168_v12 = vand.u32 2147483647, %v2162_v10  ;;  %vm2164_vm13 = vcmp.ge.f32.partialorder %v2162_v10, 0.0  ;;  %v2167_v49 = vsel %vm2165_vm12, 1.0, %v5446_v47 }
0x1057   :  { %v2171_v13 = vmul.f32 0.3275911, %v2169_v11  ;;  %v2197_v14 = vsub.f32 0.0, %v2169_v11  ;;  %v2166_v53 = vsel %vm2164_vm13, 1.0, %v5446_v47 }
0x1058   :  { %v2170_v50 = vmul.f32 0.3275911, %v2168_v12  ;;  %v2196_v15 = vsub.f32 0.0, %v2168_v12 }
0x1059   :  { %v2173_v25 = vadd.f32 1.0, %v2171_v13  ;;  %v2199_v3 = vmul.f32 %v2197_v14, %v2169_v11  ;;  %v4416_v14 = vld [vmem:[%s6580_s7 + $0x28] sm:$0xff] }
0x105a   :  { %v2172_v48 = vadd.f32 1.0, %v2170_v50  ;;  %v2198_v19 = vmul.f32 %v2196_v15, %v2168_v12 }
0x105b   :  { %5324 = vrcp.f32 %v2173_v25  ;;  %v2202_v22 = vmul.f32 1.442695, %v2199_v3  ;;  %v4418_v3 = vld [vmem:[%s6580_s7 + $0x38] sm:$0xff] }
0x105c   :  { %5326 = vrcp.f32 %v2172_v48  ;;  %v2200_v26 = vmul.f32 1.442695, %v2198_v19  ;;  %v4415_v48 = vld [vmem:[%s6580_s7 + $0x20] sm:$0xff] }
0x105d   :  { %5328 = vpow2.f32 %v2202_v22  ;;  %v5202_v15 = vpack.c.bf16 %v4416_v14, %v4415_v48 }
0x105e   :  { %5330 = vpow2.f32 %v2200_v26  ;;  %v4413_v26 = vld [vmem:[%s6630_s25 + $0x1] ss:$0 sm:$0xff]  ;;  %s6639_s25 = smov 16  }
0x105f   :  { %5203 = vmatprep.subr.bf16.mxu1 %v5202_v15 }
0x1060   :  { %5205 = vmatpush3.bf16.msra.mxu1 %v5202_v15 }
0x1065   :  { %v5325_v16 = vpop.eup %5324 }
0x1066   :  { %v5327_v17 = vpop.eup %5326  ;;  %v2179_v18 = vmul.f32 1.0614054, %v5325_v16 }
0x1067   :  { %v2178_v60 = vmul.f32 1.0614054, %v5327_v17  ;;  %v5329_v40 = vpop.eup %5328 }
0x1068   :  { %v2181_v21 = vadd.f32 -1.4531521, %v2179_v18  ;;  %v5331_v43 = vpop.eup %5330 }
0x1069   :  { %v2180_v23 = vadd.f32 -1.4531521, %v2178_v60 }
0x106a   :  { %v2183_v24 = vmul.f32 %v5325_v16, %v2181_v21 }
0x106b   :  { %v2182_v27 = vmul.f32 %v5327_v17, %v2180_v23 }
0x106c   :  { %v2185_v28 = vadd.f32 1.4214138, %v2183_v24 }
0x106d   :  { %v2184_v29 = vadd.f32 1.4214138, %v2182_v27 }
0x106e   :  { %v2187_v30 = vmul.f32 %v5325_v16, %v2185_v28 }
0x106f   :  { %v2186_v32 = vmul.f32 %v5327_v17, %v2184_v29 }
0x1070   :  { %v2189_v33 = vadd.f32 -0.28449672, %v2187_v30  ;;  %v4414_v30 = vld [vmem:[%s6631_s5 + $0x1] ss:$0 sm:$0xff]  ;;  %s6633_s5 = smov 72  }
0x1071   :  { %v2188_v34 = vadd.f32 -0.28449672, %v2186_v32 }
0x1072   :  { %v2191_v35 = vmul.f32 %v5325_v16, %v2189_v33 }
0x1073   :  { %v2190_v36 = vmul.f32 %v5327_v17, %v2188_v34 }
0x1074   :  { %v2193_v37 = vadd.f32 0.2548296, %v2191_v35 }
0x1075   :  { %v2192_v38 = vadd.f32 0.2548296, %v2190_v36  ;;  %v4420_v36 = vld [vmem:[%s6581_s8 + $0x1] ss:$0 sm:$0xff]  ;;  %s6632_s8 = smov 80  }
0x1076   :  { %v2195_v39 = vmul.f32 %v5325_v16, %v2193_v37  ;;  %v4417_v16 = vld [vmem:[%s6580_s7 + $0x30] sm:$0xff] }
0x1077   :  { %v2194_v41 = vmul.f32 %v5327_v17, %v2192_v38  ;;  %v5206_v17 = vpack.c.bf16 %v4418_v3, %v4417_v16 }
0x1078   :  { %v2205_v44 = vmul.f32 %v5329_v40, %v2195_v39 }
0x1079   :  { %v2204_v45 = vmul.f32 %v5331_v43, %v2194_v41  ;;  %5207 = vmatprep.subr.bf16.mxu1 %v5206_v17 }
0x107a   :  { %v2207_v46 = vsub.f32 1.0, %v2205_v44  ;;  %5209 = vmatpush3.bf16.msra.mxu1 %v5206_v17 }
0x107b   :  { %v2206_v51 = vsub.f32 1.0, %v2204_v45  ;;  %4902 = vmatprep.subr.mxu1 %v5430_v20 }
0x107c   :  { %v2209_v52 = vmul.f32 %v2207_v46, %v2167_v49 }
0x107d   :  { %v2208_v54 = vmul.f32 %v2206_v51, %v2166_v53 }
0x107e   :  { %v2211_v31 = vadd.f32 1.0, %v2209_v52 }
0x107f   :  { %v2210_v56 = vadd.f32 1.0, %v2208_v54 }
0x1080   :  { %v2213_v59 = vmul.f32 %v2211_v31, %v2161_v57 }
0x1081   :  { %v2212_v58 = vmul.f32 %v2210_v56, %v2160_v55 }
0x1083   :  { %4888 = vmatprep.mubr.f32.mxu0 %v2212_v58 }
0x1084   :  { %4889 = vmatmul.mubr.f32.vlgmr.msra.gmra.mrb[12].mxu0 %v2213_v59 }
0x1085   :  { %4934 = vmatprep.mubr.msk.f32.mxu0 %vm5431_vm5, %v5430_v20 }
0x1157   :  { %v4890_v61 = vpop.f32.mrb[12].mxu0 }
0x1158   :  { %v2306_v63 = vadd.f32 %v4890_v61, %v6111_v5  ;;  %v2296_v0 = vpop.f32.mrb[13].mxu0 }
0x1159   :  { %v2305_v1 = vadd.f32 %v2296_v0, %v6114_v6 }
0x115a   :  { %v6205_v2 = vadd.f32 %v4410_v62, %v2306_v63 }
0x115b   :  { %v6207_v4 = vadd.f32 %v4410_v62, %v2305_v1 }
0x115c   :  { %v2323_v42 = vsel %vm422_vm4, %v6205_v2, 0.0 }
0x115d   :  { %2324 = vadd.xlane.f32.xlu1 %v2323_v42  ;;  %v2320_v7 = vsel %vm418_vm3, %v6207_v4, 0.0 }
0x115e   :  { %2321 = vadd.xlane.f32.xlu0 %v2320_v7 }
0x11ea   :  { %v2325_v8 = vpop.xlane.xlu1 %2324 }
0x11eb   :  { %v2327_v9 = vmul.f32 0.03125, %v2325_v8  ;;  %v2322_v10 = vpop.xlane.xlu0 %2321 }
0x11ec   :  { %v2326_v11 = vmul.f32 0.03125, %v2322_v10 }
0x11ed   :  { %v2329_v5 = vsub.f32 %v6205_v2, %v2327_v9 }
0x11ee   :  { %v2328_v6 = vsub.f32 %v6207_v4, %v2326_v11 }
0x11ef   :  { %v2331_v12 = vmul.f32 %v2329_v5, %v2329_v5 }
0x11f0   :  { %v2330_v13 = vmul.f32 %v2328_v6, %v2328_v6 }
0x11f1   :  { %v2335_v50 = vsel %vm422_vm4, %v2331_v12, 0.0 }
0x11f2   :  { %2336 = vadd.xlane.f32.xlu1 %v2335_v50  ;;  %v2332_v25 = vsel %vm418_vm3, %v2330_v13, 0.0 }
0x11f3   :  { %2333 = vadd.xlane.f32.xlu0 %v2332_v25 }
0x127f   :  { %v2337_v18 = vpop.xlane.xlu1 %2336 }
0x1280   :  { %v2339_v19 = vmul.f32 0.03125, %v2337_v18  ;;  %v2334_v60 = vpop.xlane.xlu0 %2333 }
0x1281   :  { %v2338_v21 = vmul.f32 0.03125, %v2334_v60 }
0x1282   :  { %v2341_v22 = vadd.f32 1e-06, %v2339_v19 }
0x1283   :  { %v2340_v23 = vadd.f32 1e-06, %v2338_v21 }
0x1284   :  { %5332 = vrsqrt.f32 %v2341_v22 }
0x1285   :  { %5334 = vrsqrt.f32 %v2340_v23 }
0x128e   :  { %v5333_v24 = vpop.eup %5332 }
0x128f   :  { %v5335_v27 = vpop.eup %5334  ;;  %v2345_v28 = vmul.f32 %v5333_v24, %v2329_v5 }
0x1290   :  { %v2344_v29 = vmul.f32 %v5335_v27, %v2328_v6 }
0x1291   :  { %v2353_v32 = vmul.f32 %v4413_v26, %v2345_v28 }
0x1292   :  { %v2352_v33 = vmul.f32 %v4413_v26, %v2344_v29 }
0x1293   :  { %v2361_v35 = vadd.f32 %v4414_v30, %v2353_v32 }
0x1294   :  { %v2360_v34 = vadd.f32 %v4414_v30, %v2352_v33 }
0x1296   :  { %4899 = vmatprep.mubr.msk.f32.mxu1 %vm418_vm3, %v2360_v34 }
0x1297   :  { %4900 = vmatmul.mubr.msk.f32.vlgmr.msra.gmra.mrb[32].mxu1 %vm418_vm3, %v2361_v35 }
0x1298   :  { %4904 = vmatprep.mubr.msk.f32.mxu1 %vm5431_vm5, %v5430_v20 }
0x136a   :  { %v4901_v37 = vpop.f32.mrb[32].mxu1 }
0x136b   :  { %v6243_v38 = vadd.f32 %v4901_v37, %v4420_v36  ;;  %v2447_v39 = vpop.f32.mrb[33].mxu1 }
0x136c   :  { %v6245_v40 = vadd.f32 %v4420_v36, %v2447_v39 }
0x136d   :  { %v3143_v8 = vrot.slane %v6243_v38, 5  ;;  %v2457_v14 = vmul.f32 0.35355338, %v6243_v38 }
0x136e   :  { %2459 = vrot.lane.b32.xlu0 %v6245_v40, %s5432_s26  ;;  %v6253_v43 = vmul.f32 0.35355338, %v6245_v40  ;;  %v3142_v9 = vrot.slane %v6245_v40, 5 }
0x136f   :  { %v3139_v15 = vrot.slane %v2457_v14, 5 }
0x1370   :  { %v6296_v10 = vsel %vm1242_vm9, %v3142_v9, %v3143_v8  ;;  %v3138_v16 = vrot.slane %v6253_v43, 5 }
0x1372   :  { %2626 = vrot.lane.b32.xlu0 %v6245_v40, %s5433_s2  ;;  %v3140_v3 = vsel %vm1242_vm9, %v3138_v16, %v3139_v15 }
0x13e0   :  { %v2460_v41 = vpop.permute.xlu0 %2459 }
0x13e1   :  { %4903 = vmatpush3.xpose.msk.msra.mxu1 %vm560_vm6, %v2460_v41 }
0x13e2   :  { %4907 = vmatprep.subr.mxu1 %v5430_v20 }
0x13e4   :  { %4905 = vmatmul.mubr.msk.f32.vlgmr.msra.gmra.mrb[34].mxu1 %vm560_vm6, %v6253_v43  ;;  %v2627_v62 = vpop.permute.xlu0 %2626 }
0x13e5   :  { %4909 = vmatprep.mubr.msk.f32.mxu1 %vm5431_vm5, %v5430_v20 }
0x14b7   :  { %v2532_v44 = vpop.f32.mrb[34].mxu1 }
0x14b8   :  { %v4906_v45 = vpop.f32.mrb[35].mxu1  ;;  %v2536_v46 = vsel %vm636_vm7, %v2532_v44, -inf }
0x14b9   :  { %2537 = vmax.xlane.f32.xlu1 %v2536_v46 }
0x14ca   :  { %2547 = vrot.lane.b32.xlu1 %v6245_v40, %s5434_s27 }
0x1546   :  { %v2538_v49 = vpop.xlane.xlu1 %2537 }
0x1547   :  { %v2539_v51 = vsub.f32 %v2532_v44, %v2538_v49 }
0x1549   :  { %v2540_v52 = vmul.f32 1.442695, %v2539_v51 }
0x154a   :  { %v2548_v53 = vpop.permute.xlu1 %2547 }
0x154b   :  { %5336 = vpow2.f32 %v2540_v52  ;;  %4908 = vmatpush3.msk.msra.mxu1 %vm406_vm1, %v2548_v53 }
0x154c   :  { %4912 = vmatprep.subr.mxu1 %v5430_v20 }
0x1555   :  { %v5337_v54 = vpop.eup %5336 }
0x1556   :  { %v2542_v31 = vsel %vm636_vm7, %v5337_v54, 0.0 }
0x1557   :  { %2543 = vadd.xlane.f32.xlu1 %v2542_v31 }
0x1568   :  { %2624 = vrot.lane.b32.xlu1 %v6253_v43, %s5435_s3 }
0x156c   :  { %2792 = vrot.lane.b32.xlu1 %v6245_v40, %s6632_s8 }
0x1570   :  { %2958 = vrot.lane.b32.xlu1 %v6245_v40, %s6633_s5 }
0x15e4   :  { %v2544_v55 = vpop.xlane.xlu1 %2543 }
0x15e5   :  { %5338 = vrcp.f32 %v2544_v55 }
0x15e8   :  { %v2625_v56 = vpop.permute.xlu1 %2624 }
0x15ec   :  { %v6272_v57 = vpop.permute.xlu1 %2792 }
0x15ef   :  { %v5339_v58 = vpop.eup %5338 }
0x15f0   :  { %v2546_v59 = vmul.f32 %v5339_v58, %v5337_v54  ;;  %v2959_v61 = vpop.permute.xlu1 %2958 }
0x15f1   :  { %4933 = vmatpush3.xpose.msk.msra.mxu0 %vm560_vm6, %v2959_v61 }
0x15f2   :  { %4910 = vmatmul.mubr.msk.f32.vlgmr.msra.gmra.mrb[36].mxu1 %vm650_vm8, %v2546_v59  ;;  %4942 = vmatprep.subr.mxu0 %v5430_v20 }
0x15f3   :  { %4913 = vmatpush3.xpose.msk.msra.mxu1 %vm560_vm6, %v2627_v62  ;;  %4914 = vmatprep.mubr.msk.f32.mxu1 %vm5431_vm5, %v5430_v20 }
0x15f4   :  { %4917 = vmatprep.subr.mxu1 %v5430_v20 }
0x15f6   :  { %4915 = vmatmul.mubr.msk.f32.vlgmr.msra.gmra.mrb[38].mxu1 %vm560_vm6, %v2625_v56 }
0x15f7   :  { %4919 = vmatprep.mubr.msk.f32.mxu1 %vm5431_vm5, %v5430_v20 }
0x16c5   :  { %v6284_v63 = vpop.f32.mrb[36].mxu1 }
0x16c6   :  { %v4911_v0 = vpop.f32.mrb[37].mxu1 }
0x16c9   :  { %v2698_v1 = vpop.f32.mrb[38].mxu1 }
0x16ca   :  { %v4916_v42 = vpop.f32.mrb[39].mxu1  ;;  %v2702_v7 = vsel %vm636_vm7, %v2698_v1, -inf }
0x16cb   :  { %2703 = vmax.xlane.f32.xlu0 %v2702_v7 }
0x16e1   :  { %2713 = vrot.lane.b32.xlu0 %v6245_v40, %s6634_s28 }
0x16e5   :  { %2790 = vrot.lane.b32.xlu0 %v6253_v43, %s6635_s6 }
0x16e9   :  { %2956 = vrot.lane.b32.xlu0 %v6253_v43, %s6636_s30 }
0x16ed   :  { %3311 = vrot.lane.b32.xlu0 %v6296_v10, %s5433_s2  ;;  %s6638_s2 = smov 48  }
0x16f1   :  { %3477 = vrot.lane.b32.xlu0 %v6296_v10, %s6632_s8  ;;  %s6640_s8 = smov 24  }
0x16f5   :  { %3643 = vrot.lane.b32.xlu0 %v6296_v10, %s6633_s5 }
0x1758   :  { %v2704_v11 = vpop.xlane.xlu0 %2703 }
0x1759   :  { %v2705_v5 = vsub.f32 %v2698_v1, %v2704_v11 }
0x175b   :  { %v2706_v6 = vmul.f32 1.442695, %v2705_v5 }
0x175c   :  { %v2714_v12 = vpop.permute.xlu0 %2713 }
0x175d   :  { %5340 = vpow2.f32 %v2706_v6  ;;  %4918 = vmatpush3.msk.msra.mxu1 %vm406_vm1, %v2714_v12 }
0x175e   :  { %4922 = vmatprep.subr.mxu1 %v5430_v20 }
0x1760   :  { %v2791_v13 = vpop.permute.xlu0 %2790 }
0x1764   :  { %v2957_v50 = vpop.permute.xlu0 %2956 }
0x1765   :  { %4935 = vmatmul.mubr.msk.f32.vlgmr.msra.gmra.mrb[14].mxu0 %vm560_vm6, %v2957_v50 }
0x1766   :  { %4944 = vmatprep.mubr.msk.f32.mxu0 %vm5431_vm5, %v5430_v20 }
0x1767   :  { %v5341_v25 = vpop.eup %5340 }
0x1768   :  { %v2708_v48 = vsel %vm636_vm7, %v5341_v25, 0.0  ;;  %v3312_v18 = vpop.permute.xlu0 %3311 }
0x1769   :  { %2709 = vadd.xlane.f32.xlu1 %v2708_v48 }
0x176c   :  { %v3478_v21 = vpop.permute.xlu0 %3477 }
0x1770   :  { %v3644_v26 = vpop.permute.xlu0 %3643 }
0x177a   :  { %3145 = vrot.lane.b32.xlu1 %v6296_v10, %s5432_s26  ;;  %s6637_s26 = smov 40  }
0x177e   :  { %3309 = vrot.lane.b32.xlu1 %v3140_v3, %s5435_s3 }
0x1782   :  { %3475 = vrot.lane.b32.xlu1 %v3140_v3, %s6635_s6 }
0x1786   :  { %3641 = vrot.lane.b32.xlu1 %v3140_v3, %s6636_s30 }
0x17f6   :  { %v2710_v17 = vpop.xlane.xlu1 %2709 }
0x17f7   :  { %5342 = vrcp.f32 %v2710_v17 }
0x17fa   :  { %v3146_v19 = vpop.permute.xlu1 %3145 }
0x17fb   :  { %4943 = vmatpush3.xpose.msk.msra.mxu0 %vm560_vm6, %v3146_v19 }
0x17fc   :  { %4952 = vmatprep.subr.mxu0 %v5430_v20 }
0x17fe   :  { %v3310_v60 = vpop.permute.xlu1 %3309  ;;  %4945 = vmatmul.mubr.msk.f32.vlgmr.msra.gmra.mrb[16].mxu0 %vm560_vm6, %v3140_v3 }
0x17ff   :  { %4953 = vmatpush3.xpose.msk.msra.mxu0 %vm560_vm6, %v3312_v18  ;;  %4954 = vmatprep.mubr.msk.f32.mxu0 %vm5431_vm5, %v5430_v20 }
0x1800   :  { %4962 = vmatprep.subr.mxu0 %v5430_v20 }
0x1801   :  { %v5343_v22 = vpop.eup %5342 }
0x1802   :  { %v2712_v23 = vmul.f32 %v5343_v22, %v5341_v25  ;;  %4955 = vmatmul.mubr.msk.f32.vlgmr.msra.gmra.mrb[18].mxu0 %vm560_vm6, %v3310_v60  ;;  %v3476_v24 = vpop.permute.xlu1 %3475 }
0x1803   :  { %4963 = vmatpush3.xpose.msk.msra.mxu0 %vm560_vm6, %v3478_v21  ;;  %4964 = vmatprep.mubr.msk.f32.mxu0 %vm5431_vm5, %v5430_v20 }
0x1804   :  { %4920 = vmatmul.mubr.msk.f32.vlgmr.msra.gmra.mrb[40].mxu1 %vm650_vm8, %v2712_v23  ;;  %4972 = vmatprep.subr.mxu0 %v5430_v20 }
0x1805   :  { %4923 = vmatpush3.xpose.msk.msra.mxu1 %vm560_vm6, %v6272_v57  ;;  %4924 = vmatprep.mubr.msk.f32.mxu1 %vm5431_vm5, %v5430_v20 }
0x1806   :  { %4965 = vmatmul.mubr.msk.f32.vlgmr.msra.gmra.mrb[20].mxu0 %vm560_vm6, %v3476_v24  ;;  %4927 = vmatprep.subr.mxu1 %v5430_v20  ;;  %v3642_v27 = vpop.permute.xlu1 %3641 }
0x1807   :  { %4973 = vmatpush3.xpose.msk.msra.mxu0 %vm560_vm6, %v3644_v26  ;;  %4974 = vmatprep.mubr.msk.f32.mxu0 %vm5431_vm5, %v5430_v20 }
0x1808   :  { %4925 = vmatmul.mubr.msk.f32.vlgmr.msra.gmra.mrb[42].mxu1 %vm560_vm6, %v2791_v13 }
0x1809   :  { %4929 = vmatprep.mubr.msk.f32.mxu1 %vm5431_vm5, %v5430_v20 }
0x180a   :  { %4975 = vmatmul.mubr.msk.f32.vlgmr.msra.gmra.mrb[22].mxu0 %vm560_vm6, %v3642_v27 }
0x1838   :  { %v3030_v28 = vpop.f32.mrb[14].mxu0 }
0x1839   :  { %v4936_v29 = vpop.f32.mrb[15].mxu0  ;;  %v3034_v30 = vsel %vm636_vm7, %v3030_v28, -inf }
0x183a   :  { %3035 = vmax.xlane.f32.xlu1 %v3034_v30 }
0x18c7   :  { %v3036_v32 = vpop.xlane.xlu1 %3035 }
0x18c8   :  { %v3037_v33 = vsub.f32 %v3030_v28, %v3036_v32 }
0x18ca   :  { %v3038_v34 = vmul.f32 1.442695, %v3037_v33 }
0x18cc   :  { %5344 = vpow2.f32 %v3038_v34 }
0x18d1   :  { %v3217_v35 = vpop.f32.mrb[16].mxu0 }
0x18d2   :  { %v4946_v36 = vpop.f32.mrb[17].mxu0  ;;  %v3221_v31 = vsel %vm636_vm7, %v3217_v35, -inf }
0x18d5   :  { %v3383_v37 = vpop.f32.mrb[18].mxu0 }
0x18d6   :  { %v4956_v38 = vpop.f32.mrb[19].mxu0  ;;  %v6347_v54 = vpop.eup %5344  ;;  %v3387_v56 = vsel %vm636_vm7, %v3383_v37, -inf }
0x18d7   :  { %v2786_v39 = vpop.f32.mrb[40].mxu1  ;;  %v3040_v55 = vsel %vm636_vm7, %v6347_v54, 0.0 }
0x18d8   :  { %v4921_v41 = vpop.f32.mrb[41].mxu1 }
0x18d9   :  { %v3549_v43 = vpop.f32.mrb[20].mxu0 }
0x18da   :  { %v4966_v44 = vpop.f32.mrb[21].mxu0  ;;  %v3553_v57 = vsel %vm636_vm7, %v3549_v43, -inf }
0x18db   :  { %v2864_v45 = vpop.f32.mrb[42].mxu1 }
0x18dc   :  { %v4926_v46 = vpop.f32.mrb[43].mxu1  ;;  %v2868_v49 = vsel %vm636_vm7, %v2864_v45, -inf }
0x18dd   :  { %v3715_v51 = vpop.f32.mrb[22].mxu0  ;;  %2869 = vmax.xlane.f32.xlu0 %v2868_v49 }
0x18de   :  { %v4976_v52 = vpop.f32.mrb[23].mxu0  ;;  %v3719_v53 = vsel %vm636_vm7, %v3715_v51, -inf }
0x18df   :  { %3720 = vmax.xlane.f32.xlu1 %v3719_v53  ;;  %v4455_v52 = vld [vmem:[%s6582_s9 + $0x20] sm:$0xff]  ;;  %v4456_v53 = vld [vmem:[%s6582_s9 + $0x28] sm:$0xff] }
0x18e1   :  { %3222 = vmax.xlane.f32.xlu0 %v3221_v31  ;;  %v5210_v31 = vpack.c.bf16 %v4456_v53, %v4455_v52  ;;  %v4466_v53 = vld [vmem:[%s6585_s12 + $0x1] ss:$0 sm:$0xff] }
0x18e3   :  { %3041 = vadd.xlane.f32.xlu1 %v3040_v55  ;;  %5211 = vmatprep.subr.bf16.mxu0 %v5210_v31 }
0x18e4   :  { %5213 = vmatpush3.bf16.msra.mxu0 %v5210_v31 }
0x18e5   :  { %3388 = vmax.xlane.f32.xlu0 %v3387_v56 }
0x18e9   :  { %3554 = vmax.xlane.f32.xlu0 %v3553_v57  ;;  %v4457_v57 = vld [vmem:[%s6582_s9 + $0x30] sm:$0xff] }
0x196a   :  { %v2870_v58 = vpop.xlane.xlu0 %2869 }
0x196b   :  { %v2871_v8 = vsub.f32 %v2864_v45, %v2870_v58  ;;  %v4458_v58 = vld [vmem:[%s6582_s9 + $0x38] sm:$0xff] }
0x196c   :  { %v3721_v59 = vpop.xlane.xlu1 %3720 }
0x196d   :  { %v3722_v0 = vsub.f32 %v3715_v51, %v3721_v59  ;;  %v2872_v12 = vmul.f32 1.442695, %v2871_v8  ;;  %v5214_v59 = vpack.c.bf16 %v4458_v58, %v4457_v57 }
0x196e   :  { %v3223_v61 = vpop.xlane.xlu0 %3222 }
0x196f   :  { %v3224_v62 = vsub.f32 %v3217_v35, %v3223_v61  ;;  %v3723_v9 = vmul.f32 1.442695, %v3722_v0  ;;  %5215 = vmatprep.subr.bf16.mxu0 %v5214_v59 }
0x1970   :  { %v3042_v21 = vpop.xlane.xlu1 %3041  ;;  %5217 = vmatpush3.bf16.msra.mxu0 %v5214_v59  ;;  %v4475_v59 = vld [vmem:[%s6588_s15 + $0x80] sm:$0xff] }
0x1971   :  { %v3225_v1 = vmul.f32 1.442695, %v3224_v62 }
0x1972   :  { %v3389_v42 = vpop.xlane.xlu0 %3388 }
0x1973   :  { %5346 = vpow2.f32 %v3225_v1  ;;  %v3390_v7 = vsub.f32 %v3383_v37, %v3389_v42 }
0x1975   :  { %v3391_v11 = vmul.f32 1.442695, %v3390_v7 }
0x1976   :  { %v3555_v5 = vpop.xlane.xlu0 %3554 }
0x1977   :  { %5348 = vpow2.f32 %v3391_v11  ;;  %v3556_v6 = vsub.f32 %v3549_v43, %v3555_v5 }
0x1978   :  { %5350 = vpow2.f32 %v3723_v9 }
0x1979   :  { %v3557_v13 = vmul.f32 1.442695, %v3556_v6 }
0x197b   :  { %5352 = vpow2.f32 %v3557_v13 }
0x197c   :  { %5354 = vpow2.f32 %v2872_v12 }
0x197d   :  { %v5347_v50 = vpop.eup %5346 }
0x197e   :  { %v3227_v25 = vsel %vm636_vm7, %v5347_v50, 0.0 }
0x197f   :  { %3228 = vadd.xlane.f32.xlu0 %v3227_v25 }
0x1981   :  { %v5349_v48 = vpop.eup %5348 }
0x1982   :  { %v3393_v14 = vsel %vm636_vm7, %v5349_v48, 0.0  ;;  %v6356_v15 = vpop.eup %5350 }
0x1983   :  { %3394 = vadd.xlane.f32.xlu1 %v3393_v14  ;;  %v3725_v3 = vsel %vm636_vm7, %v6356_v15, 0.0 }
0x1985   :  { %v5353_v16 = vpop.eup %5352 }
0x1986   :  { %v3559_v17 = vsel %vm636_vm7, %v5353_v16, 0.0  ;;  %v5355_v18 = vpop.eup %5354 }
0x1987   :  { %3726 = vadd.xlane.f32.xlu1 %v3725_v3  ;;  %3560 = vadd.xlane.f32.xlu0 %v3559_v17  ;;  %v2874_v19 = vsel %vm636_vm7, %v5355_v18, 0.0  ;;  %v4460_v17 = vld [vmem:[%s6583_s10 + $0x1] ss:$0 sm:$0xff] }
0x198b   :  { %2875 = vadd.xlane.f32.xlu0 %v2874_v19 }
0x1998   :  { %3045 = vrot.lane.b32.xlu1 %v6245_v40, %s6637_s26 }
0x199c   :  { %3232 = vrot.lane.b32.xlu1 %v6296_v10, %s5434_s27 }
0x19a0   :  { %3398 = vrot.lane.b32.xlu1 %v6296_v10, %s6634_s28 }
0x19a1   :  { %2879 = vrot.lane.b32.xlu0 %v6245_v40, %s6638_s2 }
0x19a4   :  { %3730 = vrot.lane.b32.xlu1 %v6296_v10, %s6637_s26 }
0x19a5   :  { %3564 = vrot.lane.b32.xlu0 %v6296_v10, %s6638_s2 }
0x19a9   :  { %3123 = vrot.lane.b32.xlu0 %v2786_v39, %s5443_s24 }
0x1a0c   :  { %v3229_v60 = vpop.xlane.xlu0 %3228 }
0x1a10   :  { %v3395_v23 = vpop.xlane.xlu1 %3394 }
0x1a14   :  { %v3561_v22 = vpop.xlane.xlu0 %3560  ;;  %v3727_v26 = vpop.xlane.xlu1 %3726 }
0x1a18   :  { %v2876_v24 = vpop.xlane.xlu0 %2875  ;;  %v3046_v40 = vpop.permute.xlu1 %3045 }
0x1a19   :  { %5356 = vrcp.f32 %v2876_v24 }
0x1a1a   :  { %5358 = vrcp.f32 %v3042_v21 }
0x1a1b   :  { %5360 = vrcp.f32 %v3229_v60 }
0x1a1c   :  { %v2880_v27 = vpop.permute.xlu0 %2879  ;;  %5362 = vrcp.f32 %v3395_v23  ;;  %v3233_v32 = vpop.permute.xlu1 %3232 }
0x1a1d   :  { %4928 = vmatpush3.msk.msra.mxu1 %vm406_vm1, %v2880_v27  ;;  %5364 = vrcp.f32 %v3561_v22 }
0x1a1e   :  { %4937 = vmatprep.subr.mxu1 %v5430_v20  ;;  %5366 = vrcp.f32 %v3727_v26 }
0x1a20   :  { %v3399_v36 = vpop.permute.xlu1 %3398  ;;  %v3565_v39 = vpop.permute.xlu0 %3564 }
0x1a23   :  { %v5357_v28 = vpop.eup %5356 }
0x1a24   :  { %v2878_v10 = vmul.f32 %v5357_v28, %v5355_v18  ;;  %v5359_v29 = vpop.eup %5358  ;;  %v3731_v44 = vpop.permute.xlu1 %3730 }
0x1a25   :  { %v3044_v30 = vmul.f32 %v5359_v29, %v6347_v54  ;;  %v5361_v33 = vpop.eup %5360  ;;  %v3124_v8 = vpop.permute.xlu0 %3123 }
0x1a26   :  { %4930 = vmatmul.mubr.msk.f32.vlgmr.msra.gmra.mrb[44].mxu1 %vm650_vm8, %v2878_v10  ;;  %v3231_v34 = vmul.f32 %v5361_v33, %v5347_v50  ;;  %v5363_v35 = vpop.eup %5362  ;;  %v3134_v25 = vsel %vm560_vm6, %v6284_v63, %v3124_v8  ;;  %v4467_v33 = vld [vmem:[%s6586_s13 + $0x20] sm:$0xff] }
0x1a27   :  { %4938 = vmatpush3.msk.msra.mxu1 %vm406_vm1, %v3046_v40  ;;  %4939 = vmatprep.mubr.msk.f32.mxu1 %vm5431_vm5, %v5430_v20  ;;  %v3397_v37 = vmul.f32 %v5363_v35, %v5349_v48  ;;  %v5365_v38 = vpop.eup %5364 }
0x1a28   :  { %4947 = vmatprep.subr.mxu1 %v5430_v20  ;;  %v3563_v41 = vmul.f32 %v5365_v38, %v5353_v16  ;;  %v5367_v43 = vpop.eup %5366 }
0x1a29   :  { %v3729_v45 = vmul.f32 %v5367_v43, %v6356_v15 }
0x1a2a   :  { %4940 = vmatmul.mubr.msk.f32.vlgmr.msra.gmra.mrb[46].mxu1 %vm650_vm8, %v3044_v30 }
0x1a2b   :  { %4948 = vmatpush3.msk.msra.mxu1 %vm406_vm1, %v3233_v32  ;;  %4949 = vmatprep.mubr.msk.f32.mxu1 %vm5431_vm5, %v5430_v20 }
0x1a2c   :  { %4957 = vmatprep.subr.mxu1 %v5430_v20 }
0x1a2e   :  { %4950 = vmatmul.mubr.msk.f32.vlgmr.msra.gmra.mrb[48].mxu1 %vm650_vm8, %v3231_v34  ;;  %v4468_v34 = vld [vmem:[%s6586_s13 + $0x28] sm:$0xff] }
0x1a2f   :  { %4958 = vmatpush3.msk.msra.mxu1 %vm406_vm1, %v3399_v36  ;;  %4959 = vmatprep.mubr.msk.f32.mxu1 %vm5431_vm5, %v5430_v20  ;;  %v5218_v35 = vpack.c.bf16 %v4468_v34, %v4467_v33  ;;  %v4469_v36 = vld [vmem:[%s6586_s13 + $0x30] sm:$0xff] }
0x1a30   :  { %4967 = vmatprep.subr.mxu1 %v5430_v20 }
0x1a32   :  { %4960 = vmatmul.mubr.msk.f32.vlgmr.msra.gmra.mrb[50].mxu1 %vm650_vm8, %v3397_v37  ;;  %v4470_v37 = vld [vmem:[%s6586_s13 + $0x38] sm:$0xff] }
0x1a33   :  { %4968 = vmatpush3.msk.msra.mxu1 %vm406_vm1, %v3565_v39  ;;  %4969 = vmatprep.mubr.msk.f32.mxu1 %vm5431_vm5, %v5430_v20  ;;  %v5222_v38 = vpack.c.bf16 %v4470_v37, %v4469_v36 }
0x1a34   :  { %4977 = vmatprep.subr.mxu1 %v5430_v20 }
0x1a36   :  { %4970 = vmatmul.mubr.msk.f32.vlgmr.msra.gmra.mrb[52].mxu1 %vm650_vm8, %v3563_v41 }
0x1a37   :  { %4978 = vmatpush3.msk.msra.mxu1 %vm406_vm1, %v3731_v44  ;;  %4979 = vmatprep.mubr.msk.f32.mxu1 %vm5431_vm5, %v5430_v20 }
0x1a38   :  { %5219 = vmatprep.subr.bf16.mxu1 %v5218_v35 }
0x1a3a   :  { %4980 = vmatmul.mubr.msk.f32.vlgmr.msra.gmra.mrb[54].mxu1 %vm650_vm8, %v3729_v45 }
0x1a3b   :  { %5221 = vmatpush3.bf16.msra.mxu1 %v5218_v35 }
0x1a3c   :  { %5223 = vmatprep.subr.bf16.mxu1 %v5222_v38 }
0x1a3f   :  { %5225 = vmatpush3.bf16.msra.mxu1 %v5222_v38 }
0x1af9   :  { %v2952_v46 = vpop.f32.mrb[44].mxu1 }
0x1afa   :  { %v4931_v49 = vpop.f32.mrb[45].mxu1 }
0x1afd   :  { %v3118_v51 = vpop.f32.mrb[46].mxu1 }
0x1afe   :  { %v4941_v54 = vpop.f32.mrb[47].mxu1 }
0x1b01   :  { %v3305_v55 = vpop.f32.mrb[48].mxu1 }
0x1b02   :  { %v4951_v56 = vpop.f32.mrb[49].mxu1 }
0x1b05   :  { %v3471_v61 = vpop.f32.mrb[50].mxu1 }
0x1b06   :  { %3808 = vrot.lane.b32.xlu0 %v3471_v61, %s5443_s24  ;;  %v4961_v62 = vpop.f32.mrb[51].mxu1  ;;  %v4476_v61 = vld [vmem:[%s6588_s15 + $0x88] sm:$0xff] }
0x1b07   :  { %v5226_v62 = vpack.c.bf16 %v4476_v61, %v4475_v59 }
0x1b09   :  { %v3637_v0 = vpop.f32.mrb[52].mxu1  ;;  %5227 = vmatprep.subr.bf16.mxu0 %v5226_v62 }
0x1b0a   :  { %3127 = vrot.lane.b32.xlu0 %v2952_v46, %s6639_s25  ;;  %3812 = vrot.lane.b32.xlu1 %v3637_v0, %s6639_s25  ;;  %v4971_v1 = vpop.f32.mrb[53].mxu1  ;;  %v4477_v0 = vld [vmem:[%s6588_s15 + $0x90] sm:$0xff] }
0x1b0b   :  { %v4478_v1 = vld [vmem:[%s6588_s15 + $0x98] sm:$0xff] }
0x1b0d   :  { %v3803_v42 = vpop.f32.mrb[54].mxu1 }
0x1b0e   :  { %3816 = vrot.lane.b32.xlu1 %v3803_v42, %s6640_s8  ;;  %v4981_v7 = vpop.f32.mrb[55].mxu1  ;;  %v4479_v42 = vld [vmem:[%s6588_s15 + $0xa0] sm:$0xff] }
0x1b0f   :  { %v4480_v7 = vld [vmem:[%s6588_s15 + $0xa8] sm:$0xff] }
0x1b10   :  { %v5234_v8 = vpack.c.bf16 %v4480_v7, %v4479_v42 }
0x1b12   :  { %3131 = vrot.lane.b32.xlu1 %v3118_v51, %s6640_s8  ;;  %v4465_v51 = vld [vmem:[%s6584_s11 + $0x1] ss:$0 sm:$0xff] }
0x1b78   :  { %v3809_v9 = vpop.permute.xlu0 %3808 }
0x1b79   :  { %v3819_v5 = vsel %vm560_vm6, %v3305_v55, %v3809_v9  ;;  %v4481_v9 = vld [vmem:[%s6588_s15 + $0xb0] sm:$0xff] }
0x1b7c   :  { %v3813_v11 = vpop.permute.xlu1 %3812  ;;  %v3128_v13 = vpop.permute.xlu0 %3127 }
0x1b7d   :  { %v3820_v6 = vsel %vm1237_vm10, %v3819_v5, %v3813_v11  ;;  %v3135_v48 = vsel %vm1237_vm10, %v3134_v25, %v3128_v13  ;;  %v4482_v11 = vld [vmem:[%s6588_s15 + $0xb8] sm:$0xff] }
0x1b7e   :  { %v5238_v5 = vpack.c.bf16 %v4482_v11, %v4481_v9  ;;  %v4486_v25 = vld [vmem:[%s6588_s15 + $0xd8] sm:$0xff] }
0x1b80   :  { %v3817_v12 = vpop.permute.xlu1 %3816 }
0x1b81   :  { %v3821_v50 = vsel %vm1239_vm11, %v3820_v6, %v3817_v12  ;;  %v4483_v6 = vld [vmem:[%s6588_s15 + $0xc0] sm:$0xff]  ;;  %v4484_v12 = vld [vmem:[%s6588_s15 + $0xc8] sm:$0xff] }
0x1b82   :  { %v3823_v14 = vrot.slane %v3821_v50, 3  ;;  %v5242_v13 = vpack.c.bf16 %v4484_v12, %v4483_v6  ;;  %v4485_v50 = vld [vmem:[%s6588_s15 + $0xd0] sm:$0xff] }
0x1b84   :  { %v3132_v15 = vpop.permute.xlu1 %3131 }
0x1b85   :  { %v3136_v16 = vsel %vm1239_vm11, %v3135_v48, %v3132_v15  ;;  %v5246_v48 = vpack.c.bf16 %v4486_v25, %v4485_v50  ;;  %v4488_v15 = vld [vmem:[%s6588_s15 + $0xe8] sm:$0xff] }
0x1b86   :  { %v3825_v3 = vsel %vm406_vm1, %v3136_v16, %v3823_v14 }
0x1b87   :  { %4990 = vmatprep.mubr.msk.f32.mxu0 %vm418_vm3, %v3825_v3  ;;  %v4489_v3 = vld [vmem:[%s6588_s15 + $0xf0] sm:$0xff] }
0x1b88   :  { %4991 = vmatmul.mubr.msk.f32.vlgmr.msra.gmra.mrb[24].mxu0 %vm418_vm3, %v3823_v14  ;;  %v4487_v14 = vld [vmem:[%s6588_s15 + $0xe0] sm:$0xff] }
0x1b89   :  { %5229 = vmatpush3.bf16.msra.mxu0 %v5226_v62  ;;  %v5250_v16 = vpack.c.bf16 %v4488_v15, %v4487_v14  ;;  %v4492_v15 = vld [vmem:[%s6589_s16 + $0x1] ss:$0 sm:$0xff] }
0x1c5b   :  { %v4992_v18 = vpop.f32.mrb[24].mxu0 }
0x1c5c   :  { %v3916_v19 = vadd.f32 %v4992_v18, %v4460_v17  ;;  %v3910_v60 = vpop.f32.mrb[25].mxu0 }
0x1c5d   :  { %v3911_v63 = vadd.f32 %v4460_v17, %v3910_v60  ;;  %v4490_v17 = vld [vmem:[%s6588_s15 + $0xf8] sm:$0xff] }
0x1c5e   :  { %v3920_v21 = vadd.f32 %v3916_v19, %v6205_v2  ;;  %v5254_v18 = vpack.c.bf16 %v4490_v17, %v4489_v3  ;;  %v4472_v19 = vld [vmem:[%s6587_s14 + $0x1] ss:$0 sm:$0xff] }
0x1c5f   :  { %v6436_v22 = vadd.f32 %v3911_v63, %v6207_v4 }
0x1c60   :  { %v3928_v23 = vsel %vm422_vm4, %v3920_v21, 0.0 }
0x1c61   :  { %3929 = vadd.xlane.f32.xlu1 %v3928_v23  ;;  %v3925_v24 = vsel %vm418_vm3, %v6436_v22, 0.0 }
0x1c62   :  { %3926 = vadd.xlane.f32.xlu0 %v3925_v24 }
0x1cee   :  { %v3930_v26 = vpop.xlane.xlu1 %3929 }
0x1cef   :  { %v3932_v27 = vmul.f32 0.03125, %v3930_v26  ;;  %v3927_v40 = vpop.xlane.xlu0 %3926 }
0x1cf0   :  { %v3931_v28 = vmul.f32 0.03125, %v3927_v40 }
0x1cf1   :  { %v3934_v10 = vsub.f32 %v3920_v21, %v3932_v27 }
0x1cf2   :  { %v3933_v29 = vsub.f32 %v6436_v22, %v3931_v28 }
0x1cf3   :  { %v3936_v32 = vmul.f32 %v3934_v10, %v3934_v10 }
0x1cf4   :  { %v3935_v30 = vmul.f32 %v3933_v29, %v3933_v29 }
0x1cf5   :  { %v3940_v4 = vsel %vm422_vm4, %v3936_v32, 0.0 }
0x1cf6   :  { %v3937_v2 = vsel %vm418_vm3, %v3935_v30, 0.0 }
0x1cf7   :  { %3938 = vadd.xlane.f32.xlu0 %v3937_v2 }
0x1cfb   :  { %3941 = vadd.xlane.f32.xlu0 %v3940_v4 }
0x1d84   :  { %v3939_v39 = vpop.xlane.xlu0 %3938 }
0x1d85   :  { %v3943_v41 = vmul.f32 0.03125, %v3939_v39 }
0x1d87   :  { %v3945_v43 = vadd.f32 1e-06, %v3943_v41 }
0x1d88   :  { %v3942_v44 = vpop.xlane.xlu0 %3941 }
0x1d89   :  { %5368 = vrsqrt.f32 %v3945_v43  ;;  %v3944_v45 = vmul.f32 0.03125, %v3942_v44 }
0x1d8b   :  { %v3946_v46 = vadd.f32 1e-06, %v3944_v45 }
0x1d8d   :  { %5370 = vrsqrt.f32 %v3946_v46 }
0x1d93   :  { %v5369_v49 = vpop.eup %5368 }
0x1d94   :  { %v3949_v52 = vmul.f32 %v5369_v49, %v3933_v29 }
0x1d96   :  { %v3957_v54 = vmul.f32 %v4465_v51, %v3949_v52 }
0x1d97   :  { %v5371_v31 = vpop.eup %5370 }
0x1d98   :  { %v3950_v55 = vmul.f32 %v5371_v31, %v3934_v10  ;;  %v3965_v56 = vadd.f32 %v4466_v53, %v3957_v54 }
0x1d9a   :  { %v3958_v57 = vmul.f32 %v4465_v51, %v3950_v55  ;;  %5001 = vmatprep.mubr.msk.f32.mxu1 %vm418_vm3, %v3965_v56 }
0x1d9c   :  { %v3966_v58 = vadd.f32 %v4466_v53, %v3958_v57 }
0x1d9e   :  { %5002 = vmatmul.mubr.msk.f32.vlgmr.msra.gmra.mrb[56].mxu1 %vm418_vm3, %v3966_v58 }
0x1d9f   :  { %5047 = vmatprep.mubr.msk.f32.mxu1 %vm5431_vm5, %v5430_v20  ;;  %v5230_v20 = vpack.c.bf16 %v4478_v1, %v4477_v0 }
0x1da1   :  { %5231 = vmatprep.subr.bf16.mxu0 %v5230_v20 }
0x1da2   :  { %5233 = vmatpush3.bf16.msra.mxu0 %v5230_v20 }
0x1da3   :  { %5235 = vmatprep.subr.bf16.mxu0 %v5234_v8 }
0x1da6   :  { %5237 = vmatpush3.bf16.msra.mxu0 %v5234_v8 }
0x1da7   :  { %5239 = vmatprep.subr.bf16.mxu0 %v5238_v5 }
0x1daa   :  { %5241 = vmatpush3.bf16.msra.mxu0 %v5238_v5 }
0x1dab   :  { %5243 = vmatprep.subr.bf16.mxu0 %v5242_v13 }
0x1dae   :  { %5245 = vmatpush3.bf16.msra.mxu0 %v5242_v13 }
0x1daf   :  { %5247 = vmatprep.subr.bf16.mxu0 %v5246_v48 }
0x1db2   :  { %5249 = vmatpush3.bf16.msra.mxu0 %v5246_v48 }
0x1db3   :  { %5251 = vmatprep.subr.bf16.mxu0 %v5250_v16 }
0x1db6   :  { %5253 = vmatpush3.bf16.msra.mxu0 %v5250_v16 }
0x1db7   :  { %5255 = vmatprep.subr.bf16.mxu0 %v5254_v18 }
0x1dba   :  { %5257 = vmatpush3.bf16.msra.mxu0 %v5254_v18 }
0x1e71   :  { %v5003_v60 = vpop.f32.mrb[56].mxu1 }
0x1e72   :  { %v4058_v63 = vadd.f32 %v5003_v60, %v4472_v19  ;;  %v4052_v21 = vpop.f32.mrb[57].mxu1 }
0x1e73   :  { %v4053_v23 = vadd.f32 %v4472_v19, %v4052_v21 }
0x1e74   :  { %v4064_v24 = vmul.f32 0.70710677, %v4058_v63  ;;  %v4062_v13 = vmul.f32 0.5, %v4058_v63 }
0x1e75   :  { %v4063_v26 = vmul.f32 0.70710677, %v4053_v23  ;;  %v4061_v6 = vmul.f32 0.5, %v4053_v23 }
0x1e76   :  { %v4070_v27 = vand.u32 2147483647, %v4064_v24  ;;  %vm4066_vm14 = vcmp.ge.f32.partialorder %v4064_v24, 0.0  ;;  %v4251_v24 = vld [vmem:[%s6592_s19] sm:$0xff] }
0x1e77   :  { %v4069_v40 = vand.u32 2147483647, %v4063_v26  ;;  %vm4065_vm15 = vcmp.ge.f32.partialorder %v4063_v26, 0.0  ;;  %v4068_v42 = vsel %vm4066_vm14, 1.0, %v5446_v47 }
0x1e78   :  { %v4072_v28 = vmul.f32 0.3275911, %v4070_v27  ;;  %v4098_v2 = vsub.f32 0.0, %v4070_v27  ;;  %v4067_v9 = vsel %vm4065_vm15, 1.0, %v5446_v47 }
0x1e79   :  { %v4071_v10 = vmul.f32 0.3275911, %v4069_v40  ;;  %v4097_v32 = vsub.f32 0.0, %v4069_v40 }
0x1e7a   :  { %v4074_v29 = vadd.f32 1.0, %v4072_v28  ;;  %v4100_v33 = vmul.f32 %v4098_v2, %v4070_v27  ;;  %v5447_v27 = vmov 0.0|0.0   ;;  %v4254_v28 = vld [vmem:[%s6592_s19 + $0x18] sm:$0xff] }
0x1e7b   :  { %v4073_v30 = vadd.f32 1.0, %v4071_v10  ;;  %v4099_v36 = vmul.f32 %v4097_v32, %v4069_v40  ;;  %5258 = vmatprep.subr.bf16.mxu1 %v5447_v27  ;;  %v4253_v40 = vld [vmem:[%s6592_s19 + $0x10] sm:$0xff] }
0x1e7c   :  { %5372 = vrcp.f32 %v4074_v29  ;;  %v4103_v39 = vmul.f32 1.442695, %v4100_v33  ;;  %v5262_v10 = vpack.c.bf16 %v4254_v28, %v4253_v40 }
0x1e7d   :  { %5374 = vrcp.f32 %v4073_v30  ;;  %v4101_v44 = vmul.f32 1.442695, %v4099_v36 }
0x1e7e   :  { %5376 = vpow2.f32 %v4103_v39 }
0x1e7f   :  { %5378 = vpow2.f32 %v4101_v44 }
0x1e86   :  { %v5373_v4 = vpop.eup %5372 }
0x1e87   :  { %v5375_v34 = vpop.eup %5374  ;;  %v4080_v35 = vmul.f32 1.0614054, %v5373_v4 }
0x1e88   :  { %v4079_v37 = vmul.f32 1.0614054, %v5375_v34  ;;  %v5377_v59 = vpop.eup %5376 }
0x1e89   :  { %v4082_v38 = vadd.f32 -1.4531521, %v4080_v35  ;;  %v5379_v62 = vpop.eup %5378 }
0x1e8a   :  { %v4081_v41 = vadd.f32 -1.4531521, %v4079_v37 }
0x1e8b   :  { %v4084_v43 = vmul.f32 %v5373_v4, %v4082_v38 }
0x1e8c   :  { %v4083_v45 = vmul.f32 %v5375_v34, %v4081_v41 }
0x1e8d   :  { %v4086_v46 = vadd.f32 1.4214138, %v4084_v43 }
0x1e8e   :  { %v4085_v49 = vadd.f32 1.4214138, %v4083_v45 }
0x1e8f   :  { %v4088_v51 = vmul.f32 %v5373_v4, %v4086_v46 }
0x1e90   :  { %v4087_v52 = vmul.f32 %v5375_v34, %v4085_v49 }
0x1e91   :  { %v4090_v53 = vadd.f32 -0.28449672, %v4088_v51 }
0x1e92   :  { %v4089_v54 = vadd.f32 -0.28449672, %v4087_v52 }
0x1e93   :  { %v4092_v31 = vmul.f32 %v5373_v4, %v4090_v53 }
0x1e94   :  { %v4091_v55 = vmul.f32 %v5375_v34, %v4089_v54 }
0x1e95   :  { %v4094_v56 = vadd.f32 0.2548296, %v4092_v31 }
0x1e96   :  { %v4093_v57 = vadd.f32 0.2548296, %v4091_v55 }
0x1e97   :  { %v4096_v58 = vmul.f32 %v5373_v4, %v4094_v56  ;;  %v4493_v4 = vld [vmem:[%s6590_s17] ss:$0 sm:$0xff] }
0x1e98   :  { %v4095_v61 = vmul.f32 %v5375_v34, %v4093_v57  ;;  %v4494_v34 = vld [vmem:[%s6591_s18] ss:$0 sm:$0xff] }
0x1e99   :  { %v4106_v0 = vmul.f32 %v5377_v59, %v4096_v58 }
0x1e9a   :  { %v4105_v1 = vmul.f32 %v5379_v62, %v4095_v61 }
0x1e9b   :  { %v4108_v20 = vsub.f32 1.0, %v4106_v0 }
0x1e9c   :  { %v4107_v7 = vsub.f32 1.0, %v4105_v1 }
0x1e9d   :  { %v4110_v8 = vmul.f32 %v4108_v20, %v4068_v42 }
0x1e9e   :  { %v4109_v11 = vmul.f32 %v4107_v7, %v4067_v9 }
0x1e9f   :  { %v4112_v5 = vadd.f32 1.0, %v4110_v8 }
0x1ea0   :  { %v4111_v12 = vadd.f32 1.0, %v4109_v11 }
0x1ea1   :  { %v4114_v25 = vmul.f32 %v4112_v5, %v4062_v13 }
0x1ea2   :  { %v4113_v50 = vmul.f32 %v4111_v12, %v4061_v6 }
0x1ea4   :  { %5036 = vmatprep.mubr.f32.mxu0 %v4113_v50 }
0x1ea5   :  { %5037 = vmatmul.mubr.f32.vlgmr.msra.gmra.mrb[26].mxu0 %v4114_v25 }
0x1f78   :  { %v5038_v48 = vpop.f32.mrb[26].mxu0 }
0x1f79   :  { %v4198_v14 = vpop.f32.mrb[27].mxu0 }
0x1f7a   :  { %v4206_v16 = vadd.f32 %v4198_v14, %v6436_v22  ;;  %v4252_v22 = vld [vmem:[%s6592_s19 + $0x8] sm:$0xff]  ;;  %s5448_s19 = smov [#allocation2]  }
0x1f7b   :  { %v5259_v26 = vpack.c.bf16 %v4252_v22, %v4251_v24  ;;  %s4342_s11 = sshll.u32 %s5448_s19, 4  ;;  %s4343_s11 = int_to_ptr.vmem [resolvable:$true] %s4342_s11 }
0x1f7c   :  { %v4215_v3 = vadd.f32 %v4492_v15, %v4206_v16  ;;  %s5382_s7 = scalar_lea.vmem %s4343_s11, 32  ;;  %p5387_p1 = scmp.lt.s32.totalorder %s4343_s11, %s4343_s11 }
0x1f7d   :  { %5260 = vmatpush3.bf16.msra.mxu1 %v5259_v26  ;;  %p5383_p0 = scmp.ne.s32.totalorder %s4343_s11, %s5382_s7  ;;  %p5388_p2 = scmp.lt.s32.totalorder %s5382_s7, %s5382_s7 }
0x1f7e   :  { %v4217_v17 = vrot.slane %v4215_v3, 4  ;;  %5261 = vmatprep.subr.bf16.mxu1 %v5447_v27 }
0x1f7f   :  { %p5389_p3 = por %p5388_p2, %p5387_p1 }
0x1f80   :  { %v4219_v47 = vsel %vm404_vm0, %v4215_v3, %v4217_v17 }
0x1f81   :  { %v4222_v18 = vsel %vm422_vm4, %v4219_v47, 0.0  ;;  %5263 = vmatpush3.bf16.msra.mxu1 %v5262_v10  ;;  %p5390_p4 = pnand %p5389_p3, %p5383_p0 }
0x1f82   :  { %4223 = vadd.xlane.f32.xlu0 %v4222_v18 }
0x200f   :  { %v4224_v19 = vpop.xlane.xlu0 %4223 }
0x2010   :  { %v4225_v60 = vmul.f32 0.03125, %v4224_v19 }
0x2012   :  { %v4226_v63 = vsub.f32 %v4219_v47, %v4225_v60 }
0x2014   :  { %v4227_v21 = vmul.f32 %v4226_v63, %v4226_v63 }
0x2016   :  { %v4228_v23 = vsel %vm422_vm4, %v4227_v21, 0.0 }
0x2017   :  { %4229 = vadd.xlane.f32.xlu1 %v4228_v23 }
0x20a4   :  { %v4230_v29 = vpop.xlane.xlu1 %4229 }
0x20a5   :  { %v4231_v30 = vmul.f32 0.03125, %v4230_v29 }
0x20a7   :  { %v4232_v2 = vadd.f32 1e-06, %v4231_v30 }
0x20a9   :  { %5380 = vrsqrt.f32 %v4232_v2 }
0x20b3   :  { %v5381_v32 = vpop.eup %5380 }
0x20b4   :  { %v4234_v33 = vmul.f32 %v5381_v32, %v4226_v63 }
0x20b6   :  { %v4241_v35 = vmul.f32 %v4493_v4, %v4234_v33 }
0x20b8   :  { %v4248_v36 = vadd.f32 %v4494_v34, %v4241_v35 }
0x20ba   :  { %5048 = vmatmul.mubr.msk.f32.vlgmr.msra.gmra.mrb[58].mxu1 %vm418_vm3, %v4248_v36  ;;  %v4249_v37 = vsel %vm418_vm3, %v4248_v36, 0.0 }
0x20bb   :  { %4250 = vst [vmem:[#allocation2] sm:$0x3] %v4249_v37 }
0x20bc   :  { %5393 = shalt.err (!%p5390_p4)
}
0x20bd   :  { %s5394_s18 = scalar_lea.hbm %s6594_s21, 32 }
0x20be   :  { %p5395_p5 = scmp.ne.s32.totalorder %s6594_s21, %s5394_s18  ;;  %p5398_p6 = scmp.lt.u32.totalorder %s5394_s18, %s6594_s21 }
0x20c0   :  { %p5400_p7 = pnand %p5398_p6, %p5395_p5 }
0x20c2   :  { %5403 = shalt.err (!%p5400_p7)
}
0x20c3   :  { %4345 = dma.vmem_to_hbm [thread:$0]  %s4343_s11, 32, %s6594_s21, [#allocation3]   ;;  %v4495_v38 = vld [vmem:[%s6593_s20] ss:$0 sm:$0xff] }
0x20c4   :  { %s5449_s14 = smov [#allocation4]  }
0x20c5   :  { %s4352_s15 = sshll.u32 %s5449_s14, 4  ;;  %s4353_s15 = int_to_ptr.vmem [resolvable:$true] %s4352_s15 }
0x20c6   :  { %s5404_s28 = scalar_lea.vmem %s4353_s15, 32  ;;  %p5409_p9 = scmp.lt.s32.totalorder %s4353_s15, %s4353_s15 }
0x20c7   :  { %p5405_p8 = scmp.ne.s32.totalorder %s4353_s15, %s5404_s28  ;;  %p5410_p10 = scmp.lt.s32.totalorder %s5404_s28, %s5404_s28 }
0x20c9   :  { %p5411_p11 = por %p5410_p10, %p5409_p9 }
0x20cb   :  { %p5412_p12 = pnand %p5411_p11, %p5405_p8 }
0x218d   :  { %v4331_v39 = vpop.f32.mrb[58].mxu1 }
0x218e   :  { %v4332_v41 = vadd.f32 %v4495_v38, %v4331_v39  ;;  %v5049_v43 = vpop.f32.mrb[59].mxu1 }
0x2190   :  { %4335 = vst [vmem:[#allocation4] sm:$0x3] %v4332_v41 }
0x2191   :  { %5415 = shalt.err (!%p5412_p12)
}
0x2192   :  { %s5416_s16 = scalar_lea.hbm %s6595_s22, 32 }
0x2193   :  { %p5417_p13 = scmp.ne.s32.totalorder %s6595_s22, %s5416_s16  ;;  %p5420_p0 = scmp.lt.u32.totalorder %s5416_s16, %s6595_s22 }
0x2195   :  { %p5422_p1 = pnand %p5420_p0, %p5417_p13 }
0x2197   :  { %5425 = shalt.err (!%p5422_p1)
}
0x2198   :  { %4355 = dma.vmem_to_hbm [thread:$0]  %s4353_s15, 32, %s6595_s22, [#allocation5]  }
0x2199   :  { %5426 = dma.done.wait [#allocation3], 32  }
0x219a   :  { %5427 = vsyncadd [#allocation3], 4294967264 }
0x219b   :  { %5428 = dma.done.wait [#allocation5], 32  }
0x219c   :  { %5429 = vsyncadd [#allocation5], 4294967264 }
0x219d   :  { %4362 = vsyncpa [#allocation3], 1 }
0x219e   :  { %4363 = vsyncpa [#allocation5], 1 }

</bundles_post_ra>
